<compile_context>
chip_gen: v6e
topology: v6e:2x2x1
jax: 0.10.0
libtpu: 0.0.40
codegen_flags: <defaults>
</compile_context>

<pallas_src>
import functools

import jax
import jax.numpy as jnp
import numpy as np
from jax.experimental import pallas as pl
from jax.experimental.pallas import tpu as pltpu

BN_EPS = 1e-5
VMEM_LIMIT = 48 * 1024 * 1024          # explicit scoped-VMEM cap (fits v7x)


def _round_up(a, b):
    return ((a + b - 1) // b) * b


# --------------------------------------------------------------------------
# Pallas kernels (built per static tap schedule)
# --------------------------------------------------------------------------
def _make_conv_bn_relu_kernel(offsets, m_rows):
    """out = relu(BN(conv3x3(x)));  conv = sum_t x_flat[off_t:off_t+M] @ W_t."""
    def kernel(x_ref, w_ref, scale_ref, bias_ref, o_ref):
        acc = None
        for t, off in enumerate(offsets):
            a = x_ref[0, pl.ds(off, m_rows), :]                  # bf16 slab
            d = jnp.dot(a, w_ref[t], preferred_element_type=jnp.float32)
            acc = d if acc is None else acc + d
        y = acc * scale_ref[...] + bias_ref[...]
        o_ref[0] = jnp.maximum(y, 0.0).astype(o_ref.dtype)
    return kernel


def _make_conv_bn_add_relu_kernel(offsets, m_rows, projection):
    """out = relu(BN(conv3x3(h)) + shortcut).

    projection=False: shortcut = xs (identity residual, added directly).
    projection=True : shortcut = xs @ Wi + bi (1x1 stride-2 conv, xs already
                      spatially subsampled by the wrapper).
    """
    if projection:
        def kernel(x_ref, w_ref, scale_ref, bias_ref,
                   xs_ref, wi_ref, bi_ref, o_ref):
            acc = None
            for t, off in enumerate(offsets):
                a = x_ref[0, pl.ds(off, m_rows), :]
                d = jnp.dot(a, w_ref[t], preferred_element_type=jnp.float32)
                acc = d if acc is None else acc + d
            sc = jnp.dot(xs_ref[0], wi_ref[...],
                         preferred_element_type=jnp.float32) + bi_ref[...]
            y = acc * scale_ref[...] + bias_ref[...] + sc
            o_ref[0] = jnp.maximum(y, 0.0).astype(o_ref.dtype)
    else:
        def kernel(x_ref, w_ref, scale_ref, bias_ref, xs_ref, o_ref):
            acc = None
            for t, off in enumerate(offsets):
                a = x_ref[0, pl.ds(off, m_rows), :]
                d = jnp.dot(a, w_ref[t], preferred_element_type=jnp.float32)
                acc = d if acc is None else acc + d
            y = acc * scale_ref[...] + bias_ref[...] + xs_ref[0]
            o_ref[0] = jnp.maximum(y, 0.0).astype(o_ref.dtype)
    return kernel


# --------------------------------------------------------------------------
# Lowering of a 3x3 / pad-1 conv to flat-row tap matmuls (no im2col)
# --------------------------------------------------------------------------
def _prep_conv(x_nhwc, w_oihw, stride):
    """Returns (x_in (N,R,K) bf16, offsets, w_taps (T,K,Cout) f32,
    Ho, Wo, Wp, M_pad) such that for flat output index j = ho*Wp + wo:
        conv(x)[n, ho, wo, :] = sum_t x_in[n, j + off_t, :] @ w_taps[t]
    (columns wo >= Wo of each Wp-wide row are garbage, discarded later)."""
    N, H, W, Cin = x_nhwc.shape
    Cout = w_oihw.shape[0]
    # pad input channels to a sublane-friendly multiple of 8
    Cin_p = _round_up(Cin, 8)
    if Cin_p != Cin:
        x_nhwc = jnp.pad(x_nhwc, ((0, 0), (0, 0), (0, 0), (0, Cin_p - Cin)))
        w_oihw = jnp.pad(w_oihw, ((0, 0), (0, Cin_p - Cin), (0, 0), (0, 0)))
        Cin = Cin_p

    Ho = (H + 2 - 3) // stride + 1
    Wo = (W + 2 - 3) // stride + 1
    Wp = W + 2
    xp = jnp.pad(x_nhwc, ((0, 0), (1, 1), (1, 1), (0, 0)))
    R = (H + 2) * Wp
    xflat = xp.reshape(N, R, Cin)
    M_pad = _round_up(Ho * Wp, 8)
    w_hwio = jnp.transpose(w_oihw, (2, 3, 1, 0))          # (3,3,Cin,Cout)

    if stride == 1:
        offsets = tuple(kh * Wp + kw for kh in range(3) for kw in range(3))
        w_taps = w_hwio.reshape(9, Cin, Cout)
        x_in = xflat
    elif stride == 2:
        # fold pairs of flat rows -> one row of 2*Cin channels; every tap
        # becomes a contiguous row slice + a (2*Cin, Cout) weight.
        if R % 2:
            xflat = jnp.pad(xflat, ((0, 0), (0, 1), (0, 0)))
            R += 1
        x_in = xflat.reshape(N, R // 2, 2 * Cin)
        Kt = 2 * Cin
        groups = {}
        for kh in range(3):
            for kw in range(3):
                r0, g = divmod(kh * Wp + kw, 2)
                tap = jnp.zeros((Kt, Cout), w_hwio.dtype)
                tap = tap.at[g * Cin:(g + 1) * Cin, :].set(w_hwio[kh, kw])
                groups[r0] = groups[r0] + tap if r0 in groups else tap
        offsets = tuple(sorted(groups))
        w_taps = jnp.stack([groups[o] for o in offsets], axis=0)
    else:
        raise ValueError("stride must be 1 or 2")

    need = max(offsets) + M_pad
    if x_in.shape[1] < need:
        x_in = jnp.pad(x_in, ((0, 0), (0, need - x_in.shape[1]), (0, 0)))
    return x_in.astype(jnp.bfloat16), offsets, w_taps, Ho, Wo, Wp, M_pad


def _cout_block(cout):
    blk = 128 if cout <= 128 else 256
    return blk, _round_up(cout, blk)


# --------------------------------------------------------------------------
# pallas_call wrappers
# --------------------------------------------------------------------------
def _conv_bn_relu(x_nhwc, w, scale, bias, stride, out_dtype=jnp.bfloat16):
    """conv3x3(stride) + folded BN + ReLU.  Returns (N,Ho,Wo,Cout_pad)."""
    N = x_nhwc.shape[0]
    Cout = w.shape[0]
    x_in, offsets, w_taps, Ho, Wo, Wp, M_pad = _prep_conv(x_nhwc, w, stride)
    T, Kt, _ = w_taps.shape
    Rx = x_in.shape[1]
    blk, Cout_p = _cout_block(Cout)

    w_p = jnp.pad(w_taps, ((0, 0), (0, 0), (0, Cout_p - Cout))).astype(jnp.bfloat16)
    sc_p = jnp.pad(scale, (0, Cout_p - Cout)).reshape(1, -1).astype(jnp.float32)
    b_p = jnp.pad(bias, (0, Cout_p - Cout)).reshape(1, -1).astype(jnp.float32)

    n_cb = Cout_p // blk
    flops = 2 * N * M_pad * Kt * T * Cout_p
    bytes_accessed = (x_in.size * 2 * n_cb + w_p.size * 2 * N
                      + N * M_pad * Cout_p * jnp.dtype(out_dtype).itemsize)

    out = pl.pallas_call(
        _make_conv_bn_relu_kernel(offsets, M_pad),
        out_shape=jax.ShapeDtypeStruct((N, M_pad, Cout_p), out_dtype),
        grid=(N, n_cb),
        in_specs=[
            pl.BlockSpec((1, Rx, Kt), lambda n, j: (n, 0, 0)),
            pl.BlockSpec((T, Kt, blk), lambda n, j: (0, 0, j)),
            pl.BlockSpec((1, blk), lambda n, j: (0, j)),
            pl.BlockSpec((1, blk), lambda n, j: (0, j)),
        ],
        out_specs=pl.BlockSpec((1, M_pad, blk), lambda n, j: (n, 0, j)),
        compiler_params=pltpu.CompilerParams(
            dimension_semantics=("parallel", "parallel"),
            vmem_limit_bytes=VMEM_LIMIT),
        cost_estimate=pl.CostEstimate(flops=flops, transcendentals=0,
                                      bytes_accessed=bytes_accessed),
    )(x_in, w_p, sc_p, b_p)

    out = out[:, :Ho * Wp, :].reshape(N, Ho, Wp, Cout_p)[:, :, :Wo, :]
    return out                                   # channels padded to Cout_p


def _conv_bn_shortcut_relu(h_nhwc, w, scale, bias, shortcut, wi=None, bi=None):
    """conv3x3(stride 1) + folded BN + shortcut add + ReLU (fused)."""
    N, Ho, Wo, _ = h_nhwc.shape
    Cout = w.shape[0]
    x_in, offsets, w_taps, _, _, Wp, M_pad = _prep_conv(h_nhwc, w, 1)
    T, Kt, _ = w_taps.shape
    Rx = x_in.shape[1]
    blk, Cout_p = _cout_block(Cout)

    w_p = jnp.pad(w_taps, ((0, 0), (0, 0), (0, Cout_p - Cout))).astype(jnp.bfloat16)
    sc_p = jnp.pad(scale, (0, Cout_p - Cout)).reshape(1, -1).astype(jnp.float32)
    b_p = jnp.pad(bias, (0, Cout_p - Cout)).reshape(1, -1).astype(jnp.float32)

    # align shortcut rows with the flat output index j = ho*Wp + wo
    Cs = shortcut.shape[-1]
    xs = jnp.pad(shortcut, ((0, 0), (0, 0), (0, Wp - Wo), (0, 0)))
    xs = xs.reshape(N, Ho * Wp, Cs)
    xs = jnp.pad(xs, ((0, 0), (0, M_pad - Ho * Wp), (0, 0)))

    if wi is None:                                 # identity residual (s == 1)
        xs = jnp.pad(xs, ((0, 0), (0, 0), (0, Cout_p - Cs))).astype(jnp.float32)
        extra_args = (xs,)
        extra_specs = [pl.BlockSpec((1, M_pad, blk), lambda n, j: (n, 0, j))]
        sc_flops = 0
    else:                                          # 1x1 stride-2 projection
        Cs_p = _round_up(Cs, 8)
        xs = jnp.pad(xs, ((0, 0), (0, 0), (0, Cs_p - Cs))).astype(jnp.bfloat16)
        wi_m = jnp.pad(wi[:, :, 0, 0].T,
                       ((0, Cs_p - Cs), (0, Cout_p - Cout))).astype(jnp.bfloat16)
        bi_p = jnp.pad(bi, (0, Cout_p - Cout)).reshape(1, -1).astype(jnp.float32)
        extra_args = (xs, wi_m, bi_p)
        extra_specs = [
            pl.BlockSpec((1, M_pad, Cs_p), lambda n, j: (n, 0, 0)),
            pl.BlockSpec((Cs_p, blk), lambda n, j: (0, j)),
            pl.BlockSpec((1, blk), lambda n, j: (0, j)),
        ]
        sc_flops = 2 * N * M_pad * Cs_p * Cout_p

    n_cb = Cout_p // blk
    flops = 2 * N * M_pad * Kt * T * Cout_p + sc_flops
    bytes_accessed = (x_in.size * 2 * n_cb + w_p.size * 2 * N
                      + xs.size * xs.dtype.itemsize + N * M_pad * Cout_p * 4)

    out = pl.pallas_call(
        _make_conv_bn_add_relu_kernel(offsets, M_pad, projection=wi is not None),
        out_shape=jax.ShapeDtypeStruct((N, M_pad, Cout_p), jnp.float32),
        grid=(N, n_cb),
        in_specs=[
            pl.BlockSpec((1, Rx, Kt), lambda n, j: (n, 0, 0)),
            pl.BlockSpec((T, Kt, blk), lambda n, j: (0, 0, j)),
            pl.BlockSpec((1, blk), lambda n, j: (0, j)),
            pl.BlockSpec((1, blk), lambda n, j: (0, j)),
        ] + extra_specs,
        out_specs=pl.BlockSpec((1, M_pad, blk), lambda n, j: (n, 0, j)),
        compiler_params=pltpu.CompilerParams(
            dimension_semantics=("parallel", "parallel"),
            vmem_limit_bytes=VMEM_LIMIT),
        cost_estimate=pl.CostEstimate(flops=flops, transcendentals=0,
                                      bytes_accessed=bytes_accessed),
    )(x_in, w_p, sc_p, b_p, *extra_args)

    out = out[:, :Ho * Wp, :].reshape(N, Ho, Wp, Cout_p)[:, :, :Wo, :Cout]
    return out                                    # (N, Ho, Wo, Cout) f32


# --------------------------------------------------------------------------
# BN folding, parameter init, forward
# --------------------------------------------------------------------------
def _fold_bn(bn):
    scale = bn["gamma"] / jnp.sqrt(bn["var"] + BN_EPS)
    bias = bn["beta"] - bn["mean"] * scale
    return scale, bias


def init_params(key, ins, outs, s):
    ks = jax.random.split(key, 8)
    p = {
        "w1": 0.1 * jax.random.normal(ks[0], (outs, ins, 3, 3), jnp.float32),
        "w2": 0.1 * jax.random.normal(ks[1], (outs, outs, 3, 3), jnp.float32),
        "bn1": {
            "gamma": jax.random.uniform(ks[2], (outs,), jnp.float32, 0.5, 1.5),
            "beta": 0.1 * jax.random.normal(ks[3], (outs,), jnp.float32),
            "mean": 0.1 * jax.random.normal(ks[4], (outs,), jnp.float32),
            "var": jax.random.uniform(ks[5], (outs,), jnp.float32, 0.5, 1.5),
        },
        "bn2": {
            "gamma": jax.random.uniform(ks[6], (outs,), jnp.float32, 0.5, 1.5),
            "beta": 0.1 * jax.random.normal(ks[7], (outs,), jnp.float32),
            "mean": 0.1 * jax.random.normal(ks[2], (outs,), jnp.float32),
            "var": jax.random.uniform(ks[3], (outs,), jnp.float32, 0.5, 1.5),
        },
    }
    if s == 2:
        p["wi"] = 0.1 * jax.random.normal(ks[4], (outs, ins, 1, 1), jnp.float32)
        p["bi"] = 0.1 * jax.random.normal(ks[5], (outs,), jnp.float32)
    return p


@functools.partial(jax.jit, static_argnames=("s",))
def res_block_forward(x_nchw, params, s=1):
    x = jnp.transpose(x_nchw, (0, 2, 3, 1)).astype(jnp.float32)   # NHWC
    Cout = params["w1"].shape[0]
    sc1, b1 = _fold_bn(params["bn1"])
    sc2, b2 = _fold_bn(params["bn2"])

    # conv1 (3x3, stride s, pad 1) + BN1 + ReLU  -> bf16, channels padded
    h = _conv_bn_relu(x, params["w1"], sc1, b1, s)[..., :Cout]

    # conv2 (3x3, stride 1, pad 1) + BN2, fused with shortcut add + final ReLU
    if s == 2:
        xs = x[:, ::2, ::2, :]                    # 1x1 / stride-2 sampling
        out = _conv_bn_shortcut_relu(h, params["w2"], sc2, b2, xs,
                                     wi=params["wi"], bi=params["bi"])
    else:
        assert x.shape[-1] == Cout, "identity shortcut requires ins == outs"
        out = _conv_bn_shortcut_relu(h, params["w2"], sc2, b2, x)
    return jnp.transpose(out, (0, 3, 1, 2))       # back to NCHW


# --------------------------------------------------------------------------
# Pure-JAX reference (XLA conv, f32) for correctness checking
# --------------------------------------------------------------------------
def _reference_forward(x_nchw, params, s):
    x = jnp.transpose(x_nchw, (0, 2, 3, 1)).astype(jnp.float32)

    def conv(inp, w, stride, pad):
        wk = jnp.transpose(w, (2, 3, 1, 0))       # HWIO
        return jax.lax.conv_general_dilated(
            inp, wk, (stride, stride), ((pad, pad), (pad, pad)),
            dimension_numbers=("NHWC", "HWIO", "NHWC"),
            precision="highest")

    def bn(inp, p):
        sc = p["gamma"] / jnp.sqrt(p["var"] + BN_EPS)
        return inp * sc + (p["beta"] - p["mean"] * sc)

    h = jnp.maximum(bn(conv(x, params["w1"], s, 1), params["bn1"]), 0.0)
    f = bn(conv(h, params["w2"], 1, 1), params["bn2"])
    short = conv(x, params["wi"], 2, 0) + params["bi"] if s == 2 else x
    out = jnp.maximum(f + short, 0.0)
    return jnp.transpose(out, (0, 3, 1, 2))


# --------------------------------------------------------------------------
if __name__ == "__main__":
    key = jax.random.PRNGKey(0)
    kx, kp1, kp2 = jax.random.split(key, 3)

    # small shapes consistent with the module's forward
    x = jax.random.normal(kx, (2, 4, 16, 16), jnp.float32)        # NCHW

    # case 1: s = 1, identity shortcut (ins == outs == 4)
    params1 = init_params(kp1, ins=4, outs=4, s=1)
    y1 = jax.block_until_ready(res_block_forward(x, params1, s=1))
    r1 = jax.block_until_ready(_reference_forward(x, params1, 1))
    np.testing.assert_allclose(np.asarray(y1), np.asarray(r1),
                               rtol=5e-2, atol=2e-2)
    assert y1.shape == (2, 4, 16, 16)

    # case 2: s = 2, 1x1-conv projection shortcut (ins=4 -> outs=8)
    params2 = init_params(kp2, ins=4, outs=8, s=2)
    y2 = jax.block_until_ready(res_block_forward(x, params2, s=2))
    r2 = jax.block_until_ready(_reference_forward(x, params2, 2))
    np.testing.assert_allclose(np.asarray(y2), np.asarray(r2),
                               rtol=5e-2, atol=2e-2)
    assert y2.shape == (2, 8, 8, 8)

    print("KERNEL_OK")
</pallas_src>

<mosaic_0001>
module attributes {stable_mosaic.version = 11 : i64} {
  func.func @kernel(%arg0: i32, %arg1: i32, %arg2: memref<1x326x8xbf16, #tpu.memory_space<vmem>>, %arg3: memref<9x8x128xbf16, #tpu.memory_space<vmem>>, %arg4: memref<1x128xf32, #tpu.memory_space<vmem>>, %arg5: memref<1x128xf32, #tpu.memory_space<vmem>>, %arg6: memref<1x288x128xbf16, #tpu.memory_space<vmem>>) attributes {dimension_semantics = [#tpu.dimension_semantics<parallel>, #tpu.dimension_semantics<parallel>], iteration_bounds = array<i64: 2, 1>, scalar_prefetch = 0 : i64, scratch_operands = 0 : i64, tpu.core_type = #tpu.core_type<tc>, window_params = [{transform_indices = @transform_0, window_bounds = array<i64: 1, 326, 8>}, {transform_indices = @transform_1, window_bounds = array<i64: 9, 8, 128>}, {transform_indices = @transform_2, window_bounds = array<i64: 1, 128>}, {transform_indices = @transform_3, window_bounds = array<i64: 1, 128>}, {transform_indices = @transform_4, window_bounds = array<i64: 1, 288, 128>}]} {
    %c0 = arith.constant 0 : index
    %c0_0 = arith.constant 0 : index
    %c0_1 = arith.constant 0 : index
    %0 = vector.load %arg2[%c0, %c0_0, %c0_1] : memref<1x326x8xbf16, #tpu.memory_space<vmem>>, vector<1x288x8xbf16>
    %1 = vector.shape_cast %0 : vector<1x288x8xbf16> to vector<288x8xbf16>
    %c0_2 = arith.constant 0 : index
    %c0_3 = arith.constant 0 : index
    %c0_4 = arith.constant 0 : index
    %2 = vector.load %arg3[%c0_2, %c0_3, %c0_4] : memref<9x8x128xbf16, #tpu.memory_space<vmem>>, vector<1x8x128xbf16>
    %3 = vector.shape_cast %2 : vector<1x8x128xbf16> to vector<8x128xbf16>
    %cst = arith.constant dense<0.000000e+00> : vector<288x128xf32>
    %4 = tpu.matmul %1, %3, %cst {dimension_numbers = #tpu.dot_dimension_numbers<[1], [0], [0], [1], [0, 0, 1, 1], [], []>} : vector<288x8xbf16>, vector<8x128xbf16>, vector<288x128xf32> -> vector<288x128xf32>
    %c0_5 = arith.constant 0 : index
    %c1 = arith.constant 1 : index
    %c0_6 = arith.constant 0 : index
    %5 = vector.load %arg2[%c0_5, %c1, %c0_6] : memref<1x326x8xbf16, #tpu.memory_space<vmem>>, vector<1x288x8xbf16>
    %6 = vector.shape_cast %5 : vector<1x288x8xbf16> to vector<288x8xbf16>
    %c1_7 = arith.constant 1 : index
    %c0_8 = arith.constant 0 : index
    %c0_9 = arith.constant 0 : index
    %7 = vector.load %arg3[%c1_7, %c0_8, %c0_9] : memref<9x8x128xbf16, #tpu.memory_space<vmem>>, vector<1x8x128xbf16>
    %8 = vector.shape_cast %7 : vector<1x8x128xbf16> to vector<8x128xbf16>
    %cst_10 = arith.constant dense<0.000000e+00> : vector<288x128xf32>
    %9 = tpu.matmul %6, %8, %cst_10 {dimension_numbers = #tpu.dot_dimension_numbers<[1], [0], [0], [1], [0, 0, 1, 1], [], []>} : vector<288x8xbf16>, vector<8x128xbf16>, vector<288x128xf32> -> vector<288x128xf32>
    %10 = arith.addf %4, %9 : vector<288x128xf32>
    %c0_11 = arith.constant 0 : index
    %c2 = arith.constant 2 : index
    %c0_12 = arith.constant 0 : index
    %11 = vector.load %arg2[%c0_11, %c2, %c0_12] : memref<1x326x8xbf16, #tpu.memory_space<vmem>>, vector<1x288x8xbf16>
    %12 = vector.shape_cast %11 : vector<1x288x8xbf16> to vector<288x8xbf16>
    %c2_13 = arith.constant 2 : index
    %c0_14 = arith.constant 0 : index
    %c0_15 = arith.constant 0 : index
    %13 = vector.load %arg3[%c2_13, %c0_14, %c0_15] : memref<9x8x128xbf16, #tpu.memory_space<vmem>>, vector<1x8x128xbf16>
    %14 = vector.shape_cast %13 : vector<1x8x128xbf16> to vector<8x128xbf16>
    %cst_16 = arith.constant dense<0.000000e+00> : vector<288x128xf32>
    %15 = tpu.matmul %12, %14, %cst_16 {dimension_numbers = #tpu.dot_dimension_numbers<[1], [0], [0], [1], [0, 0, 1, 1], [], []>} : vector<288x8xbf16>, vector<8x128xbf16>, vector<288x128xf32> -> vector<288x128xf32>
    %16 = arith.addf %10, %15 : vector<288x128xf32>
    %c0_17 = arith.constant 0 : index
    %c18 = arith.constant 18 : index
    %c0_18 = arith.constant 0 : index
    %17 = vector.load %arg2[%c0_17, %c18, %c0_18] : memref<1x326x8xbf16, #tpu.memory_space<vmem>>, vector<1x288x8xbf16>
    %18 = vector.shape_cast %17 : vector<1x288x8xbf16> to vector<288x8xbf16>
    %c3 = arith.constant 3 : index
    %c0_19 = arith.constant 0 : index
    %c0_20 = arith.constant 0 : index
    %19 = vector.load %arg3[%c3, %c0_19, %c0_20] : memref<9x8x128xbf16, #tpu.memory_space<vmem>>, vector<1x8x128xbf16>
    %20 = vector.shape_cast %19 : vector<1x8x128xbf16> to vector<8x128xbf16>
    %cst_21 = arith.constant dense<0.000000e+00> : vector<288x128xf32>
    %21 = tpu.matmul %18, %20, %cst_21 {dimension_numbers = #tpu.dot_dimension_numbers<[1], [0], [0], [1], [0, 0, 1, 1], [], []>} : vector<288x8xbf16>, vector<8x128xbf16>, vector<288x128xf32> -> vector<288x128xf32>
    %22 = arith.addf %16, %21 : vector<288x128xf32>
    %c0_22 = arith.constant 0 : index
    %c19 = arith.constant 19 : index
    %c0_23 = arith.constant 0 : index
    %23 = vector.load %arg2[%c0_22, %c19, %c0_23] : memref<1x326x8xbf16, #tpu.memory_space<vmem>>, vector<1x288x8xbf16>
    %24 = vector.shape_cast %23 : vector<1x288x8xbf16> to vector<288x8xbf16>
    %c4 = arith.constant 4 : index
    %c0_24 = arith.constant 0 : index
    %c0_25 = arith.constant 0 : index
    %25 = vector.load %arg3[%c4, %c0_24, %c0_25] : memref<9x8x128xbf16, #tpu.memory_space<vmem>>, vector<1x8x128xbf16>
    %26 = vector.shape_cast %25 : vector<1x8x128xbf16> to vector<8x128xbf16>
    %cst_26 = arith.constant dense<0.000000e+00> : vector<288x128xf32>
    %27 = tpu.matmul %24, %26, %cst_26 {dimension_numbers = #tpu.dot_dimension_numbers<[1], [0], [0], [1], [0, 0, 1, 1], [], []>} : vector<288x8xbf16>, vector<8x128xbf16>, vector<288x128xf32> -> vector<288x128xf32>
    %28 = arith.addf %22, %27 : vector<288x128xf32>
    %c0_27 = arith.constant 0 : index
    %c20 = arith.constant 20 : index
    %c0_28 = arith.constant 0 : index
    %29 = vector.load %arg2[%c0_27, %c20, %c0_28] : memref<1x326x8xbf16, #tpu.memory_space<vmem>>, vector<1x288x8xbf16>
    %30 = vector.shape_cast %29 : vector<1x288x8xbf16> to vector<288x8xbf16>
    %c5 = arith.constant 5 : index
    %c0_29 = arith.constant 0 : index
    %c0_30 = arith.constant 0 : index
    %31 = vector.load %arg3[%c5, %c0_29, %c0_30] : memref<9x8x128xbf16, #tpu.memory_space<vmem>>, vector<1x8x128xbf16>
    %32 = vector.shape_cast %31 : vector<1x8x128xbf16> to vector<8x128xbf16>
    %cst_31 = arith.constant dense<0.000000e+00> : vector<288x128xf32>
    %33 = tpu.matmul %30, %32, %cst_31 {dimension_numbers = #tpu.dot_dimension_numbers<[1], [0], [0], [1], [0, 0, 1, 1], [], []>} : vector<288x8xbf16>, vector<8x128xbf16>, vector<288x128xf32> -> vector<288x128xf32>
    %34 = arith.addf %28, %33 : vector<288x128xf32>
    %c0_32 = arith.constant 0 : index
    %c36 = arith.constant 36 : index
    %c0_33 = arith.constant 0 : index
    %35 = vector.load %arg2[%c0_32, %c36, %c0_33] : memref<1x326x8xbf16, #tpu.memory_space<vmem>>, vector<1x288x8xbf16>
    %36 = vector.shape_cast %35 : vector<1x288x8xbf16> to vector<288x8xbf16>
    %c6 = arith.constant 6 : index
    %c0_34 = arith.constant 0 : index
    %c0_35 = arith.constant 0 : index
    %37 = vector.load %arg3[%c6, %c0_34, %c0_35] : memref<9x8x128xbf16, #tpu.memory_space<vmem>>, vector<1x8x128xbf16>
    %38 = vector.shape_cast %37 : vector<1x8x128xbf16> to vector<8x128xbf16>
    %cst_36 = arith.constant dense<0.000000e+00> : vector<288x128xf32>
    %39 = tpu.matmul %36, %38, %cst_36 {dimension_numbers = #tpu.dot_dimension_numbers<[1], [0], [0], [1], [0, 0, 1, 1], [], []>} : vector<288x8xbf16>, vector<8x128xbf16>, vector<288x128xf32> -> vector<288x128xf32>
    %40 = arith.addf %34, %39 : vector<288x128xf32>
    %c0_37 = arith.constant 0 : index
    %c37 = arith.constant 37 : index
    %c0_38 = arith.constant 0 : index
    %41 = vector.load %arg2[%c0_37, %c37, %c0_38] : memref<1x326x8xbf16, #tpu.memory_space<vmem>>, vector<1x288x8xbf16>
    %42 = vector.shape_cast %41 : vector<1x288x8xbf16> to vector<288x8xbf16>
    %c7 = arith.constant 7 : index
    %c0_39 = arith.constant 0 : index
    %c0_40 = arith.constant 0 : index
    %43 = vector.load %arg3[%c7, %c0_39, %c0_40] : memref<9x8x128xbf16, #tpu.memory_space<vmem>>, vector<1x8x128xbf16>
    %44 = vector.shape_cast %43 : vector<1x8x128xbf16> to vector<8x128xbf16>
    %cst_41 = arith.constant dense<0.000000e+00> : vector<288x128xf32>
    %45 = tpu.matmul %42, %44, %cst_41 {dimension_numbers = #tpu.dot_dimension_numbers<[1], [0], [0], [1], [0, 0, 1, 1], [], []>} : vector<288x8xbf16>, vector<8x128xbf16>, vector<288x128xf32> -> vector<288x128xf32>
    %46 = arith.addf %40, %45 : vector<288x128xf32>
    %c0_42 = arith.constant 0 : index
    %c38 = arith.constant 38 : index
    %c0_43 = arith.constant 0 : index
    %47 = vector.load %arg2[%c0_42, %c38, %c0_43] : memref<1x326x8xbf16, #tpu.memory_space<vmem>>, vector<1x288x8xbf16>
    %48 = vector.shape_cast %47 : vector<1x288x8xbf16> to vector<288x8xbf16>
    %c8 = arith.constant 8 : index
    %c0_44 = arith.constant 0 : index
    %c0_45 = arith.constant 0 : index
    %49 = vector.load %arg3[%c8, %c0_44, %c0_45] : memref<9x8x128xbf16, #tpu.memory_space<vmem>>, vector<1x8x128xbf16>
    %50 = vector.shape_cast %49 : vector<1x8x128xbf16> to vector<8x128xbf16>
    %cst_46 = arith.constant dense<0.000000e+00> : vector<288x128xf32>
    %51 = tpu.matmul %48, %50, %cst_46 {dimension_numbers = #tpu.dot_dimension_numbers<[1], [0], [0], [1], [0, 0, 1, 1], [], []>} : vector<288x8xbf16>, vector<8x128xbf16>, vector<288x128xf32> -> vector<288x128xf32>
    %52 = arith.addf %46, %51 : vector<288x128xf32>
    %c0_47 = arith.constant 0 : index
    %c0_48 = arith.constant 0 : index
    %53 = vector.load %arg4[%c0_47, %c0_48] : memref<1x128xf32, #tpu.memory_space<vmem>>, vector<1x128xf32>
    %54 = vector.broadcast %53 : vector<1x128xf32> to vector<288x128xf32>
    %55 = arith.mulf %52, %54 : vector<288x128xf32>
    %c0_49 = arith.constant 0 : index
    %c0_50 = arith.constant 0 : index
    %56 = vector.load %arg5[%c0_49, %c0_50] : memref<1x128xf32, #tpu.memory_space<vmem>>, vector<1x128xf32>
    %57 = vector.broadcast %56 : vector<1x128xf32> to vector<288x128xf32>
    %58 = arith.addf %55, %57 : vector<288x128xf32>
    %cst_51 = arith.constant 0.000000e+00 : f32
    %59 = vector.broadcast %cst_51 : f32 to vector<288x128xf32>
    %60 = arith.maximumf %58, %59 : vector<288x128xf32>
    %61 = arith.truncf %60 : vector<288x128xf32> to vector<288x128xbf16>
    %c0_52 = arith.constant 0 : index
    %c0_53 = arith.constant 0 : index
    %c0_54 = arith.constant 0 : index
    %62 = vector.load %arg6[%c0_52, %c0_53, %c0_54] : memref<1x288x128xbf16, #tpu.memory_space<vmem>>, vector<1x288x128xbf16>
    %63 = vector.shape_cast %62 : vector<1x288x128xbf16> to vector<288x128xbf16>
    %64 = vector.shape_cast %61 : vector<288x128xbf16> to vector<1x288x128xbf16>
    tpu.vector_store %arg6[%c0_52, %c0_53, %c0_54], %64 {strides = array<i32>} : memref<1x288x128xbf16, #tpu.memory_space<vmem>>, vector<1x288x128xbf16>,
    return
  }
  func.func @transform_0(%arg0: i32, %arg1: i32) -> (i32, i32, i32) {
    %c0_i32 = arith.constant 0 : i32
    %c0_i32_0 = arith.constant 0 : i32
    %c0_i32_1 = arith.constant 0 : i32
    return %arg0, %c0_i32, %c0_i32_0 : i32, i32, i32
  }
  func.func @transform_1(%arg0: i32, %arg1: i32) -> (i32, i32, i32) {
    %c0_i32 = arith.constant 0 : i32
    %c0_i32_0 = arith.constant 0 : i32
    %c0_i32_1 = arith.constant 0 : i32
    return %c0_i32, %c0_i32_0, %arg1 : i32, i32, i32
  }
  func.func @transform_2(%arg0: i32, %arg1: i32) -> (i32, i32) {
    %c0_i32 = arith.constant 0 : i32
    %c0_i32_0 = arith.constant 0 : i32
    return %c0_i32, %arg1 : i32, i32
  }
  func.func @transform_3(%arg0: i32, %arg1: i32) -> (i32, i32) {
    %c0_i32 = arith.constant 0 : i32
    %c0_i32_0 = arith.constant 0 : i32
    return %c0_i32, %arg1 : i32, i32
  }
  func.func @transform_4(%arg0: i32, %arg1: i32) -> (i32, i32, i32) {
    %c0_i32 = arith.constant 0 : i32
    %c0_i32_0 = arith.constant 0 : i32
    return %arg0, %c0_i32, %arg1 : i32, i32, i32
  }
}

module attributes {stable_mosaic.version = 11 : i64} {
  func.func @kernel(%arg0: i32, %arg1: i32, %arg2: memref<1x326x8xbf16, #tpu.memory_space<vmem>>, %arg3: memref<9x8x128xbf16, #tpu.memory_space<vmem>>, %arg4: memref<1x128xf32, #tpu.memory_space<vmem>>, %arg5: memref<1x128xf32, #tpu.memory_space<vmem>>, %arg6: memref<1x288x128xf32, #tpu.memory_space<vmem>>, %arg7: memref<1x288x128xf32, #tpu.memory_space<vmem>>) attributes {dimension_semantics = [#tpu.dimension_semantics<parallel>, #tpu.dimension_semantics<parallel>], iteration_bounds = array<i64: 2, 1>, scalar_prefetch = 0 : i64, scratch_operands = 0 : i64, tpu.core_type = #tpu.core_type<tc>, window_params = [{transform_indices = @transform_0, window_bounds = array<i64: 1, 326, 8>}, {transform_indices = @transform_1, window_bounds = array<i64: 9, 8, 128>}, {transform_indices = @transform_2, window_bounds = array<i64: 1, 128>}, {transform_indices = @transform_3, window_bounds = array<i64: 1, 128>}, {transform_indices = @transform_4, window_bounds = array<i64: 1, 288, 128>}, {transform_indices = @transform_5, window_bounds = array<i64: 1, 288, 128>}]} {
    %c0 = arith.constant 0 : index
    %c0_0 = arith.constant 0 : index
    %c0_1 = arith.constant 0 : index
    %0 = vector.load %arg2[%c0, %c0_0, %c0_1] : memref<1x326x8xbf16, #tpu.memory_space<vmem>>, vector<1x288x8xbf16>
    %1 = vector.shape_cast %0 : vector<1x288x8xbf16> to vector<288x8xbf16>
    %c0_2 = arith.constant 0 : index
    %c0_3 = arith.constant 0 : index
    %c0_4 = arith.constant 0 : index
    %2 = vector.load %arg3[%c0_2, %c0_3, %c0_4] : memref<9x8x128xbf16, #tpu.memory_space<vmem>>, vector<1x8x128xbf16>
    %3 = vector.shape_cast %2 : vector<1x8x128xbf16> to vector<8x128xbf16>
    %cst = arith.constant dense<0.000000e+00> : vector<288x128xf32>
    %4 = tpu.matmul %1, %3, %cst {dimension_numbers = #tpu.dot_dimension_numbers<[1], [0], [0], [1], [0, 0, 1, 1], [], []>} : vector<288x8xbf16>, vector<8x128xbf16>, vector<288x128xf32> -> vector<288x128xf32>
    %c0_5 = arith.constant 0 : index
    %c1 = arith.constant 1 : index
    %c0_6 = arith.constant 0 : index
    %5 = vector.load %arg2[%c0_5, %c1, %c0_6] : memref<1x326x8xbf16, #tpu.memory_space<vmem>>, vector<1x288x8xbf16>
    %6 = vector.shape_cast %5 : vector<1x288x8xbf16> to vector<288x8xbf16>
    %c1_7 = arith.constant 1 : index
    %c0_8 = arith.constant 0 : index
    %c0_9 = arith.constant 0 : index
    %7 = vector.load %arg3[%c1_7, %c0_8, %c0_9] : memref<9x8x128xbf16, #tpu.memory_space<vmem>>, vector<1x8x128xbf16>
    %8 = vector.shape_cast %7 : vector<1x8x128xbf16> to vector<8x128xbf16>
    %cst_10 = arith.constant dense<0.000000e+00> : vector<288x128xf32>
    %9 = tpu.matmul %6, %8, %cst_10 {dimension_numbers = #tpu.dot_dimension_numbers<[1], [0], [0], [1], [0, 0, 1, 1], [], []>} : vector<288x8xbf16>, vector<8x128xbf16>, vector<288x128xf32> -> vector<288x128xf32>
    %10 = arith.addf %4, %9 : vector<288x128xf32>
    %c0_11 = arith.constant 0 : index
    %c2 = arith.constant 2 : index
    %c0_12 = arith.constant 0 : index
    %11 = vector.load %arg2[%c0_11, %c2, %c0_12] : memref<1x326x8xbf16, #tpu.memory_space<vmem>>, vector<1x288x8xbf16>
    %12 = vector.shape_cast %11 : vector<1x288x8xbf16> to vector<288x8xbf16>
    %c2_13 = arith.constant 2 : index
    %c0_14 = arith.constant 0 : index
    %c0_15 = arith.constant 0 : index
    %13 = vector.load %arg3[%c2_13, %c0_14, %c0_15] : memref<9x8x128xbf16, #tpu.memory_space<vmem>>, vector<1x8x128xbf16>
    %14 = vector.shape_cast %13 : vector<1x8x128xbf16> to vector<8x128xbf16>
    %cst_16 = arith.constant dense<0.000000e+00> : vector<288x128xf32>
    %15 = tpu.matmul %12, %14, %cst_16 {dimension_numbers = #tpu.dot_dimension_numbers<[1], [0], [0], [1], [0, 0, 1, 1], [], []>} : vector<288x8xbf16>, vector<8x128xbf16>, vector<288x128xf32> -> vector<288x128xf32>
    %16 = arith.addf %10, %15 : vector<288x128xf32>
    %c0_17 = arith.constant 0 : index
    %c18 = arith.constant 18 : index
    %c0_18 = arith.constant 0 : index
    %17 = vector.load %arg2[%c0_17, %c18, %c0_18] : memref<1x326x8xbf16, #tpu.memory_space<vmem>>, vector<1x288x8xbf16>
    %18 = vector.shape_cast %17 : vector<1x288x8xbf16> to vector<288x8xbf16>
    %c3 = arith.constant 3 : index
    %c0_19 = arith.constant 0 : index
    %c0_20 = arith.constant 0 : index
    %19 = vector.load %arg3[%c3, %c0_19, %c0_20] : memref<9x8x128xbf16, #tpu.memory_space<vmem>>, vector<1x8x128xbf16>
    %20 = vector.shape_cast %19 : vector<1x8x128xbf16> to vector<8x128xbf16>
    %cst_21 = arith.constant dense<0.000000e+00> : vector<288x128xf32>
    %21 = tpu.matmul %18, %20, %cst_21 {dimension_numbers = #tpu.dot_dimension_numbers<[1], [0], [0], [1], [0, 0, 1, 1], [], []>} : vector<288x8xbf16>, vector<8x128xbf16>, vector<288x128xf32> -> vector<288x128xf32>
    %22 = arith.addf %16, %21 : vector<288x128xf32>
    %c0_22 = arith.constant 0 : index
    %c19 = arith.constant 19 : index
    %c0_23 = arith.constant 0 : index
    %23 = vector.load %arg2[%c0_22, %c19, %c0_23] : memref<1x326x8xbf16, #tpu.memory_space<vmem>>, vector<1x288x8xbf16>
    %24 = vector.shape_cast %23 : vector<1x288x8xbf16> to vector<288x8xbf16>
    %c4 = arith.constant 4 : index
    %c0_24 = arith.constant 0 : index
    %c0_25 = arith.constant 0 : index
    %25 = vector.load %arg3[%c4, %c0_24, %c0_25] : memref<9x8x128xbf16, #tpu.memory_space<vmem>>, vector<1x8x128xbf16>
    %26 = vector.shape_cast %25 : vector<1x8x128xbf16> to vector<8x128xbf16>
    %cst_26 = arith.constant dense<0.000000e+00> : vector<288x128xf32>
    %27 = tpu.matmul %24, %26, %cst_26 {dimension_numbers = #tpu.dot_dimension_numbers<[1], [0], [0], [1], [0, 0, 1, 1], [], []>} : vector<288x8xbf16>, vector<8x128xbf16>, vector<288x128xf32> -> vector<288x128xf32>
    %28 = arith.addf %22, %27 : vector<288x128xf32>
    %c0_27 = arith.constant 0 : index
    %c20 = arith.constant 20 : index
    %c0_28 = arith.constant 0 : index
    %29 = vector.load %arg2[%c0_27, %c20, %c0_28] : memref<1x326x8xbf16, #tpu.memory_space<vmem>>, vector<1x288x8xbf16>
    %30 = vector.shape_cast %29 : vector<1x288x8xbf16> to vector<288x8xbf16>
    %c5 = arith.constant 5 : index
    %c0_29 = arith.constant 0 : index
    %c0_30 = arith.constant 0 : index
    %31 = vector.load %arg3[%c5, %c0_29, %c0_30] : memref<9x8x128xbf16, #tpu.memory_space<vmem>>, vector<1x8x128xbf16>
    %32 = vector.shape_cast %31 : vector<1x8x128xbf16> to vector<8x128xbf16>
    %cst_31 = arith.constant dense<0.000000e+00> : vector<288x128xf32>
    %33 = tpu.matmul %30, %32, %cst_31 {dimension_numbers = #tpu.dot_dimension_numbers<[1], [0], [0], [1], [0, 0, 1, 1], [], []>} : vector<288x8xbf16>, vector<8x128xbf16>, vector<288x128xf32> -> vector<288x128xf32>
    %34 = arith.addf %28, %33 : vector<288x128xf32>
    %c0_32 = arith.constant 0 : index
    %c36 = arith.constant 36 : index
    %c0_33 = arith.constant 0 : index
    %35 = vector.load %arg2[%c0_32, %c36, %c0_33] : memref<1x326x8xbf16, #tpu.memory_space<vmem>>, vector<1x288x8xbf16>
    %36 = vector.shape_cast %35 : vector<1x288x8xbf16> to vector<288x8xbf16>
    %c6 = arith.constant 6 : index
    %c0_34 = arith.constant 0 : index
    %c0_35 = arith.constant 0 : index
    %37 = vector.load %arg3[%c6, %c0_34, %c0_35] : memref<9x8x128xbf16, #tpu.memory_space<vmem>>, vector<1x8x128xbf16>
    %38 = vector.shape_cast %37 : vector<1x8x128xbf16> to vector<8x128xbf16>
    %cst_36 = arith.constant dense<0.000000e+00> : vector<288x128xf32>
    %39 = tpu.matmul %36, %38, %cst_36 {dimension_numbers = #tpu.dot_dimension_numbers<[1], [0], [0], [1], [0, 0, 1, 1], [], []>} : vector<288x8xbf16>, vector<8x128xbf16>, vector<288x128xf32> -> vector<288x128xf32>
    %40 = arith.addf %34, %39 : vector<288x128xf32>
    %c0_37 = arith.constant 0 : index
    %c37 = arith.constant 37 : index
    %c0_38 = arith.constant 0 : index
    %41 = vector.load %arg2[%c0_37, %c37, %c0_38] : memref<1x326x8xbf16, #tpu.memory_space<vmem>>, vector<1x288x8xbf16>
    %42 = vector.shape_cast %41 : vector<1x288x8xbf16> to vector<288x8xbf16>
    %c7 = arith.constant 7 : index
    %c0_39 = arith.constant 0 : index
    %c0_40 = arith.constant 0 : index
    %43 = vector.load %arg3[%c7, %c0_39, %c0_40] : memref<9x8x128xbf16, #tpu.memory_space<vmem>>, vector<1x8x128xbf16>
    %44 = vector.shape_cast %43 : vector<1x8x128xbf16> to vector<8x128xbf16>
    %cst_41 = arith.constant dense<0.000000e+00> : vector<288x128xf32>
    %45 = tpu.matmul %42, %44, %cst_41 {dimension_numbers = #tpu.dot_dimension_numbers<[1], [0], [0], [1], [0, 0, 1, 1], [], []>} : vector<288x8xbf16>, vector<8x128xbf16>, vector<288x128xf32> -> vector<288x128xf32>
    %46 = arith.addf %40, %45 : vector<288x128xf32>
    %c0_42 = arith.constant 0 : index
    %c38 = arith.constant 38 : index
    %c0_43 = arith.constant 0 : index
    %47 = vector.load %arg2[%c0_42, %c38, %c0_43] : memref<1x326x8xbf16, #tpu.memory_space<vmem>>, vector<1x288x8xbf16>
    %48 = vector.shape_cast %47 : vector<1x288x8xbf16> to vector<288x8xbf16>
    %c8 = arith.constant 8 : index
    %c0_44 = arith.constant 0 : index
    %c0_45 = arith.constant 0 : index
    %49 = vector.load %arg3[%c8, %c0_44, %c0_45] : memref<9x8x128xbf16, #tpu.memory_space<vmem>>, vector<1x8x128xbf16>
    %50 = vector.shape_cast %49 : vector<1x8x128xbf16> to vector<8x128xbf16>
    %cst_46 = arith.constant dense<0.000000e+00> : vector<288x128xf32>
    %51 = tpu.matmul %48, %50, %cst_46 {dimension_numbers = #tpu.dot_dimension_numbers<[1], [0], [0], [1], [0, 0, 1, 1], [], []>} : vector<288x8xbf16>, vector<8x128xbf16>, vector<288x128xf32> -> vector<288x128xf32>
    %52 = arith.addf %46, %51 : vector<288x128xf32>
    %c0_47 = arith.constant 0 : index
    %c0_48 = arith.constant 0 : index
    %53 = vector.load %arg4[%c0_47, %c0_48] : memref<1x128xf32, #tpu.memory_space<vmem>>, vector<1x128xf32>
    %54 = vector.broadcast %53 : vector<1x128xf32> to vector<288x128xf32>
    %55 = arith.mulf %52, %54 : vector<288x128xf32>
    %c0_49 = arith.constant 0 : index
    %c0_50 = arith.constant 0 : index
    %56 = vector.load %arg5[%c0_49, %c0_50] : memref<1x128xf32, #tpu.memory_space<vmem>>, vector<1x128xf32>
    %57 = vector.broadcast %56 : vector<1x128xf32> to vector<288x128xf32>
    %58 = arith.addf %55, %57 : vector<288x128xf32>
    %c0_51 = arith.constant 0 : index
    %c0_52 = arith.constant 0 : index
    %c0_53 = arith.constant 0 : index
    %59 = vector.load %arg6[%c0_51, %c0_52, %c0_53] : memref<1x288x128xf32, #tpu.memory_space<vmem>>, vector<1x288x128xf32>
    %60 = vector.shape_cast %59 : vector<1x288x128xf32> to vector<288x128xf32>
    %61 = arith.addf %58, %60 : vector<288x128xf32>
    %cst_54 = arith.constant 0.000000e+00 : f32
    %62 = vector.broadcast %cst_54 : f32 to vector<288x128xf32>
    %63 = arith.maximumf %61, %62 : vector<288x128xf32>
    %c0_55 = arith.constant 0 : index
    %c0_56 = arith.constant 0 : index
    %c0_57 = arith.constant 0 : index
    %64 = vector.load %arg7[%c0_55, %c0_56, %c0_57] : memref<1x288x128xf32, #tpu.memory_space<vmem>>, vector<1x288x128xf32>
    %65 = vector.shape_cast %64 : vector<1x288x128xf32> to vector<288x128xf32>
    %66 = vector.shape_cast %63 : vector<288x128xf32> to vector<1x288x128xf32>
    tpu.vector_store %arg7[%c0_55, %c0_56, %c0_57], %66 {strides = array<i32>} : memref<1x288x128xf32, #tpu.memory_space<vmem>>, vector<1x288x128xf32>,
    return
  }
  func.func @transform_0(%arg0: i32, %arg1: i32) -> (i32, i32, i32) {
    %c0_i32 = arith.constant 0 : i32
    %c0_i32_0 = arith.constant 0 : i32
    %c0_i32_1 = arith.constant 0 : i32
    return %arg0, %c0_i32, %c0_i32_0 : i32, i32, i32
  }
  func.func @transform_1(%arg0: i32, %arg1: i32) -> (i32, i32, i32) {
    %c0_i32 = arith.constant 0 : i32
    %c0_i32_0 = arith.constant 0 : i32
    %c0_i32_1 = arith.constant 0 : i32
    return %c0_i32, %c0_i32_0, %arg1 : i32, i32, i32
  }
  func.func @transform_2(%arg0: i32, %arg1: i32) -> (i32, i32) {
    %c0_i32 = arith.constant 0 : i32
    %c0_i32_0 = arith.constant 0 : i32
    return %c0_i32, %arg1 : i32, i32
  }
  func.func @transform_3(%arg0: i32, %arg1: i32) -> (i32, i32) {
    %c0_i32 = arith.constant 0 : i32
    %c0_i32_0 = arith.constant 0 : i32
    return %c0_i32, %arg1 : i32, i32
  }
  func.func @transform_4(%arg0: i32, %arg1: i32) -> (i32, i32, i32) {
    %c0_i32 = arith.constant 0 : i32
    %c0_i32_0 = arith.constant 0 : i32
    return %arg0, %c0_i32, %arg1 : i32, i32, i32
  }
  func.func @transform_5(%arg0: i32, %arg1: i32) -> (i32, i32, i32) {
    %c0_i32 = arith.constant 0 : i32
    %c0_i32_0 = arith.constant 0 : i32
    return %arg0, %c0_i32, %arg1 : i32, i32, i32
  }
}

</mosaic_0001>

<bundles_post_ra>
// kernel: res_block_forward.2
= control target key start
LH: loop header
LB: loop body
LE: loop exit
PB: predicated region body
PF: predicated region fallthrough
CT: control target
= control target key end

     0   :  { %s5218_s15 = smov 0   ;;  %s5220_s16 = smov 0   ;;  %s6645_s0 = inlined_call_operand.vmem [shape: bf16[2,326,8], index: 0, kind: input, shape index: {}]   ;;  %s6646_s1 = inlined_call_operand.vmem [shape: bf16[9,8,128], index: 1, kind: input, shape index: {}]   ;;  %s6647_s2 = inlined_call_operand.vmem [shape: f32[1,128], index: 2, kind: input, shape index: {}]   ;;  %s6648_s3 = inlined_call_operand.vmem [shape: f32[1,128], index: 3, kind: input, shape index: {}]   ;;  %s6649_s4 = inlined_call_operand.vmem [shape: bf16[2,288,128], index: 4, kind: output, shape index: {}]  }
   0x1   :  { %s5222_s17 = smov 0  }
   0x2 LB: > { %s26_s18 = sadd.s32 1, %s5187_s16  ;;  %p4138_p0 = scmp.ge.s32.totalorder %s5191_s17, 1  ;;  %s5191_s17 = sphi %s5222_s17, %s14_s17   ;;  %s5187_s16 = sphi %s5220_s16, %s6689_s16   ;;  %s5183_s15 = sphi %s5218_s15, %s6688_s15  }
   0x3   : > { %p28_p1 = scmp.ge.s32.totalorder %s26_s18, 2  ;;  %p201_p2 = scmp.lt.s32.totalorder %s5191_s17, 3 }
   0x5   : > { %s6691_s18 = smov (%p28_p1, %s26_s18), 0  ;;  %p202_p3 = pnand %p4138_p0, %p201_p2 }
   0x7   : > { %205 = sbr.rel (%p202_p3) target bundleno = 559 (0x22f), region = 36 }
   0xc   : > { %v4141_v0 = vld [vmem:[%s6646_s1 + $0x4] sm:$0xf]  ;;  %vm601_vm0 = vcmask 1043456   ;;  %p240_p4 = scmp.lt.s32.totalorder %s5183_s15, 1  ;;  %v4197_v2 = vld [vmem:[%s6646_s1 + $0x8] sm:$0xf] }
   0xd   : > { %5071 = vmatprep.subr.msk.bf16.mxu0 %vm601_vm0, %v4141_v0  ;;  %5072 = vmatprep.subr.msk.bf16.mxu1 %vm601_vm0, %v4141_v0  ;;  %v603_v1 = vsel %vm601_vm0, %v4141_v0, 0  ;;  %v300_v3 = vld [vmem:[%s6646_s1] sm:$0xf]  ;;  %vm397_vm1 = vsmask.f32 7424  ;;  %vm546_vm2 = vcmask 64512  }
   0xe   : > { %4728 = vmatpush3.bf16.msra.mxu0 %v603_v1  ;;  %5070 = vmatpush3.bf16.msra.mxu1 %v603_v1  ;;  %s6693_s15 = smov (!%p240_p4, %s5183_s15), 1  ;;  %v1097_v8 = vsel %vm601_vm0, %v4197_v2, 0  ;;  %v819_v16 = vsel %vm601_vm0, %v300_v3, 0  ;;  %v5301_v33 = vld [vmem:[%s6646_s1 + $0x10] sm:$0xf]  ;;  %vm1004_vm3 = vcmask 1046528  }
   0xf   : > { %5074 = vmatprep.subr.msk.bf16.mxu0 %vm601_vm0, %v4197_v2  ;;  %5073 = vmatprep.subr.msk.bf16.mxu1 %vm601_vm0, %v300_v3  ;;  %s5081_s25 = smul.u32 164, %s6693_s15  ;;  %v5321_v45 = vld [vmem:[%s6646_s1 + $0xc] sm:$0xf]  ;;  %vm2204_vm4 = vcmask 1045504   ;;  %vm1757_vm5 = vsmask.f32 6400 }
  0x10   : > { %vm3404_vm6 = vcmask 1044480   ;;  %vm2957_vm7 = vsmask.f32 5376  ;;  %s5082_s23 = smul.u32 144, %s6693_s15 }
  0x11   : > { %s5256_s28 = scalar_lea.vmem %s6645_s0, %s5081_s25 }
  0x12   : > { %v264_v4 = vld [vmem:[%s5256_s28] sm:$0xf]  ;;  %v5260_v5 = vld [vmem:[%s5256_s28 + $0x4] sm:$0xf]  ;;  %v5266_v7 = vld [vmem:[%s5256_s28 + $0x8] sm:$0xff]   ;;  %s6522_s25 = scalar_lea.vmem %s6649_s4, %s5082_s23 }
  0x13   : > { %v5263_v6 = vcombine.low %v264_v4, %v5260_v5  ;;  %v406_v11 = vshll.u32 %v5266_v7, 16  ;;  %v410_v12 = vshrl.u32 %v5266_v7, 16  ;;  %v5274_v13 = vld [vmem:[%s5256_s28 + $0x50] sm:$0xff]   ;;  %v5277_v14 = vld [vmem:[%s5256_s28 + $0x58] sm:$0xff]   ;;  %v5289_v24 = vld [vmem:[%s5256_s28 + $0x60] sm:$0xff]  }
  0x14   : > { %v5280_v15 = vld [vmem:[%s5256_s28 + $0x10] sm:$0xff]   ;;  %v478_v19 = vshll.u32 %v5274_v13, 16  ;;  %v482_v20 = vshrl.u32 %v5274_v13, 16  ;;  %v486_v21 = vshll.u32 %v5277_v14, 16  ;;  %v490_v22 = vshrl.u32 %v5277_v14, 16  ;;  %v5294_v28 = vld [vmem:[%s5256_s28 + $0x18] sm:$0xff]  }
  0x15   : > { %v399_v9 = vshrl.u32 %v5263_v6, 16  ;;  %v401_v10 = vshll.u32 %v5263_v6, 16  ;;  %v408_v18 = vrot.slane %v406_v11, 1  ;;  %v414_v23 = vshll.u32 %v5280_v15, 16  ;;  %v5307_v37 = vld [vmem:[%s5256_s28 + $0x68] sm:$0xff]   ;;  %v5311_v39 = vld [vmem:[%s5256_s28 + $0x20] sm:$0xff]  }
  0x16   : > { %v5291_v27 = vrot.slane %v478_v19, 1  ;;  %v488_v29 = vrot.slane %v486_v21, 1  ;;  %v494_v31 = vshll.u32 %v5289_v24, 16  ;;  %v418_v32 = vshrl.u32 %v5280_v15, 16  ;;  %v5316_v44 = vld [vmem:[%s5256_s28 + $0x70] sm:$0xff]   ;;  %v5328_v50 = vld [vmem:[%s5256_s28 + $0x28] sm:$0xff]  }
  0x17   : > { %v403_v17 = vrot.slane %v401_v10, 1  ;;  %v412_v26 = vor.u32 %v410_v12, %v408_v18  ;;  %v416_v30 = vrot.slane %v414_v23, 1  ;;  %v422_v36 = vshll.u32 %v5294_v28, 16  ;;  %v5343_v62 = vld [vmem:[%s5256_s28 + $0x78] sm:$0xff]   ;;  %v5353_v10 = vld [vmem:[%s5256_s28 + $0x30] sm:$0xff]   ;;  %v5356_v11 = vld [vmem:[%s5256_s28 + $0x80] sm:$0xff]  }
  0x18   : > { %v484_v35 = vor.u32 %v482_v20, %v5291_v27  ;;  %v498_v38 = vshrl.u32 %v5289_v24, 16  ;;  %v492_v40 = vor.u32 %v490_v22, %v488_v29  ;;  %v496_v42 = vrot.slane %v494_v31, 1  ;;  %v5365_v23 = vld [vmem:[%s5256_s28 + $0x38] sm:$0xff]  }
  0x19   : > { %v404_v25 = vor.u32 %v403_v17, %v399_v9  ;;  %v417_v41 = vsel %vm397_vm1, %v412_v26, %v416_v30  ;;  %v420_v43 = vor.u32 %v418_v32, %v416_v30  ;;  %v424_v47 = vrot.slane %v422_v36, 1  ;;  %v5370_v26 = vld [vmem:[%s5256_s28 + $0x88] sm:$0xff]  }
  0x1a   : > { %v489_v46 = vsel %vm397_vm1, %v484_v35, %v488_v29  ;;  %v502_v48 = vshll.u32 %v5307_v37, 16  ;;  %v426_v49 = vshrl.u32 %v5294_v28, 16  ;;  %v497_v51 = vsel %vm397_vm1, %v492_v40, %v496_v42  ;;  %v5382_v40 = vld [vmem:[%s5256_s28 + $0x48] sm:$0xff]  }
  0x1b   : > { %v409_v34 = vsel %vm397_vm1, %v404_v25, %v408_v18  ;;  %4749 = vmatprep.mubr.msk.bf16.mxu1 %vm546_vm2, %v489_v46  ;;  %v500_v52 = vor.u32 %v498_v38, %v496_v42  ;;  %v430_v53 = vshll.u32 %v5311_v39, 16  ;;  %v506_v54 = vshrl.u32 %v5307_v37, 16  ;;  %v5379_v38 = vld [vmem:[%s5256_s28 + $0x40] sm:$0xff]  }
  0x1c   : > { %4729 = vmatprep.mubr.msk.bf16.mxu0 %vm546_vm2, %v409_v34  ;;  %4750 = vmatmul.mubr.msk.bf16.vlgmr.msra.gmra.mxu1 %vm546_vm2, %v497_v51  ;;  %v425_v55 = vsel %vm397_vm1, %v420_v43, %v424_v47  ;;  %v504_v56 = vrot.slane %v502_v48, 1  ;;  %v428_v57 = vor.u32 %v426_v49, %v424_v47  ;;  %v510_v58 = vshll.u32 %v5316_v44, 16  ;;  %v5124_v43 = vld [vmem:[%s5256_s28 + $0x90] ss:$0 sps:$4 sm:$0x11]  }
  0x1d   : > { %4730 = vmatmul.mubr.msk.bf16.vlgmr.msra.gmra.mxu0 %vm546_vm2, %v417_v41  ;;  %4766 = vmatpush3.bf16.msra.mxu1 %v819_v16  ;;  %v432_v59 = vrot.slane %v430_v53, 1  ;;  %v434_v60 = vshrl.u32 %v5311_v39, 16  ;;  %v438_v61 = vshll.u32 %v5328_v50, 16  ;;  %v514_v2 = vshrl.u32 %v5316_v44, 16 }
  0x1e   : > { %4804 = vmatpush3.bf16.msra.mxu0 %v1097_v8  ;;  %4733 = vmatprep.mubr.msk.bf16.mxu0 %vm546_vm2, %v425_v55  ;;  %v505_v63 = vsel %vm397_vm1, %v500_v52, %v504_v56  ;;  %v508_v0 = vor.u32 %v506_v54, %v504_v56  ;;  %v512_v1 = vrot.slane %v510_v58, 1  ;;  %v518_v9 = vshll.u32 %v5343_v62, 16 }
  0x1f   : > { %5076 = vmatprep.subr.msk.bf16.mxu0 %vm601_vm0, %v5301_v33  ;;  %5075 = vmatprep.subr.msk.bf16.mxu1 %vm601_vm0, %v5321_v45  ;;  %v433_v3 = vsel %vm397_vm1, %v428_v57, %v432_v59  ;;  %v436_v4 = vor.u32 %v434_v60, %v432_v59  ;;  %v440_v8 = vrot.slane %v438_v61, 1  ;;  %v442_v17 = vshrl.u32 %v5328_v50, 16 }
  0x20   : > { %4753 = vmatprep.mubr.msk.bf16.mxu1 %vm546_vm2, %v505_v63  ;;  %v513_v12 = vsel %vm397_vm1, %v508_v0, %v512_v1  ;;  %v516_v16 = vor.u32 %v514_v2, %v512_v1  ;;  %v522_v18 = vshrl.u32 %v5343_v62, 16  ;;  %v520_v20 = vrot.slane %v518_v9, 1  ;;  %v998_v63 = vld [vmem:[%s5256_s28] sm:$0xe] }
  0x21   : > { %v441_v19 = vsel %vm397_vm1, %v436_v4, %v440_v8  ;;  %v446_v21 = vshll.u32 %v5353_v10, 16  ;;  %v526_v22 = vshll.u32 %v5356_v11, 16  ;;  %v450_v25 = vshrl.u32 %v5353_v10, 16 }
  0x22   : > { %v521_v29 = vsel %vm397_vm1, %v516_v16, %v520_v20  ;;  %v444_v30 = vor.u32 %v442_v17, %v440_v8  ;;  %v454_v34 = vshll.u32 %v5365_v23, 16  ;;  %v530_v35 = vshrl.u32 %v5356_v11, 16 }
  0x23   : > { %v448_v31 = vrot.slane %v446_v21, 1  ;;  %v528_v32 = vrot.slane %v526_v22, 1  ;;  %v534_v36 = vshll.u32 %v5370_v26, 16  ;;  %v524_v41 = vor.u32 %v522_v18, %v520_v20 }
  0x24   : > { %4754 = vmatmul.mubr.msk.bf16.gmra.mxu1 %vm546_vm2, %v513_v12  ;;  %v456_v46 = vrot.slane %v454_v34, 1  ;;  %v462_v49 = vshll.u32 %v5379_v38, 16  ;;  %v458_v52 = vshrl.u32 %v5365_v23, 16  ;;  %v466_v54 = vshrl.u32 %v5379_v38, 16 }
  0x25   : > { %4734 = vmatmul.mubr.msk.bf16.gmra.mxu0 %vm546_vm2, %v433_v3  ;;  %4757 = vmatprep.mubr.msk.bf16.mxu1 %vm546_vm2, %v521_v29  ;;  %v452_v42 = vor.u32 %v450_v25, %v448_v31  ;;  %v532_v47 = vor.u32 %v530_v35, %v528_v32  ;;  %v536_v48 = vrot.slane %v534_v36, 1  ;;  %v449_v51 = vsel %vm397_vm1, %v444_v30, %v448_v31 }
  0x26   : > { %4737 = vmatprep.mubr.msk.bf16.mxu0 %vm546_vm2, %v441_v19  ;;  %v470_v55 = vshll.u32 %v5382_v40, 16  ;;  %v529_v56 = vsel %vm397_vm1, %v524_v41, %v528_v32  ;;  %v538_v57 = vshrl.u32 %v5370_v26, 16  ;;  %v542_v58 = vshll.u32 %v5124_v43, 16 }
  0x27   : > { %v457_v53 = vsel %vm397_vm1, %v452_v42, %v456_v46  ;;  %v537_v59 = vsel %vm397_vm1, %v532_v47, %v536_v48  ;;  %v464_v60 = vrot.slane %v462_v49, 1  ;;  %v460_v61 = vor.u32 %v458_v52, %v456_v46  ;;  %v5481_v46 = vld [vmem:[%s5256_s28 + $0x10] sm:$0xff]   ;;  %v5486_v49 = vld [vmem:[%s5256_s28 + $0x18] sm:$0xff]  }
  0x28   : > { %v472_v1 = vrot.slane %v470_v55, 1  ;;  %v540_v2 = vor.u32 %v538_v57, %v536_v48  ;;  %v544_v3 = vrot.slane %v542_v58, 1  ;;  %v474_v8 = vshrl.u32 %v5382_v40, 16  ;;  %v5499_v55 = vld [vmem:[%s5256_s28 + $0x30] sm:$0xff]  }
  0x29   : > { %v468_v0 = vor.u32 %v466_v54, %v464_v60  ;;  %v465_v4 = vsel %vm397_vm1, %v460_v61, %v464_v60  ;;  %v4198_v12 = vcombine.low %v998_v63, %v5260_v5  ;;  %v1038_v17 = vrot.slane %v5370_v26, 1  ;;  %v5514_v61 = vld [vmem:[%s5256_s28 + $0x38] sm:$0xff]  }
  0x2a   : > { %v545_v16 = vsel %vm397_vm1, %v540_v2, %v544_v3  ;;  %v476_v18 = vor.u32 %v474_v8, %v472_v1  ;;  %v1040_v19 = vrot.slane %v5124_v43, 1  ;;  %v1006_v21 = vrot.slane %v5266_v7, 1  ;;  %v2198_v43 = vld [vmem:[%s5256_s28 + $0x8] sm:$0xc]  ;;  %v5524_v2 = vld [vmem:[%s5256_s28 + $0x40] sm:$0xff]  }
  0x2b   : > { %v473_v9 = vsel %vm397_vm1, %v468_v0, %v472_v1  ;;  %v1005_v20 = vrot.slane %v4198_v12, 1  ;;  %v1536_v29 = vsel %vm601_vm0, %v5321_v45, 0  ;;  %v1008_v30 = vrot.slane %v5280_v15, 1  ;;  %v5532_v8 = vld [vmem:[%s5256_s28 + $0x48] sm:$0xff]  }
  0x2c   : > { %4758 = vmatmul.mubr.msk.bf16.gmra.mxu1 %vm546_vm2, %v529_v56  ;;  %v5415_v5 = vsel %vm1004_vm3, %v1038_v17, %v1040_v19  ;;  %v481_v22 = vsel %vm397_vm1, %v476_v18, %v5291_v27  ;;  %v1010_v27 = vrot.slane %v5294_v28, 1  ;;  %v1983_v31 = vsel %vm601_vm0, %v5301_v33, 0 }
  0x2d   : > { %4738 = vmatmul.mubr.msk.bf16.gmra.mxu0 %vm546_vm2, %v449_v51  ;;  %4761 = vmatprep.mubr.msk.bf16.mxu1 %vm546_vm2, %v537_v59  ;;  %v1007_v25 = vsel %vm1004_vm3, %v1005_v20, %v1006_v21  ;;  %v1009_v45 = vsel %vm1004_vm3, %v1006_v21, %v1008_v30  ;;  %v1014_v34 = vrot.slane %v5328_v50, 1  ;;  %v1018_v36 = vrot.slane %v5365_v23, 1  ;;  %v5490_v51 = vld [vmem:[%s5256_s28 + $0x20] sm:$0xff]  }
  0x2e   : > { %4741 = vmatprep.mubr.msk.bf16.mxu0 %vm546_vm2, %v457_v53  ;;  %v1011_v32 = vsel %vm1004_vm3, %v1008_v30, %v1010_v27  ;;  %v1020_v42 = vrot.slane %v5379_v38, 1  ;;  %v2206_v53 = vrot.slane %v5481_v46, 2  ;;  %v2208_v54 = vrot.slane %v5486_v49, 2  ;;  %v5562_v30 = vld [vmem:[%s5256_s28 + $0x58] sm:$0xff]  }
  0x2f   : > { %v2210_v57 = vrot.slane %v5490_v51, 2  ;;  %v1024_v58 = vrot.slane %v5274_v13, 1  ;;  %v1026_v59 = vrot.slane %v5277_v14, 1  ;;  %v2214_v1 = vrot.slane %v5499_v55, 2 }
  0x30   : > { %v1021_v48 = vsel %vm1004_vm3, %v1018_v36, %v1020_v42  ;;  %v5509_v60 = vsel %vm2204_vm4, %v2206_v53, %v2208_v54  ;;  %v2220_v18 = vrot.slane %v5532_v8, 2  ;;  %v1028_v20 = vrot.slane %v5289_v24, 1 }
  0x31   : > { %v5517_v63 = vsel %vm2204_vm4, %v2208_v54, %v2210_v57 }
  0x34   : > { %4762 = vmatmul.mubr.msk.bf16.gmra.mxu1 %vm546_vm2, %v545_v16  ;;  %v2218_v16 = vrot.slane %v5524_v2, 2 }
  0x35   : > { %4742 = vmatmul.mubr.msk.bf16.gmra.mxu0 %vm546_vm2, %v465_v4  ;;  %4767 = vmatprep.mubr.msk.bf16.mxu1 %vm546_vm2, %v5263_v6  ;;  %v5428_v6 = vld [vmem:[%s6646_s1 + $0x14] sm:$0xf]  ;;  %v2216_v4 = vrot.slane %v5514_v61, 2 }
  0x36   : > { %4745 = vmatprep.mubr.msk.bf16.mxu0 %vm546_vm2, %v473_v9  ;;  %v5550_v21 = vsel %vm2204_vm4, %v2218_v16, %v2220_v18 }
  0x37   : > { %v5539_v12 = vsel %vm2204_vm4, %v2214_v1, %v2216_v4  ;;  %v5545_v19 = vsel %vm2204_vm4, %v2216_v4, %v2218_v16 }
  0x3c   : > { %4768 = vmatmul.mubr.msk.bf16.vlgmr.msra.gmra.mxu1 %vm546_vm2, %v5266_v7  ;;  %v5444_v7 = vld [vmem:[%s6646_s1 + $0x18] sm:$0xf] }
  0x3d   : > { %4746 = vmatmul.mubr.msk.bf16.gmra.mxu0 %vm546_vm2, %v481_v22  ;;  %4842 = vmatpush3.bf16.msra.mxu1 %v1536_v29  ;;  %v1030_v22 = vrot.slane %v5307_v37, 1  ;;  %v1029_v29 = vsel %vm1004_vm3, %v1026_v59, %v1028_v20 }
  0x3e   : > { %4805 = vmatprep.mubr.msk.bf16.mxu0 %vm546_vm2, %v1007_v25  ;;  %4771 = vmatprep.mubr.msk.bf16.mxu1 %vm546_vm2, %v5280_v15  ;;  %v1012_v15 = vrot.slane %v5311_v39, 1  ;;  %v5558_v25 = vld [vmem:[%s5256_s28 + $0x50] sm:$0xff]  }
  0x3f   : > { %5077 = vmatprep.subr.msk.bf16.mxu1 %vm601_vm0, %v5428_v6 }
  0x40   : > { %v1013_v33 = vsel %vm1004_vm3, %v1010_v27, %v1012_v15  ;;  %v1015_v35 = vsel %vm1004_vm3, %v1012_v15, %v1014_v34  ;;  %v1031_v27 = vsel %vm1004_vm3, %v1028_v20, %v1030_v22  ;;  %v1034_v15 = vrot.slane %v5343_v62, 1 }
  0x44   : > { %4772 = vmatmul.mubr.msk.bf16.gmra.mxu1 %vm546_vm2, %v5294_v28  ;;  %v1016_v28 = vrot.slane %v5353_v10, 1 }
  0x45   : > { %4806 = vmatmul.mubr.msk.bf16.vlgmr.msra.gmra.mxu0 %vm546_vm2, %v1009_v45  ;;  %4775 = vmatprep.mubr.msk.bf16.mxu1 %vm546_vm2, %v5311_v39  ;;  %v2222_v45 = vrot.slane %v5558_v25, 2 }
  0x46   : > { %4880 = vmatpush3.bf16.msra.mxu0 %v1983_v31  ;;  %4809 = vmatprep.mubr.msk.bf16.mxu0 %vm546_vm2, %v1011_v32  ;;  %v1017_v39 = vsel %vm1004_vm3, %v1014_v34, %v1016_v28  ;;  %v1019_v41 = vsel %vm1004_vm3, %v1016_v28, %v1018_v36  ;;  %v1312_v34 = vld [vmem:[%s5256_s28 + $0x8] sm:$0xe] }
  0x47   : > { %5078 = vmatprep.subr.msk.bf16.mxu0 %vm601_vm0, %v5444_v7  ;;  %v5569_v31 = vsel %vm2204_vm4, %v2220_v18, %v2222_v45  ;;  %v5587_v28 = vld [vmem:[%s5256_s28 + $0x68] sm:$0xff]  }
  0x4c   : > { %4776 = vmatmul.mubr.msk.bf16.gmra.mxu1 %vm546_vm2, %v5328_v50  ;;  %v1022_v50 = vrot.slane %v5382_v40, 1 }
  0x4d   : > { %4810 = vmatmul.mubr.msk.bf16.gmra.mxu0 %vm546_vm2, %v1013_v33  ;;  %4779 = vmatprep.mubr.msk.bf16.mxu1 %vm546_vm2, %v5353_v10  ;;  %v5478_v10 = vld [vmem:[%s5256_s28 + $0xc] sm:$0xf]  ;;  %v5583_v33 = vld [vmem:[%s5256_s28 + $0x60] sm:$0xff]  }
  0x4e   : > { %4813 = vmatprep.mubr.msk.bf16.mxu0 %vm546_vm2, %v1015_v35  ;;  %v4276_v47 = vcombine.low %v2198_v43, %v5478_v10 }
  0x50   : > { %v2205_v52 = vrot.slane %v4276_v47, 2  ;;  %v1767_v47 = vshrl.u32 %v5481_v46, 16 }
  0x52   : > { %v5502_v56 = vsel %vm2204_vm4, %v2205_v52, %v2206_v53  ;;  %v1445_v52 = vrot.slane %v5481_v46, 1  ;;  %v5610_v53 = vld [vmem:[%s5256_s28 + $0x70] sm:$0xff]  }
  0x53   : > { %v2230_v4 = vrot.slane %v5610_v53, 2 }
  0x54   : > { %4780 = vmatmul.mubr.msk.bf16.gmra.mxu1 %vm546_vm2, %v5365_v23  ;;  %v1023_v23 = vsel %vm1004_vm3, %v1020_v42, %v1022_v50  ;;  %v1036_v42 = vrot.slane %v5356_v11, 1 }
  0x55   : > { %4814 = vmatmul.mubr.msk.bf16.gmra.mxu0 %vm546_vm2, %v1017_v39  ;;  %4783 = vmatprep.mubr.msk.bf16.mxu1 %vm546_vm2, %v5379_v38  ;;  %v5494_v38 = vld [vmem:[%s5256_s28 + $0x28] sm:$0xff]   ;;  %v2226_v39 = vrot.slane %v5583_v33, 2 }
  0x56   : > { %4817 = vmatprep.mubr.msk.bf16.mxu0 %vm546_vm2, %v1019_v41  ;;  %v2212_v0 = vrot.slane %v5494_v38, 2  ;;  %v4218_v41 = vcombine.low %v1312_v34, %v5478_v10  ;;  %v1037_v54 = vsel %vm1004_vm3, %v1034_v15, %v1036_v42  ;;  %v5643_v34 = vld [vmem:[%s5256_s28 + $0x88] sm:$0xff]  }
  0x58   : > { %v5527_v3 = vsel %vm2204_vm4, %v2210_v57, %v2212_v0  ;;  %v5535_v9 = vsel %vm2204_vm4, %v2212_v0, %v2214_v1  ;;  %v1759_v43 = vshrl.u32 %v4218_v41, 16  ;;  %v1762_v10 = vshll.u32 %v4218_v41, 16 }
  0x59   : > { %v1039_v57 = vsel %vm1004_vm3, %v1036_v42, %v1038_v17  ;;  %v1769_v0 = vrot.slane %v1767_v47, 1  ;;  %v1776_v17 = vshrl.u32 %v5486_v49, 16  ;;  %v1797_v47 = vshll.u32 %v5494_v38, 16 }
  0x5c   : > { %4784 = vmatmul.mubr.msk.bf16.gmra.mxu1 %vm546_vm2, %v5382_v40  ;;  %v1025_v40 = vsel %vm1004_vm3, %v1022_v50, %v1024_v58 }
  0x5d   : > { %4818 = vmatmul.mubr.msk.bf16.gmra.mxu0 %vm546_vm2, %v1021_v48  ;;  %4787 = vmatprep.mubr.msk.bf16.mxu1 %vm546_vm2, %v5274_v13  ;;  %v1027_v13 = vsel %vm1004_vm3, %v1024_v58, %v1026_v59  ;;  %v1770_v48 = vshll.u32 %v5481_v46, 16  ;;  %v5617_v58 = vld [vmem:[%s5256_s28 + $0x78] sm:$0xff]   ;;  %v1764_v59 = vrot.slane %v1762_v10, 2  ;;  %v1794_v10 = vshrl.u32 %v5494_v38, 16 }
  0x5e   : > { %4821 = vmatprep.mubr.msk.bf16.mxu0 %vm546_vm2, %v1023_v23  ;;  %v1444_v23 = vrot.slane %v4218_v41, 1 }
  0x5f   : > { %v1772_v1 = vrot.slane %v1770_v48, 2 }
  0x60   : > { %v1446_v46 = vsel %vm1004_vm3, %v1444_v23, %v1445_v52  ;;  %v1803_v23 = vshrl.u32 %v5499_v55, 16 }
  0x61   : > { %v1773_v20 = vor.u32 %v1772_v1, %v1769_v0  ;;  %v2736_v0 = vsel %vm601_vm0, %v5444_v7, 0  ;;  %v1796_v1 = vrot.slane %v1794_v10, 1 }
  0x64   : > { %4788 = vmatmul.mubr.msk.bf16.gmra.mxu1 %vm546_vm2, %v5277_v14  ;;  %v2224_v14 = vrot.slane %v5562_v30, 2 }
  0x65   : > { %4822 = vmatmul.mubr.msk.bf16.gmra.mxu0 %vm546_vm2, %v1025_v40  ;;  %4791 = vmatprep.mubr.msk.bf16.mxu1 %vm546_vm2, %v5289_v24  ;;  %v1032_v24 = vrot.slane %v5316_v44, 1 }
  0x66   : > { %4825 = vmatprep.mubr.msk.bf16.mxu0 %vm546_vm2, %v1027_v13  ;;  %v5574_v32 = vsel %vm2204_vm4, %v2222_v45, %v2224_v14  ;;  %v1779_v13 = vshll.u32 %v5486_v49, 16  ;;  %v1449_v45 = vrot.slane %v5490_v51, 1 }
  0x67   : > { %v1033_v35 = vsel %vm1004_vm3, %v1030_v22, %v1032_v24  ;;  %v1035_v36 = vsel %vm1004_vm3, %v1032_v24, %v1034_v15  ;;  %v1785_v22 = vshrl.u32 %v5490_v51, 16  ;;  %v1778_v24 = vrot.slane %v1776_v17, 1 }
  0x68   : > { %v1781_v15 = vrot.slane %v1779_v13, 2  ;;  %v1805_v17 = vrot.slane %v1803_v23, 1 }
  0x6c   : > { %4792 = vmatmul.mubr.msk.bf16.gmra.mxu1 %vm546_vm2, %v5307_v37  ;;  %v2228_v37 = vrot.slane %v5587_v28, 2 }
  0x6d   : > { %4826 = vmatmul.mubr.msk.bf16.gmra.mxu0 %vm546_vm2, %v1029_v29  ;;  %4795 = vmatprep.mubr.msk.bf16.mxu1 %vm546_vm2, %v5316_v44  ;;  %v5595_v44 = vsel %vm2204_vm4, %v2224_v14, %v2226_v39  ;;  %v1788_v29 = vshll.u32 %v5490_v51, 16  ;;  %v5640_v14 = vld [vmem:[%s5256_s28 + $0x80] sm:$0xff]  }
  0x6e   : > { %4829 = vmatprep.mubr.msk.bf16.mxu0 %vm546_vm2, %v1031_v27  ;;  %v5600_v50 = vsel %vm2204_vm4, %v2226_v39, %v2228_v37  ;;  %v5624_v40 = vsel %vm2204_vm4, %v2228_v37, %v2230_v4  ;;  %v1447_v27 = vrot.slane %v5486_v49, 1  ;;  %v2234_v39 = vrot.slane %v5640_v14, 2 }
  0x6f   : > { %v2236_v37 = vrot.slane %v5643_v34, 2  ;;  %v2297_v49 = vsel %vm601_vm0, %v5428_v6, 0 }
  0x70   : > { %v1448_v41 = vsel %vm1004_vm3, %v1445_v52, %v1447_v27  ;;  %v1450_v51 = vsel %vm1004_vm3, %v1447_v27, %v1449_v45  ;;  %v1806_v52 = vshll.u32 %v5499_v55, 16  ;;  %v1812_v27 = vshrl.u32 %v5514_v61, 16 }
  0x71   : > { %v5666_v6 = vsel %vm2204_vm4, %v2234_v39, %v2236_v37 }
  0x74   : > { %4796 = vmatmul.mubr.msk.bf16.gmra.mxu1 %vm546_vm2, %v5343_v62  ;;  %v1761_v62 = vrot.slane %v1759_v43, 1  ;;  %v1782_v43 = vor.u32 %v1781_v15, %v1778_v24 }
  0x75   : > { %4830 = vmatmul.mubr.msk.bf16.gmra.mxu0 %vm546_vm2, %v1033_v35  ;;  %4799 = vmatprep.mubr.msk.bf16.mxu1 %vm546_vm2, %v5356_v11  ;;  %v2232_v11 = vrot.slane %v5617_v58, 2  ;;  %v1787_v35 = vrot.slane %v1785_v22, 1 }
  0x76   : > { %4833 = vmatprep.mubr.msk.bf16.mxu0 %vm546_vm2, %v1035_v36  ;;  %v1765_v18 = vor.u32 %v1764_v59, %v1761_v62  ;;  %v1790_v36 = vrot.slane %v1788_v29, 2  ;;  %v5675_v62 = vld [vmem:[%s5256_s28 + $0x90] sm:$0xff]   ;;  %v1783_v59 = vsel %vm1757_vm5, %v1773_v20, %v1782_v43 }
  0x77   : > { %v5630_v16 = vsel %vm2204_vm4, %v2230_v4, %v2232_v11  ;;  %v5655_v42 = vsel %vm2204_vm4, %v2232_v11, %v2234_v39  ;;  %v1799_v4 = vrot.slane %v1797_v47, 2  ;;  %v5683_v11 = vld [vmem:[%s5256_s28 + $0x98] ss:$0 sps:$4 sm:$0x33]   ;;  %v1457_v39 = vrot.slane %v5524_v2, 1 }
  0x78   : > { %v1791_v48 = vor.u32 %v1790_v36, %v1787_v35  ;;  %v1824_v35 = vshll.u32 %v5524_v2, 16  ;;  %v1455_v36 = vrot.slane %v5514_v61, 1 }
  0x79   : > { %v1800_v29 = vor.u32 %v1799_v4, %v1796_v1  ;;  %v5728_v1 = vld [vmem:[%s5256_s28 + $0x14] sm:$0xf]  ;;  %v3398_v4 = vld [vmem:[%s5256_s28 + $0x10] sm:$0x8] }
  0x7a   : > { %v1826_v10 = vrot.slane %v1824_v35, 2  ;;  %v1458_v23 = vsel %vm1004_vm3, %v1455_v36, %v1457_v39 }
  0x7c   : > { %4800 = vmatmul.mubr.msk.bf16.gmra.mxu1 %vm546_vm2, %v5370_v26  ;;  %v1774_v26 = vsel %vm1757_vm5, %v1765_v18, %v1773_v20  ;;  %v5691_v18 = vld [vmem:[%s6646_s1 + $0x20] sm:$0xf]  ;;  %v2240_v20 = vrot.slane %v5683_v11, 2 }
  0x7d   : > { %4834 = vmatmul.mubr.msk.bf16.gmra.mxu0 %vm546_vm2, %v1037_v54  ;;  %4843 = vmatprep.mubr.msk.bf16.mxu1 %vm546_vm2, %v1446_v46  ;;  %v1451_v54 = vrot.slane %v5494_v38, 1  ;;  %v1792_v46 = vsel %vm1757_vm5, %v1782_v43, %v1791_v48  ;;  %v1808_v38 = vrot.slane %v1806_v52, 2 }
  0x7e   : > { %4837 = vmatprep.mubr.msk.bf16.mxu0 %vm546_vm2, %v1039_v57  ;;  %v1453_v57 = vrot.slane %v5499_v55, 1  ;;  %v2238_v55 = vrot.slane %v5675_v62, 2 }
  0x7f   : > { %v1452_v13 = vsel %vm1004_vm3, %v1449_v45, %v1451_v54  ;;  %v1815_v45 = vshll.u32 %v5514_v61, 16  ;;  %v1809_v15 = vor.u32 %v1808_v38, %v1805_v17 }
  0x80   : > { %v1454_v7 = vsel %vm1004_vm3, %v1451_v54, %v1453_v57  ;;  %v5697_v22 = vsel %vm2204_vm4, %v2236_v37, %v2238_v55  ;;  %v5703_v24 = vsel %vm2204_vm4, %v2238_v55, %v2240_v20  ;;  %v1814_v37 = vrot.slane %v1812_v27, 1  ;;  %v5733_v55 = vld [vmem:[%s5256_s28 + $0x18] sm:$0xff]   ;;  %v5738_v27 = vld [vmem:[%s5256_s28 + $0x20] sm:$0xff]  }
  0x81   : > { %v1456_v47 = vsel %vm1004_vm3, %v1453_v57, %v1455_v36  ;;  %v1839_v54 = vshrl.u32 %v5558_v25, 16  ;;  %v1842_v57 = vshll.u32 %v5558_v25, 16  ;;  %v1848_v36 = vshrl.u32 %v5562_v30, 16 }
  0x84   : > { %4844 = vmatmul.mubr.msk.bf16.vlgmr.msra.gmra.mxu1 %vm546_vm2, %v1448_v41  ;;  %v1801_v41 = vsel %vm1757_vm5, %v1791_v48, %v1800_v29  ;;  %v1833_v48 = vshll.u32 %v5532_v8, 16 }
  0x85   : > { %4838 = vmatmul.mubr.msk.bf16.gmra.mxu0 %vm546_vm2, %v5415_v5  ;;  %v5663_v5 = vld [vmem:[%s6646_s1 + $0x1c] sm:$0xf]  ;;  %4918 = vmatpush3.bf16.msra.mxu1 %v2297_v49  ;;  %v1817_v49 = vrot.slane %v1815_v45, 2  ;;  %v3406_v45 = vrot.slane %v5733_v55, 3 }
  0x86   : > { %4881 = vmatprep.mubr.msk.bf16.mxu0 %vm546_vm2, %v1774_v26  ;;  %4847 = vmatprep.mubr.msk.bf16.mxu1 %vm546_vm2, %v1450_v51  ;;  %v1821_v26 = vshrl.u32 %v5524_v2, 16  ;;  %v1810_v51 = vsel %vm1757_vm5, %v1800_v29, %v1809_v15  ;;  %v1830_v2 = vshrl.u32 %v5532_v8, 16  ;;  %v1835_v38 = vrot.slane %v1833_v48, 2 }
  0x87   : > { %5079 = vmatprep.subr.msk.bf16.mxu1 %vm601_vm0, %v5663_v5  ;;  %v1818_v61 = vor.u32 %v1817_v49, %v1814_v37  ;;  %v1844_v29 = vrot.slane %v1842_v57, 2  ;;  %v1857_v49 = vshrl.u32 %v5583_v33, 16 }
  0x88   : > { %v1823_v43 = vrot.slane %v1821_v26, 1  ;;  %v1832_v17 = vrot.slane %v1830_v2, 1  ;;  %v6650_v26 = vrot.slane %v5738_v27, 3 }
  0x8a   : > { %v1827_v52 = vor.u32 %v1826_v10, %v1823_v43  ;;  %v1836_v35 = vor.u32 %v1835_v38, %v1832_v17  ;;  %v5757_v43 = vsel %vm3404_vm6, %v3406_v45, %v6650_v26  ;;  %v1463_v10 = vrot.slane %v5562_v30, 1 }
  0x8b   : > { %v1875_v17 = vshrl.u32 %v5610_v53, 16  ;;  %v1878_v38 = vshll.u32 %v5610_v53, 16 }
  0x8c   : > { %4848 = vmatmul.mubr.msk.bf16.gmra.mxu1 %vm546_vm2, %v1452_v13  ;;  %v4354_v13 = vcombine.low %v3398_v4, %v5728_v1  ;;  %v1828_v20 = vsel %vm1757_vm5, %v1818_v61, %v1827_v52 }
  0x8d   : > { %4882 = vmatmul.mubr.msk.bf16.vlgmr.msra.gmra.mxu0 %vm546_vm2, %v1783_v59  ;;  %4851 = vmatprep.mubr.msk.bf16.mxu1 %vm546_vm2, %v1454_v7  ;;  %v1459_v59 = vrot.slane %v5532_v8, 1  ;;  %v1841_v7 = vrot.slane %v1839_v54, 1  ;;  %v1859_v54 = vrot.slane %v1857_v49, 1  ;;  %v1896_v49 = vshll.u32 %v5640_v14, 16 }
  0x8e   : > { %4956 = vmatpush3.bf16.msra.mxu0 %v2736_v0  ;;  %4885 = vmatprep.mubr.msk.bf16.mxu0 %vm546_vm2, %v1792_v46  ;;  %v1461_v0 = vrot.slane %v5558_v25, 1  ;;  %v1819_v46 = vsel %vm1757_vm5, %v1809_v15, %v1818_v61  ;;  %v3405_v25 = vrot.slane %v4354_v13, 3  ;;  %v1850_v61 = vrot.slane %v1848_v36, 1 }
  0x8f   : > { %5080 = vmatprep.subr.msk.bf16.mxu0 %vm601_vm0, %v5691_v18  ;;  %v1460_v8 = vsel %vm1004_vm3, %v1457_v39, %v1459_v59  ;;  %v1845_v39 = vor.u32 %v1844_v29, %v1841_v7  ;;  %v1469_v13 = vrot.slane %v5610_v53, 1  ;;  %v1887_v53 = vshll.u32 %v5617_v58, 16 }
  0x90   : > { %v1462_v15 = vsel %vm1004_vm3, %v1459_v59, %v1461_v0  ;;  %v5749_v37 = vsel %vm3404_vm6, %v3405_v25, %v3406_v45  ;;  %v1464_v59 = vsel %vm1004_vm3, %v1461_v0, %v1463_v10  ;;  %v1467_v0 = vrot.slane %v5587_v28, 1 }
  0x91   : > { %v1846_v48 = vsel %vm1757_vm5, %v1836_v35, %v1845_v39  ;;  %v1877_v25 = vrot.slane %v1875_v17, 1  ;;  %v1880_v45 = vrot.slane %v1878_v38, 2  ;;  %v1477_v17 = vrot.slane %v5675_v62, 1 }
  0x94   : > { %4852 = vmatmul.mubr.msk.bf16.gmra.mxu1 %vm546_vm2, %v1456_v47  ;;  %v1465_v47 = vrot.slane %v5583_v33, 1 }
  0x95   : > { %4886 = vmatmul.mubr.msk.bf16.gmra.mxu0 %vm546_vm2, %v1801_v41  ;;  %4855 = vmatprep.mubr.msk.bf16.mxu1 %vm546_vm2, %v1458_v23  ;;  %v1851_v41 = vshll.u32 %v5562_v30, 16  ;;  %v1837_v23 = vsel %vm1757_vm5, %v1827_v52, %v1836_v35  ;;  %v1866_v30 = vshrl.u32 %v5587_v28, 16  ;;  %v1470_v35 = vsel %vm1004_vm3, %v1467_v0, %v1469_v13 }
  0x96   : > { %4889 = vmatprep.mubr.msk.bf16.mxu0 %vm546_vm2, %v1810_v51  ;;  %v1860_v51 = vshll.u32 %v5583_v33, 16  ;;  %v1466_v4 = vsel %vm1004_vm3, %v1463_v10, %v1465_v47  ;;  %v1869_v33 = vshll.u32 %v5587_v28, 16  ;;  %v1884_v28 = vshrl.u32 %v5617_v58, 16 }
  0x97   : > { %v1853_v2 = vrot.slane %v1851_v41, 2  ;;  %v1868_v7 = vrot.slane %v1866_v30, 1  ;;  %v1881_v41 = vor.u32 %v1880_v45, %v1877_v25  ;;  %v1473_v10 = vrot.slane %v5640_v14, 1  ;;  %v5145_v25 = vld [vmem:[%s5256_s28 + $0x98] ss:$0 sps:$4 sm:$0x11]  }
  0x98   : > { %v1862_v57 = vrot.slane %v1860_v51, 2  ;;  %v1871_v29 = vrot.slane %v1869_v33, 2  ;;  %v1471_v51 = vrot.slane %v5617_v58, 1  ;;  %v1902_v58 = vshrl.u32 %v5643_v34, 16 }
  0x99   : > { %v1911_v30 = vshrl.u32 %v5675_v62, 16  ;;  %v1914_v33 = vshll.u32 %v5675_v62, 16  ;;  %v1920_v62 = vshrl.u32 %v5683_v11, 16 }
  0x9a   : > { %v1863_v52 = vor.u32 %v1862_v57, %v1859_v54  ;;  %v1872_v36 = vor.u32 %v1871_v29, %v1868_v7  ;;  %v1898_v54 = vrot.slane %v1896_v49, 2  ;;  %v1472_v57 = vsel %vm1004_vm3, %v1469_v13, %v1471_v51 }
  0x9b   : > { %v1913_v7 = vrot.slane %v1911_v30, 1  ;;  %v1916_v29 = vrot.slane %v1914_v33, 2  ;;  %v5868_v30 = vld [vmem:[%s5256_s28 + $0x48] sm:$0xff]  }
  0x9c   : > { %4856 = vmatmul.mubr.msk.bf16.gmra.mxu1 %vm546_vm2, %v1460_v8 }
  0x9d   : > { %4890 = vmatmul.mubr.msk.bf16.gmra.mxu0 %vm546_vm2, %v1819_v46  ;;  %4859 = vmatprep.mubr.msk.bf16.mxu1 %vm546_vm2, %v1462_v15  ;;  %v1854_v46 = vor.u32 %v1853_v2, %v1850_v61  ;;  %v1468_v15 = vsel %vm1004_vm3, %v1465_v47, %v1467_v0  ;;  %v1873_v47 = vsel %vm1757_vm5, %v1863_v52, %v1872_v36  ;;  %v1889_v61 = vrot.slane %v1887_v53, 2 }
  0x9e   : > { %4893 = vmatprep.mubr.msk.bf16.mxu0 %vm546_vm2, %v1828_v20  ;;  %v1882_v2 = vsel %vm1757_vm5, %v1872_v36, %v1881_v41  ;;  %v1904_v0 = vrot.slane %v1902_v58, 1  ;;  %v1479_v36 = vrot.slane %v5145_v25, 1  ;;  %v5852_v58 = vld [vmem:[%s5256_s28 + $0x38] sm:$0xff]  }
  0x9f   : > { %v1855_v20 = vsel %vm1757_vm5, %v1845_v39, %v1854_v46  ;;  %v1864_v8 = vsel %vm1757_vm5, %v1854_v46, %v1863_v52  ;;  %v1893_v39 = vshrl.u32 %v5640_v14, 16  ;;  %v1905_v14 = vshll.u32 %v5643_v34, 16 }
  0xa0   : > { %v1475_v52 = vrot.slane %v5643_v34, 1 }
  0xa1   : > { %v1907_v13 = vrot.slane %v1905_v14, 2  ;;  %v5864_v14 = vld [vmem:[%s5256_s28 + $0x40] sm:$0xff]  }
  0xa2   : > { %v1478_v45 = vsel %vm1004_vm3, %v1475_v52, %v1477_v17 }
  0xa3   : > { %v1908_v34 = vor.u32 %v1907_v13, %v1904_v0 }
  0xa4   : > { %4860 = vmatmul.mubr.msk.bf16.gmra.mxu1 %vm546_vm2, %v1464_v59  ;;  %v1474_v59 = vsel %vm1004_vm3, %v1471_v51, %v1473_v10 }
  0xa5   : > { %4894 = vmatmul.mubr.msk.bf16.gmra.mxu0 %vm546_vm2, %v1837_v23  ;;  %4863 = vmatprep.mubr.msk.bf16.mxu1 %vm546_vm2, %v1466_v4  ;;  %v1886_v23 = vrot.slane %v1884_v28, 1  ;;  %v2512_v28 = vld [vmem:[%s5256_s28 + $0x10] sm:$0xc] }
  0xa6   : > { %4897 = vmatprep.mubr.msk.bf16.mxu0 %vm546_vm2, %v1846_v48  ;;  %v1895_v48 = vrot.slane %v1893_v39, 1  ;;  %v5819_v51 = vcombine.low %v2512_v28, %v5728_v1 }
  0xa7   : > { %v1890_v4 = vor.u32 %v1889_v61, %v1886_v23  ;;  %v2645_v23 = vrot.slane %v5733_v55, 2 }
  0xa8   : > { %v1899_v46 = vor.u32 %v1898_v54, %v1895_v48  ;;  %v3183_v48 = vsel %vm601_vm0, %v5663_v5, 0  ;;  %v2647_v54 = vrot.slane %v5738_v27, 2  ;;  %v3497_v5 = vsel %vm601_vm0, %v5691_v18, 0 }
  0xa9   : > { %v1891_v38 = vsel %vm1757_vm5, %v1881_v41, %v1890_v4  ;;  %v1922_v41 = vrot.slane %v1920_v62, 1 }
  0xaa   : > { %v1909_v53 = vsel %vm1757_vm5, %v1899_v46, %v1908_v34 }
  0xac   : > { %4864 = vmatmul.mubr.msk.bf16.gmra.mxu1 %vm546_vm2, %v1468_v15  ;;  %v1923_v15 = vshll.u32 %v5683_v11, 16 }
  0xad   : > { %4898 = vmatmul.mubr.msk.bf16.gmra.mxu0 %vm546_vm2, %v1855_v20  ;;  %4867 = vmatprep.mubr.msk.bf16.mxu1 %vm546_vm2, %v1470_v35  ;;  %v1900_v20 = vsel %vm1757_vm5, %v1890_v4, %v1899_v46  ;;  %v1917_v35 = vor.u32 %v1916_v29, %v1913_v7 }
  0xae   : > { %4901 = vmatprep.mubr.msk.bf16.mxu0 %vm546_vm2, %v1864_v8  ;;  %v1476_v8 = vsel %vm1004_vm3, %v1473_v10, %v1475_v52  ;;  %v1925_v39 = vrot.slane %v1923_v15, 2  ;;  %v1480_v10 = vsel %vm1004_vm3, %v1477_v17, %v1479_v36  ;;  %v2657_v17 = vrot.slane %v5868_v30, 2 }
  0xaf   : > { %v1918_v49 = vsel %vm1757_vm5, %v1908_v34, %v1917_v35 }
  0xb0   : > { %v1926_v11 = vor.u32 %v1925_v39, %v1922_v41 }
  0xb2   : > { %v1927_v1 = vsel %vm1757_vm5, %v1917_v35, %v1926_v11 }
  0xb4   : > { %4868 = vmatmul.mubr.msk.bf16.gmra.mxu1 %vm546_vm2, %v1472_v57  ;;  %v2648_v57 = vsel %vm2204_vm4, %v2645_v23, %v2647_v54 }
  0xb5   : > { %4902 = vmatmul.mubr.msk.bf16.gmra.mxu0 %vm546_vm2, %v1873_v47  ;;  %4871 = vmatprep.mubr.msk.bf16.mxu1 %vm546_vm2, %v1474_v59  ;;  %v2644_v47 = vrot.slane %v5819_v51, 2  ;;  %v5846_v59 = vld [vmem:[%s5256_s28 + $0x30] sm:$0xff]  }
  0xb6   : > { %4905 = vmatprep.mubr.msk.bf16.mxu0 %vm546_vm2, %v1882_v2  ;;  %v5832_v2 = vld [vmem:[%s5256_s28 + $0x28] sm:$0xff]  }
  0xb7   : > { %v2646_v61 = vsel %vm2204_vm4, %v2644_v47, %v2645_v23 }
  0xbc   : > { %4872 = vmatmul.mubr.msk.bf16.gmra.mxu1 %vm546_vm2, %v1476_v8  ;;  %v5898_v8 = vld [vmem:[%s5256_s28 + $0x58] sm:$0xff]  }
  0xbd   : > { %4906 = vmatmul.mubr.msk.bf16.gmra.mxu0 %vm546_vm2, %v1891_v38  ;;  %4875 = vmatprep.mubr.msk.bf16.mxu1 %vm546_vm2, %v1478_v45  ;;  %v2661_v15 = vrot.slane %v5898_v8, 2 }
  0xbe   : > { %4909 = vmatprep.mubr.msk.bf16.mxu0 %vm546_vm2, %v1900_v20  ;;  %v5890_v20 = vld [vmem:[%s5256_s28 + $0x50] sm:$0xff]  }
  0xbf   : > { %v2659_v45 = vrot.slane %v5890_v20, 2 }
  0xc1   : > { %v2660_v28 = vsel %vm2204_vm4, %v2657_v17, %v2659_v45 }
  0xc4   : > { %4876 = vmatmul.mubr.msk.bf16.gmra.mxu1 %vm546_vm2, %v1480_v10 }
  0xc5   : > { %4910 = vmatmul.mubr.msk.bf16.gmra.mxu0 %vm546_vm2, %v1909_v53  ;;  %4919 = vmatprep.mubr.msk.bf16.mxu1 %vm546_vm2, %v5502_v56  ;;  %v2649_v56 = vrot.slane %v5832_v2, 2  ;;  %v5922_v53 = vld [vmem:[%s5256_s28 + $0x60] sm:$0xff]  }
  0xc6   : > { %4913 = vmatprep.mubr.msk.bf16.mxu0 %vm546_vm2, %v1918_v49  ;;  %v5930_v49 = vld [vmem:[%s5256_s28 + $0x68] sm:$0xff]   ;;  %v2663_v11 = vrot.slane %v5922_v53, 2 }
  0xc7   : > { %v2650_v4 = vsel %vm2204_vm4, %v2647_v54, %v2649_v56 }
  0xc8   : > { %v2664_v54 = vsel %vm2204_vm4, %v2661_v15, %v2663_v11 }
  0xcc   : > { %4920 = vmatmul.mubr.msk.bf16.vlgmr.msra.gmra.mxu1 %vm546_vm2, %v5509_v60  ;;  %v2651_v60 = vrot.slane %v5846_v59, 2 }
  0xcd   : > { %4914 = vmatmul.mubr.msk.bf16.gmra.mxu0 %vm546_vm2, %v1927_v1  ;;  %4994 = vmatpush3.bf16.msra.mxu1 %v3183_v48  ;;  %v2665_v1 = vrot.slane %v5930_v49, 2 }
  0xce   : > { %4957 = vmatprep.mubr.msk.bf16.mxu0 %vm546_vm2, %v2646_v61  ;;  %4923 = vmatprep.mubr.msk.bf16.mxu1 %vm546_vm2, %v5517_v63  ;;  %v2653_v63 = vrot.slane %v5852_v58, 2  ;;  %v2652_v18 = vsel %vm2204_vm4, %v2649_v56, %v2651_v60  ;;  %v5954_v56 = vld [vmem:[%s5256_s28 + $0x70] sm:$0xff]  }
  0xd0   : > { %v2654_v46 = vsel %vm2204_vm4, %v2651_v60, %v2653_v63 }
  0xd4   : > { %4924 = vmatmul.mubr.msk.bf16.gmra.mxu1 %vm546_vm2, %v5527_v3  ;;  %v2655_v3 = vrot.slane %v5864_v14, 2 }
  0xd5   : > { %4958 = vmatmul.mubr.msk.bf16.vlgmr.msra.gmra.mxu0 %vm546_vm2, %v2648_v57  ;;  %4927 = vmatprep.mubr.msk.bf16.mxu1 %vm546_vm2, %v5535_v9 }
  0xd6   : > { %5032 = vmatpush3.bf16.msra.mxu0 %v3497_v5  ;;  %4961 = vmatprep.mubr.msk.bf16.mxu0 %vm546_vm2, %v2650_v4  ;;  %v2656_v13 = vsel %vm2204_vm4, %v2653_v63, %v2655_v3  ;;  %v5962_v4 = vld [vmem:[%s5256_s28 + $0x78] sm:$0xff]   ;;  %v2667_v63 = vrot.slane %v5954_v56, 2 }
  0xdc   : > { %v5875_v52 = vpop.f32.mrf.mxu1  ;;  %4928 = vmatmul.mubr.msk.bf16.gmra.mxu1 %vm546_vm2, %v5539_v12  ;;  %v2658_v12 = vsel %vm2204_vm4, %v2655_v3, %v2657_v17  ;;  %v2669_v3 = vrot.slane %v5962_v4, 2 }
  0xdd   : > { %v5870_v33 = vpop.f32.mrf.mxu0  ;;  %4962 = vmatmul.mubr.msk.bf16.gmra.mxu0 %vm546_vm2, %v2652_v18  ;;  %4931 = vmatprep.mubr.msk.bf16.mxu1 %vm546_vm2, %v5545_v19 }
  0xde   : > { %4965 = vmatprep.mubr.msk.bf16.mxu0 %vm546_vm2, %v2654_v46  ;;  %v5884_v38 = vpop.f32.mrf.mxu1 }
  0xdf   : > { %v5879_v9 = vpop.f32.mrf.mxu0 }
  0xe0   : > { %v5892_v7 = vpop.f32.mrf.mxu1 }
  0xe1   : > { %v5886_v0 = vpop.f32.mrf.mxu0 }
  0xe2   : > { %v5900_v25 = vpop.f32.mrf.mxu1 }
  0xe3   : > { %v5894_v29 = vpop.f32.mrf.mxu0 }
  0xe4   : > { %v5907_v34 = vpop.f32.mrf.mxu1  ;;  %4932 = vmatmul.mubr.msk.bf16.gmra.mxu1 %vm546_vm2, %v5550_v21  ;;  %v2662_v21 = vsel %vm2204_vm4, %v2659_v45, %v2661_v15  ;;  %v5986_v45 = vld [vmem:[%s5256_s28 + $0x80] sm:$0xff]  }
  0xe5   : > { %v5902_v19 = vpop.f32.mrf.mxu0  ;;  %4966 = vmatmul.mubr.msk.bf16.gmra.mxu0 %vm546_vm2, %v2656_v13  ;;  %4935 = vmatprep.mubr.msk.bf16.mxu1 %vm546_vm2, %v5569_v31  ;;  %6665 = vst [vmem:[#allocation10_spill] sm:$0xff] %v5986_v45 }
  0xe6   : > { %4969 = vmatprep.mubr.msk.bf16.mxu0 %vm546_vm2, %v2658_v12  ;;  %v5916_v35 = vpop.f32.mrf.mxu1  ;;  %v2668_v12 = vsel %vm2204_vm4, %v2665_v1, %v2667_v63 }
  0xe7   : > { %v5911_v62 = vpop.f32.mrf.mxu0 }
  0xe8   : > { %v5924_v41 = vpop.f32.mrf.mxu1 }
  0xe9   : > { %v5918_v36 = vpop.f32.mrf.mxu0  ;;  %6657 = vst [vmem:[#allocation2_spill] sm:$0xff] %v5924_v41 }
  0xea   : > { %v5932_v10 = vpop.f32.mrf.mxu1 }
  0xeb   : > { %v5926_v39 = vpop.f32.mrf.mxu0  ;;  %6658 = vst [vmem:[#allocation3_spill] sm:$0xff] %v5932_v10 }
  0xec   : > { %v5939_v47 = vpop.f32.mrf.mxu1  ;;  %4936 = vmatmul.mubr.msk.bf16.gmra.mxu1 %vm546_vm2, %v5574_v32  ;;  %v2666_v32 = vsel %vm2204_vm4, %v2663_v11, %v2665_v1 }
  0xed   : > { %v5934_v31 = vpop.f32.mrf.mxu0  ;;  %4970 = vmatmul.mubr.msk.bf16.gmra.mxu0 %vm546_vm2, %v2660_v28  ;;  %6659 = vst [vmem:[#allocation4_spill] sm:$0xff] %v5939_v47  ;;  %4939 = vmatprep.mubr.msk.bf16.mxu1 %vm546_vm2, %v5595_v44 }
  0xee   : > { %4973 = vmatprep.mubr.msk.bf16.mxu0 %vm546_vm2, %v2662_v21  ;;  %v5948_v61 = vpop.f32.mrf.mxu1  ;;  %v5994_v21 = vld [vmem:[%s5256_s28 + $0x88] sm:$0xff]  }
  0xef   : > { %v5943_v23 = vpop.f32.mrf.mxu0  ;;  %6660 = vst [vmem:[#allocation5_spill] sm:$0xff] %v5948_v61  ;;  %6667 = vst [vmem:[#allocation12_spill] sm:$0xff] %v5994_v21  ;;  %v6026_v61 = vld [vmem:[%s5256_s28 + $0x98] sm:$0xff]  }
  0xf0   : > { %v5956_v57 = vpop.f32.mrf.mxu1  ;;  %6669 = vst [vmem:[#allocation14_spill] sm:$0xff] %v6026_v61 }
  0xf1   : > { %v5950_v48 = vpop.f32.mrf.mxu0  ;;  %6661 = vst [vmem:[#allocation6_spill] sm:$0xff] %v5956_v57  ;;  %v6020_v57 = vld [vmem:[%s5256_s28 + $0x90] sm:$0xff]  }
  0xf2   : > { %v5964_v60 = vpop.f32.mrf.mxu1 }
  0xf3   : > { %v5958_v5 = vpop.f32.mrf.mxu0  ;;  %6662 = vst [vmem:[#allocation7_spill] sm:$0xff] %v5964_v60 }
  0xf4   : > { %v5971_v18 = vpop.f32.mrf.mxu1  ;;  %4940 = vmatmul.mubr.msk.bf16.gmra.mxu1 %vm546_vm2, %v5600_v50  ;;  %v2670_v50 = vsel %vm2204_vm4, %v2667_v63, %v2669_v3  ;;  %v2673_v63 = vrot.slane %v5994_v21, 2 }
  0xf5   : > { %v5966_v44 = vpop.f32.mrf.mxu0  ;;  %4974 = vmatmul.mubr.msk.bf16.gmra.mxu0 %vm546_vm2, %v2664_v54  ;;  %6663 = vst [vmem:[#allocation8_spill] sm:$0xff] %v5971_v18  ;;  %4943 = vmatprep.mubr.msk.bf16.mxu1 %vm546_vm2, %v5624_v40  ;;  %v2671_v40 = vrot.slane %v5986_v45, 2 }
  0xf6   : > { %4977 = vmatprep.mubr.msk.bf16.mxu0 %vm546_vm2, %v2666_v32  ;;  %v5980_v17 = vpop.f32.mrf.mxu1 }
  0xf7   : > { %v5975_v46 = vpop.f32.mrf.mxu0  ;;  %6664 = vst [vmem:[#allocation9_spill] sm:$0xff] %v5980_v17  ;;  %v2967_v17 = vshrl.u32 %v5733_v55, 16  ;;  %v2672_v60 = vsel %vm2204_vm4, %v2669_v3, %v2671_v40 }
  0xf8   : > { %v5988_v15 = vpop.f32.mrf.mxu1 }
  0xf9   : > { %v5982_v13 = vpop.f32.mrf.mxu0  ;;  %6666 = vst [vmem:[#allocation11_spill] sm:$0xff] %v5988_v15  ;;  %v2962_v15 = vshll.u32 %v5819_v51, 16 }
  0xfa   : > { %v5996_v11 = vpop.f32.mrf.mxu1 }
  0xfb   : > { %v5990_v28 = vpop.f32.mrf.mxu0  ;;  %6668 = vst [vmem:[#allocation13_spill] sm:$0xff] %v5996_v11  ;;  %v2964_v21 = vrot.slane %v2962_v15, 3 }
  0xfc   : > { %v4769_v1 = vpop.f32.mrf.mxu1  ;;  %4944 = vmatmul.mubr.msk.bf16.gmra.mxu1 %vm546_vm2, %v5630_v16  ;;  %v2970_v16 = vshll.u32 %v5733_v55, 16 }
  0xfd   : > { %v5998_v54 = vpop.f32.mrf.mxu0  ;;  %4978 = vmatmul.mubr.msk.bf16.gmra.mxu0 %vm546_vm2, %v2668_v12  ;;  %v864_v26 = vadd.f32 %v4769_v1, %v5870_v33  ;;  %4947 = vmatprep.mubr.msk.bf16.mxu1 %vm546_vm2, %v5655_v42  ;;  %v2674_v42 = vsel %vm2204_vm4, %v2671_v40, %v2673_v63  ;;  %v2675_v40 = vrot.slane %v6020_v57, 2 }
  0xfe   : > { %4981 = vmatprep.mubr.msk.bf16.mxu0 %vm546_vm2, %v2670_v50  ;;  %v855_v12 = vpop.f32.mrf.mxu1  ;;  %v2959_v50 = vshrl.u32 %v5819_v51, 16 }
  0xff   : > { %v6005_v32 = vpop.f32.mrf.mxu0  ;;  %v856_v18 = vadd.f32 %v855_v12, %v5879_v9  ;;  %v2969_v9 = vrot.slane %v2967_v17, 2  ;;  %v2972_v12 = vrot.slane %v2970_v16, 3 }
 0x100   : > { %v4770_v33 = vpop.f32.mrf.mxu1  ;;  %v2961_v55 = vrot.slane %v2959_v50, 2 }
 0x101   : > { %v6011_v11 = vpop.f32.mrf.mxu0  ;;  %v867_v47 = vadd.f32 %v4770_v33, %v5886_v0  ;;  %v2677_v33 = vrot.slane %v6026_v61, 2  ;;  %v2973_v16 = vor.u32 %v2972_v12, %v2969_v9 }
 0x102   : > { %v858_v51 = vpop.f32.mrf.mxu1  ;;  %v2965_v50 = vor.u32 %v2964_v21, %v2961_v55 }
 0x103   : > { %v6022_v1 = vpop.f32.mrf.mxu0  ;;  %v859_v3 = vadd.f32 %v858_v51, %v5894_v29  ;;  %v2979_v29 = vshll.u32 %v5738_v27, 16 }
 0x104   : > { %v4773_v41 = vpop.f32.mrf.mxu1  ;;  %4948 = vmatmul.mubr.msk.bf16.gmra.mxu1 %vm546_vm2, %v5666_v6  ;;  %v2985_v6 = vshrl.u32 %v5832_v2, 16 }
 0x105   : > { %v4807_v10 = vpop.f32.mrf.mxu0  ;;  %4982 = vmatmul.mubr.msk.bf16.gmra.mxu0 %vm546_vm2, %v2672_v60  ;;  %v880_v60 = vadd.f32 %v4773_v41, %v5902_v19  ;;  %4951 = vmatprep.mubr.msk.bf16.mxu1 %vm546_vm2, %v5697_v22  ;;  %v2676_v41 = vsel %vm2204_vm4, %v2673_v63, %v2675_v40  ;;  %v5166_v22 = vld [vmem:[%s5256_s28 + $0xa0] ss:$0 sps:$4 sm:$0x33]   ;;  %v2981_v9 = vrot.slane %v2979_v29, 3  ;;  %v2997_v29 = vshll.u32 %v5846_v59, 16 }
 0x106   : > { %v6031_v45 = vadd.f32 %v4807_v10, %v864_v26  ;;  %4985 = vmatprep.mubr.msk.bf16.mxu0 %vm546_vm2, %v2674_v42  ;;  %v2976_v26 = vshrl.u32 %v5738_v27, 16  ;;  %v871_v10 = vpop.f32.mrf.mxu1  ;;  %v2988_v42 = vshll.u32 %v5832_v2, 16 }
 0x107   : > { %v1133_v0 = vpop.f32.mrf.mxu0  ;;  %v872_v51 = vadd.f32 %v871_v10, %v5911_v62  ;;  %v2974_v62 = vsel %vm2957_vm7, %v2965_v50, %v2973_v16 }
 0x108   : > { %6670 = vst [vmem:[#allocation15_spill] sm:$0xff] %v6031_v45  ;;  %v6039_v17 = vadd.f32 %v1133_v0, %v856_v18  ;;  %v4774_v18 = vpop.f32.mrf.mxu1  ;;  %v2978_v55 = vrot.slane %v2976_v26, 2  ;;  %v2990_v63 = vrot.slane %v2988_v42, 3  ;;  %v2994_v26 = vshrl.u32 %v5846_v59, 16 }
 0x109   : > { %v4808_v15 = vpop.f32.mrf.mxu0  ;;  %v883_v45 = vadd.f32 %v4774_v18, %v5918_v36  ;;  %v3003_v42 = vshrl.u32 %v5852_v58, 16 }
 0x10a   : > { %6671 = vst [vmem:[#allocation16_spill] sm:$0xff] %v6039_v17  ;;  %v6048_v19 = vadd.f32 %v4808_v15, %v867_v47  ;;  %v2678_v17 = vsel %vm2204_vm4, %v2675_v40, %v2677_v33  ;;  %v874_v12 = vpop.f32.mrf.mxu1  ;;  %v2987_v47 = vrot.slane %v2985_v6, 2  ;;  %v2679_v40 = vrot.slane %v5166_v22, 2 }
 0x10b   : > { %v1136_v0 = vpop.f32.mrf.mxu0  ;;  %v875_v10 = vadd.f32 %v874_v12, %v5926_v39  ;;  %v2982_v39 = vor.u32 %v2981_v9, %v2978_v55  ;;  %v2999_v12 = vrot.slane %v2997_v29, 3 }
 0x10c   : > { %v6054_v21 = vadd.f32 %v1136_v0, %v859_v3  ;;  %v4777_v36 = vpop.f32.mrf.mxu1  ;;  %4952 = vmatmul.mubr.msk.bf16.gmra.mxu1 %vm546_vm2, %v5703_v24  ;;  %v2680_v18 = vsel %vm2204_vm4, %v2677_v33, %v2679_v40 }
 0x10d   : > { %v4811_v61 = vpop.f32.mrf.mxu0  ;;  %4986 = vmatmul.mubr.msk.bf16.gmra.mxu0 %vm546_vm2, %v2676_v41  ;;  %v896_v50 = vadd.f32 %v4777_v36, %v5934_v31  ;;  %4995 = vmatprep.mubr.msk.bf16.mxu1 %vm546_vm2, %v2974_v62  ;;  %v3006_v41 = vshll.u32 %v5852_v58, 16  ;;  %v2983_v9 = vsel %vm2957_vm7, %v2973_v16, %v2982_v39 }
 0x10e   : > { %v6059_v15 = vadd.f32 %v4811_v61, %v880_v60  ;;  %4989 = vmatprep.mubr.msk.bf16.mxu0 %vm546_vm2, %v2678_v17  ;;  %v887_v61 = vpop.f32.mrf.mxu1  ;;  %v2991_v17 = vor.u32 %v2990_v63, %v2987_v47 }
 0x10f   : > { %v1149_v3 = vpop.f32.mrf.mxu0  ;;  %v888_v24 = vadd.f32 %v887_v61, %v5943_v23  ;;  %v3008_v36 = vrot.slane %v3006_v41, 3 }
 0x110   : > { %v6067_v6 = vadd.f32 %v1149_v3, %v872_v51  ;;  %v4778_v0 = vpop.f32.mrf.mxu1  ;;  %v2996_v51 = vrot.slane %v2994_v26, 2  ;;  %v2992_v23 = vsel %vm2957_vm7, %v2982_v39, %v2991_v17  ;;  %v3410_v3 = vrot.slane %v5832_v2, 3 }
 0x111   : > { %v4812_v60 = vpop.f32.mrf.mxu0  ;;  %v899_v62 = vadd.f32 %v4778_v0, %v5950_v48  ;;  %v6672_v0 = vrot.slane %v5738_v27, 3 }
 0x112   : > { %v6073_v22 = vadd.f32 %v4812_v60, %v883_v45  ;;  %v890_v47 = vpop.f32.mrf.mxu1  ;;  %v3005_v45 = vrot.slane %v3003_v42, 2  ;;  %v3000_v16 = vor.u32 %v2999_v12, %v2996_v51  ;;  %v3021_v60 = vshrl.u32 %v5868_v30, 16 }
 0x113   : > { %v1152_v31 = vpop.f32.mrf.mxu0  ;;  %v891_v33 = vadd.f32 %v890_v47, %v5958_v5  ;;  %v3012_v5 = vshrl.u32 %v5864_v14, 16  ;;  %v3024_v42 = vshll.u32 %v5868_v30, 16 }
 0x114   : > { %v6077_v55 = vadd.f32 %v1152_v31, %v875_v10  ;;  %v4781_v48 = vpop.f32.mrf.mxu1  ;;  %4996 = vmatmul.mubr.msk.bf16.vlgmr.msra.gmra.mxu1 %vm546_vm2, %v2983_v9  ;;  %v3411_v31 = vsel %vm3404_vm6, %v6672_v0, %v3410_v3 }
 0x115   : > { %v4815_v63 = vpop.f32.mrf.mxu0  ;;  %4990 = vmatmul.mubr.msk.bf16.gmra.mxu0 %vm546_vm2, %v2680_v18  ;;  %v912_v26 = vadd.f32 %v4781_v48, %v5966_v44  ;;  %4999 = vmatprep.mubr.msk.bf16.mxu1 %vm546_vm2, %v2992_v23  ;;  %v3001_v18 = vsel %vm2957_vm7, %v2991_v17, %v3000_v16  ;;  %v3014_v9 = vrot.slane %v3012_v5, 2  ;;  %v3414_v48 = vrot.slane %v5852_v58, 3 }
 0x116   : > { %v6083_v40 = vadd.f32 %v4815_v63, %v896_v50  ;;  %5033 = vmatprep.mubr.msk.bf16.mxu0 %vm546_vm2, %v5749_v37  ;;  %v3015_v50 = vshll.u32 %v5864_v14, 16  ;;  %v903_v39 = vpop.f32.mrf.mxu1  ;;  %v3009_v37 = vor.u32 %v3008_v36, %v3005_v45  ;;  %v3026_v45 = vrot.slane %v3024_v42, 3 }
 0x117   : > { %v1165_v10 = vpop.f32.mrf.mxu0  ;;  %v904_v41 = vadd.f32 %v903_v39, %v5975_v46  ;;  %v3039_v39 = vshrl.u32 %v5898_v8, 16 }
 0x118   : > { %v6090_v29 = vadd.f32 %v1165_v10, %v888_v24  ;;  %v4782_v44 = vpop.f32.mrf.mxu1  ;;  %v3017_v47 = vrot.slane %v3015_v50, 3  ;;  %v3010_v46 = vsel %vm2957_vm7, %v3000_v16, %v3009_v37  ;;  %v3033_v10 = vshll.u32 %v5890_v20, 16 }
 0x119   : > { %v4816_v61 = vpop.f32.mrf.mxu0  ;;  %v915_v51 = vadd.f32 %v4782_v44, %v5982_v13  ;;  %v3412_v13 = vrot.slane %v5846_v59, 3 }
 0x11a   : > { %v6098_v2 = vadd.f32 %v4816_v61, %v899_v62  ;;  %v906_v63 = vpop.f32.mrf.mxu1  ;;  %v3023_v62 = vrot.slane %v3021_v60, 2  ;;  %v3042_v61 = vshll.u32 %v5898_v8, 16 }
 0x11b   : > { %v1168_v24 = vpop.f32.mrf.mxu0  ;;  %v907_v17 = vadd.f32 %v906_v63, %v5990_v28  ;;  %v3018_v28 = vor.u32 %v3017_v47, %v3014_v9  ;;  %v3413_v42 = vsel %vm3404_vm6, %v3410_v3, %v3412_v13 }
 0x11c   : > { %v6105_v12 = vadd.f32 %v1168_v24, %v891_v33  ;;  %v4785_v36 = vpop.f32.mrf.mxu1  ;;  %5000 = vmatmul.mubr.msk.bf16.gmra.mxu1 %vm546_vm2, %v3001_v18  ;;  %v3027_v59 = vor.u32 %v3026_v45, %v3023_v62  ;;  %v3035_v18 = vrot.slane %v3033_v10, 3  ;;  %v3044_v3 = vrot.slane %v3042_v61, 3 }
 0x11d   : > { %v4819_v23 = vpop.f32.mrf.mxu0  ;;  %5034 = vmatmul.mubr.msk.bf16.vlgmr.msra.gmra.mxu0 %vm546_vm2, %v5757_v43  ;;  %v3030_v43 = vshrl.u32 %v5890_v20, 16  ;;  %v928_v16 = vadd.f32 %v4785_v36, %v5998_v54  ;;  %5003 = vmatprep.mubr.msk.bf16.mxu1 %vm546_vm2, %v3010_v46  ;;  %v3019_v9 = vsel %vm2957_vm7, %v3009_v37, %v3018_v28  ;;  %v3048_v36 = vshrl.u32 %v5922_v53, 16 }
 0x11e   : > { %v6111_v27 = vadd.f32 %v4819_v23, %v912_v26  ;;  %5037 = vmatprep.mubr.msk.bf16.mxu0 %vm546_vm2, %v3411_v31  ;;  %v919_v26 = vpop.f32.mrf.mxu1 }
 0x11f   : > { %v1181_v33 = vpop.f32.mrf.mxu0  ;;  %v920_v58 = vadd.f32 %v919_v26, %v6005_v32  ;;  %v3032_v24 = vrot.slane %v3030_v43, 2  ;;  %v3028_v32 = vsel %vm2957_vm7, %v3018_v28, %v3027_v59 }
 0x120   : > { %v6120_v5 = vadd.f32 %v1181_v33, %v904_v41  ;;  %v4786_v44 = vpop.f32.mrf.mxu1  ;;  %v3415_v41 = vsel %vm3404_vm6, %v3412_v13, %v3414_v48 }
 0x121   : > { %v4820_v50 = vpop.f32.mrf.mxu0  ;;  %v931_v0 = vadd.f32 %v4786_v44, %v6011_v11  ;;  %v3416_v11 = vrot.slane %v5864_v14, 3  ;;  %v3036_v45 = vor.u32 %v3035_v18, %v3032_v24  ;;  %v3057_v14 = vshrl.u32 %v5930_v49, 16 }
 0x122   : > { %v6126_v60 = vadd.f32 %v4820_v50, %v915_v51  ;;  %v922_v47 = vpop.f32.mrf.mxu1  ;;  %v3041_v51 = vrot.slane %v3039_v39, 2  ;;  %v3050_v44 = vrot.slane %v3048_v36, 2  ;;  %v3078_v36 = vshll.u32 %v5962_v4, 16 }
 0x123   : > { %v1184_v54 = vpop.f32.mrf.mxu0  ;;  %v923_v23 = vadd.f32 %v922_v47, %v6022_v1  ;;  %v3051_v1 = vshll.u32 %v5922_v53, 16  ;;  %v3417_v26 = vsel %vm3404_vm6, %v3414_v48, %v3416_v11  ;;  %v3037_v39 = vsel %vm2957_vm7, %v3027_v59, %v3036_v45 }
 0x124   : > { %v6131_v31 = vadd.f32 %v1184_v54, %v907_v17  ;;  %v4789_v62 = vpop.f32.mrf.mxu1  ;;  %5004 = vmatmul.mubr.msk.bf16.gmra.mxu1 %vm546_vm2, %v3019_v9  ;;  %v3418_v17 = vrot.slane %v5868_v30, 3  ;;  %v3045_v10 = vor.u32 %v3044_v3, %v3041_v51  ;;  %v3066_v51 = vshrl.u32 %v5954_v56, 16 }
 0x125   : > { %v4823_v63 = vpop.f32.mrf.mxu0  ;;  %5038 = vmatmul.mubr.msk.bf16.gmra.mxu0 %vm546_vm2, %v3413_v42  ;;  %5007 = vmatprep.mubr.msk.bf16.mxu1 %vm546_vm2, %v3028_v32  ;;  %v3053_v54 = vrot.slane %v3051_v1, 3  ;;  %v3422_v32 = vrot.slane %v5898_v8, 3  ;;  %v3069_v3 = vshll.u32 %v5954_v56, 16 }
 0x126   : > { %v6137_v46 = vadd.f32 %v4823_v63, %v928_v16  ;;  %5041 = vmatprep.mubr.msk.bf16.mxu0 %vm546_vm2, %v3415_v41  ;;  %v935_v33 = vpop.f32.mrf.mxu1  ;;  %v3060_v16 = vshll.u32 %v5930_v49, 16  ;;  %v3419_v61 = vsel %vm3404_vm6, %v3416_v11, %v3418_v17  ;;  %v3046_v18 = vsel %vm2957_vm7, %v3036_v45, %v3045_v10 }
 0x127   : > { %v1197_v37 = vpop.f32.mrf.mxu0  ;;  %v936_v9 = vadd.f32 %v935_v33, %v5884_v38  ;;  %v3054_v38 = vor.u32 %v3053_v54, %v3050_v44  ;;  %v3075_v45 = vshrl.u32 %v5962_v4, 16 }
 0x128   : > { %v6143_v13 = vadd.f32 %v1197_v37, %v920_v58  ;;  %v4790_v30 = vpop.f32.mrf.mxu1  ;;  %v944_v58 = vadd.f32 %v4789_v62, %v5875_v52  ;;  %v3062_v48 = vrot.slane %v3060_v16, 3  ;;  %v3420_v52 = vrot.slane %v5890_v20, 3 }
 0x129   : > { %v4824_v43 = vpop.f32.mrf.mxu0  ;;  %v3068_v16 = vrot.slane %v3066_v51, 2  ;;  %v3077_v44 = vrot.slane %v3075_v45, 2 }
 0x12a   : > { %v6150_v28 = vadd.f32 %v4824_v43, %v931_v0  ;;  %v938_v41 = vpop.f32.mrf.mxu1  ;;  %v3059_v0 = vrot.slane %v3057_v14, 2  ;;  %v3421_v33 = vsel %vm3404_vm6, %v3418_v17, %v3420_v52  ;;  %v3423_v14 = vsel %vm3404_vm6, %v3420_v52, %v3422_v32 }
 0x12b   : > { %v1200_v50 = vpop.f32.mrf.mxu0  ;;  %v939_v8 = vadd.f32 %v938_v41, %v5900_v25  ;;  %v3080_v17 = vrot.slane %v3078_v36, 3 }
 0x12c   : > { %v6156_v42 = vadd.f32 %v1200_v50, %v923_v23  ;;  %v4793_v59 = vpop.f32.mrf.mxu1  ;;  %5008 = vmatmul.mubr.msk.bf16.gmra.mxu1 %vm546_vm2, %v3037_v39  ;;  %v947_v23 = vadd.f32 %v4790_v30, %v5892_v7  ;;  %v3063_v20 = vor.u32 %v3062_v48, %v3059_v0  ;;  %v3055_v39 = vsel %vm2957_vm7, %v3045_v10, %v3054_v38  ;;  %v6673_v48 = vld [vmem:[#allocation2_spill] sm:$0xff] }
 0x12d   : > { %v4827_v24 = vpop.f32.mrf.mxu0  ;;  %5042 = vmatmul.mubr.msk.bf16.gmra.mxu0 %vm546_vm2, %v3417_v26  ;;  %5011 = vmatprep.mubr.msk.bf16.mxu1 %vm546_vm2, %v3046_v18  ;;  %v3071_v26 = vrot.slane %v3069_v3, 3  ;;  %v960_v30 = vadd.f32 %v4793_v59, %v5907_v34  ;;  %v3424_v34 = vrot.slane %v5922_v53, 3  ;;  %v3426_v0 = vrot.slane %v5930_v49, 3 }
 0x12e   : > { %v6161_v47 = vadd.f32 %v4827_v24, %v944_v58  ;;  %5045 = vmatprep.mubr.msk.bf16.mxu0 %vm546_vm2, %v3419_v61  ;;  %v951_v62 = vpop.f32.mrf.mxu1  ;;  %v3064_v25 = vsel %vm2957_vm7, %v3054_v38, %v3063_v20  ;;  %v3081_v53 = vor.u32 %v3080_v17, %v3077_v44  ;;  %v6678_v17 = vld [vmem:[#allocation5_spill] sm:$0xff] }
 0x12f   : > { %v1213_v63 = vpop.f32.mrf.mxu0  ;;  %v952_v54 = vadd.f32 %v951_v62, %v5916_v35  ;;  %v3072_v18 = vor.u32 %v3071_v26, %v3068_v16  ;;  %v6674_v35 = vld [vmem:[#allocation10_spill] sm:$0xff]  ;;  %v3425_v36 = vsel %vm3404_vm6, %v3422_v32, %v3424_v34 }
 0x130   : > { %v6170_v11 = vadd.f32 %v1213_v63, %v936_v9  ;;  %v4794_v43 = vpop.f32.mrf.mxu1  ;;  %v3084_v59 = vshrl.u32 %v6674_v35, 16  ;;  %v3087_v63 = vshll.u32 %v6674_v35, 16 }
 0x131   : > { %v4828_v37 = vpop.f32.mrf.mxu0  ;;  %v963_v9 = vadd.f32 %v4794_v43, %v6673_v48  ;;  %v3073_v43 = vsel %vm2957_vm7, %v3063_v20, %v3072_v18  ;;  %v3428_v20 = vrot.slane %v5954_v56, 3  ;;  %v3430_v48 = vrot.slane %v5962_v4, 3  ;;  %v6681_v4 = vld [vmem:[#allocation7_spill] sm:$0xff] }
 0x132   : > { %v6176_v1 = vadd.f32 %v4828_v37, %v947_v23  ;;  %v954_v61 = vpop.f32.mrf.mxu1  ;;  %v6675_v23 = vld [vmem:[#allocation12_spill] sm:$0xff]  ;;  %v6676_v37 = vld [vmem:[#allocation3_spill] sm:$0xff] }
 0x133   : > { %v1216_v7 = vpop.f32.mrf.mxu0  ;;  %v3093_v38 = vshrl.u32 %v6675_v23, 16  ;;  %v3096_v62 = vshll.u32 %v6675_v23, 16  ;;  %v955_v45 = vadd.f32 %v954_v61, %v6676_v37  ;;  %v3082_v61 = vsel %vm2957_vm7, %v3072_v18, %v3081_v53  ;;  %v6680_v37 = vld [vmem:[#allocation14_spill] sm:$0xff] }
 0x134   : > { %v6181_v50 = vadd.f32 %v1216_v7, %v939_v8  ;;  %v4797_v24 = vpop.f32.mrf.mxu1  ;;  %5012 = vmatmul.mubr.msk.bf16.gmra.mxu1 %vm546_vm2, %v3055_v39  ;;  %v3427_v7 = vsel %vm3404_vm6, %v3424_v34, %v3426_v0  ;;  %v3089_v39 = vrot.slane %v3087_v63, 3  ;;  %v3105_v18 = vshll.u32 %v6020_v57, 16 }
 0x135   : > { %v4831_v58 = vpop.f32.mrf.mxu0  ;;  %5046 = vmatmul.mubr.msk.bf16.gmra.mxu0 %vm546_vm2, %v3421_v33  ;;  %5015 = vmatprep.mubr.msk.bf16.mxu1 %vm546_vm2, %v3064_v25  ;;  %v3095_v44 = vrot.slane %v3093_v38, 2  ;;  %v3098_v32 = vrot.slane %v3096_v62, 3 }
 0x136   : > { %v6187_v41 = vadd.f32 %v4831_v58, %v960_v30  ;;  %5049 = vmatprep.mubr.msk.bf16.mxu0 %vm546_vm2, %v3423_v14  ;;  %v967_v51 = vpop.f32.mrf.mxu1  ;;  %v6677_v14 = vld [vmem:[#allocation4_spill] sm:$0xff]  ;;  %v3086_v30 = vrot.slane %v3084_v59, 2  ;;  %v6679_v59 = vld [vmem:[#allocation6_spill] sm:$0xff] }
 0x137   : > { %v1229_v10 = vpop.f32.mrf.mxu0  ;;  %v976_v16 = vadd.f32 %v4797_v24, %v6677_v14  ;;  %v3099_v62 = vor.u32 %v3098_v32, %v3095_v44 }
 0x138   : > { %v6194_v52 = vadd.f32 %v1229_v10, %v952_v54  ;;  %v4798_v8 = vpop.f32.mrf.mxu1  ;;  %v968_v54 = vadd.f32 %v967_v51, %v6678_v17  ;;  %v3090_v51 = vor.u32 %v3089_v39, %v3086_v30  ;;  %v6233_v30 = vld [vmem:[%s5256_s28 + $0xa0] ss:$0 sps:$4 sm:$0x77]   ;;  %v6682_v39 = vld [vmem:[#allocation8_spill] sm:$0xff] }
 0x139   : > { %v4832_v3 = vpop.f32.mrf.mxu0  ;;  %v979_v63 = vadd.f32 %v4798_v8, %v6679_v59 }
 0x13a   : > { %v6202_v49 = vadd.f32 %v4832_v3, %v963_v9  ;;  %v970_v58 = vpop.f32.mrf.mxu1  ;;  %v3102_v9 = vshrl.u32 %v6020_v57, 16  ;;  %v3091_v17 = vsel %vm2957_vm7, %v3081_v53, %v3090_v51 }
 0x13b   : > { %v1232_v33 = vpop.f32.mrf.mxu0 }
 0x13c   : > { %v6208_v26 = vadd.f32 %v1232_v33, %v955_v45  ;;  %v4801_v34 = vpop.f32.mrf.mxu1  ;;  %5016 = vmatmul.mubr.msk.bf16.gmra.mxu1 %vm546_vm2, %v3073_v43  ;;  %v3111_v45 = vshrl.u32 %v6680_v37, 16  ;;  %v971_v33 = vadd.f32 %v970_v58, %v6681_v4  ;;  %v3434_v4 = vrot.slane %v6675_v23, 3 }
 0x13d   : > { %v4835_v25 = vpop.f32.mrf.mxu0  ;;  %5050 = vmatmul.mubr.msk.bf16.gmra.mxu0 %vm546_vm2, %v3425_v36  ;;  %5019 = vmatprep.mubr.msk.bf16.mxu1 %vm546_vm2, %v3082_v61  ;;  %v3114_v36 = vshll.u32 %v6680_v37, 16  ;;  %v3107_v61 = vrot.slane %v3105_v18, 3  ;;  %v992_v44 = vadd.f32 %v4801_v34, %v6682_v39  ;;  %v3432_v34 = vrot.slane %v6674_v35, 3 }
 0x13e   : > { %v6213_v10 = vadd.f32 %v4835_v25, %v976_v16  ;;  %5053 = vmatprep.mubr.msk.bf16.mxu0 %vm546_vm2, %v3427_v7  ;;  %v983_v38 = vpop.f32.mrf.mxu1  ;;  %v3429_v7 = vsel %vm3404_vm6, %v3426_v0, %v3428_v20  ;;  %v3431_v16 = vsel %vm3404_vm6, %v3428_v20, %v3430_v48  ;;  %v3104_v25 = vrot.slane %v3102_v9, 2 }
 0x13f   : > { %v1245_v24 = vpop.f32.mrf.mxu0  ;;  %v3100_v0 = vsel %vm2957_vm7, %v3090_v51, %v3099_v62  ;;  %v3116_v59 = vrot.slane %v3114_v36, 3  ;;  %v6684_v51 = vld [vmem:[#allocation11_spill] sm:$0xff] }
 0x140   : > { %v6222_v3 = vadd.f32 %v1245_v24, %v968_v54  ;;  %v4802_v8 = vpop.f32.mrf.mxu1  ;;  %v3113_v24 = vrot.slane %v3111_v45, 2  ;;  %v6685_v36 = vld [vmem:[#allocation15_spill] sm:$0xff] }
 0x141   : > { %v4836_v56 = vpop.f32.mrf.mxu0  ;;  %v995_v45 = vadd.f32 %v4802_v8, %v6684_v51 }
 0x142   : > { %v6228_v43 = vadd.f32 %v4836_v56, %v979_v63  ;;  %v986_v54 = vpop.f32.mrf.mxu1  ;;  %v6683_v63 = vld [vmem:[#allocation9_spill] sm:$0xff]  ;;  %v3108_v56 = vor.u32 %v3107_v61, %v3104_v25  ;;  %v3117_v39 = vor.u32 %v3116_v59, %v3113_v24  ;;  %v6687_v25 = vld [vmem:[#allocation16_spill] sm:$0xff] }
 0x143   : > { %v1248_v14 = vpop.f32.mrf.mxu0  ;;  %v984_v20 = vadd.f32 %v983_v38, %v6683_v63 }
 0x144   : > { %v6236_v32 = vadd.f32 %v1248_v14, %v971_v33  ;;  %v4845_v18 = vpop.f32.mrf.mxu1  ;;  %5020 = vmatmul.mubr.msk.bf16.gmra.mxu1 %vm546_vm2, %v3091_v17  ;;  %v3120_v33 = vshrl.u32 %v6233_v30, 16  ;;  %v3123_v14 = vshll.u32 %v6233_v30, 16 }
 0x145   : > { %v4839_v58 = vpop.f32.mrf.mxu0  ;;  %5054 = vmatmul.mubr.msk.bf16.gmra.mxu0 %vm546_vm2, %v3429_v7  ;;  %v1717_v7 = vadd.f32 %v4845_v18, %v6685_v36  ;;  %5023 = vmatprep.mubr.msk.bf16.mxu1 %vm546_vm2, %v3100_v0  ;;  %v3435_v18 = vsel %vm3404_vm6, %v3432_v34, %v3434_v4 }
 0x146   : > { %v6242_v9 = vadd.f32 %v4839_v58, %v992_v44  ;;  %5057 = vmatprep.mubr.msk.bf16.mxu0 %vm546_vm2, %v3431_v16  ;;  %v1572_v35 = vpop.f32.mrf.mxu1  ;;  %v6686_v44 = vld [vmem:[#allocation13_spill] sm:$0xff]  ;;  %v3433_v58 = vsel %vm3404_vm6, %v3430_v48, %v3432_v34  ;;  %v3122_v51 = vrot.slane %v3120_v33, 2  ;;  %v3125_v24 = vrot.slane %v3123_v14, 3 }
 0x147   : > { %v1261_v53 = vpop.f32.mrf.mxu0  ;;  %v987_v17 = vadd.f32 %v986_v54, %v6686_v44  ;;  %v1715_v61 = vadd.f32 %v1572_v35, %v6687_v25  ;;  %v3438_v33 = vrot.slane %v6680_v37, 3 }
 0x148   : > { %v6251_v38 = vadd.f32 %v1261_v53, %v984_v20  ;;  %v4846_v8 = vpop.f32.mrf.mxu1  ;;  %v3109_v20 = vsel %vm2957_vm7, %v3099_v62, %v3108_v56  ;;  %v3436_v62 = vrot.slane %v6020_v57, 3 }
 0x149   : > { %v4840_v16 = vpop.f32.mrf.mxu0  ;;  %v1718_v0 = vadd.f32 %v4846_v8, %v6048_v19 }
 0x14a   : > { %v6257_v23 = vadd.f32 %v4840_v16, %v995_v45  ;;  %v1575_v59 = vpop.f32.mrf.mxu1  ;;  %v3118_v45 = vsel %vm2957_vm7, %v3108_v56, %v3117_v39  ;;  %v3126_v56 = vor.u32 %v3125_v24, %v3122_v51  ;;  %v3437_v57 = vsel %vm3404_vm6, %v3434_v4, %v3436_v62 }
 0x14b   : > { %v1264_v63 = vpop.f32.mrf.mxu0  ;;  %v1716_v48 = vadd.f32 %v1575_v59, %v6054_v21  ;;  %v3440_v4 = vrot.slane %v6233_v30, 3 }
 0x14c   : > { %v6263_v53 = vadd.f32 %v1264_v63, %v987_v17  ;;  %v4849_v34 = vpop.f32.mrf.mxu1  ;;  %5024 = vmatmul.mubr.msk.bf16.gmra.mxu1 %vm546_vm2, %v3109_v20 }
 0x14d   : > { %v4883_v54 = vpop.f32.mrf.mxu0  ;;  %5058 = vmatmul.mubr.msk.bf16.gmra.mxu0 %vm546_vm2, %v3433_v58  ;;  %v1721_v14 = vadd.f32 %v4849_v34, %v6059_v15  ;;  %5027 = vmatprep.mubr.msk.bf16.mxu1 %vm546_vm2, %v3118_v45  ;;  %v3439_v58 = vsel %vm3404_vm6, %v3436_v62, %v3438_v33 }
 0x14e   : > { %v6268_v36 = vadd.f32 %v4883_v54, %v1717_v7  ;;  %5061 = vmatprep.mubr.msk.bf16.mxu0 %vm546_vm2, %v3435_v18  ;;  %v1588_v21 = vpop.f32.mrf.mxu1 }
 0x14f   : > { %v2019_v19 = vpop.f32.mrf.mxu0  ;;  %v1719_v16 = vadd.f32 %v1588_v21, %v6067_v6 }
 0x150   : > { %v6275_v35 = vadd.f32 %v2019_v19, %v1715_v61  ;;  %v4850_v17 = vpop.f32.mrf.mxu1  ;;  %v3127_v61 = vsel %vm2957_vm7, %v3117_v39, %v3126_v56 }
 0x151   : > { %v4884_v7 = vpop.f32.mrf.mxu0  ;;  %v1722_v37 = vadd.f32 %v4850_v17, %v6073_v22 }
 0x152   : > { %v6279_v44 = vadd.f32 %v4884_v7, %v1718_v0  ;;  %v1591_v8 = vpop.f32.mrf.mxu1 }
 0x153   : > { %v2022_v25 = vpop.f32.mrf.mxu0  ;;  %v1720_v6 = vadd.f32 %v1591_v8, %v6077_v55  ;;  %v3441_v55 = vsel %vm3404_vm6, %v3438_v33, %v3440_v4 }
 0x154   : > { %v6284_v15 = vadd.f32 %v2022_v25, %v1716_v48  ;;  %v4853_v18 = vpop.f32.mrf.mxu1  ;;  %5028 = vmatmul.mubr.msk.bf16.gmra.mxu1 %vm546_vm2, %v3127_v61 }
 0x155   : > { %v4887_v63 = vpop.f32.mrf.mxu0  ;;  %5062 = vmatmul.mubr.msk.bf16.gmra.mxu0 %vm546_vm2, %v3437_v57  ;;  %v1725_v0 = vadd.f32 %v4853_v18, %v6083_v40 }
 0x156   : > { %v6289_v20 = vadd.f32 %v4887_v63, %v1721_v14  ;;  %5065 = vmatprep.mubr.msk.bf16.mxu0 %vm546_vm2, %v3439_v58  ;;  %v1604_v39 = vpop.f32.mrf.mxu1 }
 0x157   : > { %v2035_v22 = vpop.f32.mrf.mxu0  ;;  %v1723_v59 = vadd.f32 %v1604_v39, %v6090_v29 }
 0x158   : > { %v6295_v51 = vadd.f32 %v2035_v22, %v1719_v16  ;;  %v4854_v45 = vpop.f32.mrf.mxu1 }
 0x159   : > { %v4888_v24 = vpop.f32.mrf.mxu0  ;;  %v1726_v30 = vadd.f32 %v4854_v45, %v6098_v2 }
 0x15a   : > { %v6298_v54 = vadd.f32 %v4888_v24, %v1722_v37  ;;  %v1607_v34 = vpop.f32.mrf.mxu1 }
 0x15b   : > { %v2038_v48 = vpop.f32.mrf.mxu0  ;;  %v1724_v40 = vadd.f32 %v1607_v34, %v6105_v12 }
 0x15c   : > { %v6302_v62 = vadd.f32 %v2038_v48, %v1720_v6  ;;  %v4857_v56 = vpop.f32.mrf.mxu1 }
 0x15d   : > { %v4891_v19 = vpop.f32.mrf.mxu0  ;;  %5066 = vmatmul.mubr.msk.bf16.gmra.mxu0 %vm546_vm2, %v3441_v55  ;;  %v1729_v21 = vadd.f32 %v4857_v56, %v6111_v27 }
 0x15e   : > { %v6306_v14 = vadd.f32 %v4891_v19, %v1725_v0  ;;  %v1620_v33 = vpop.f32.mrf.mxu1 }
 0x15f   : > { %v2051_v29 = vpop.f32.mrf.mxu0  ;;  %v1727_v2 = vadd.f32 %v1620_v33, %v6120_v5 }
 0x160   : > { %v6309_v7 = vadd.f32 %v2051_v29, %v1723_v59  ;;  %v4858_v17 = vpop.f32.mrf.mxu1 }
 0x161   : > { %v4892_v16 = vpop.f32.mrf.mxu0  ;;  %v1730_v58 = vadd.f32 %v4858_v17, %v6126_v60 }
 0x162   : > { %v6312_v57 = vadd.f32 %v4892_v16, %v1726_v30  ;;  %v1623_v12 = vpop.f32.mrf.mxu1 }
 0x163   : > { %v2054_v25 = vpop.f32.mrf.mxu0  ;;  %v1728_v8 = vadd.f32 %v1623_v12, %v6131_v31 }
 0x164   : > { %v6315_v37 = vadd.f32 %v2054_v25, %v1724_v40  ;;  %v4861_v27 = vpop.f32.mrf.mxu1 }
 0x165   : > { %v4895_v61 = vpop.f32.mrf.mxu0  ;;  %v1733_v4 = vadd.f32 %v4861_v27, %v6137_v46 }
 0x166   : > { %v6318_v63 = vadd.f32 %v4895_v61, %v1729_v21  ;;  %v1636_v5 = vpop.f32.mrf.mxu1 }
 0x167   : > { %v2067_v6 = vpop.f32.mrf.mxu0  ;;  %v1731_v0 = vadd.f32 %v1636_v5, %v6143_v13 }
 0x168   : > { %v6321_v18 = vadd.f32 %v2067_v6, %v1727_v2  ;;  %v4862_v60 = vpop.f32.mrf.mxu1 }
 0x169   : > { %v4896_v22 = vpop.f32.mrf.mxu0  ;;  %v1734_v59 = vadd.f32 %v4862_v60, %v6150_v28 }
 0x16a   : > { %v6324_v39 = vadd.f32 %v4896_v22, %v1730_v58  ;;  %v1639_v31 = vpop.f32.mrf.mxu1 }
 0x16b   : > { %v2070_v24 = vpop.f32.mrf.mxu0  ;;  %v1732_v48 = vadd.f32 %v1639_v31, %v6156_v42 }
 0x16c   : > { %v6327_v55 = vadd.f32 %v2070_v24, %v1728_v8  ;;  %v4865_v46 = vpop.f32.mrf.mxu1 }
 0x16d   : > { %v4899_v45 = vpop.f32.mrf.mxu0  ;;  %v1737_v19 = vadd.f32 %v4865_v46, %v6161_v47 }
 0x16e   : > { %v6330_v30 = vadd.f32 %v4899_v45, %v1733_v4  ;;  %v1652_v13 = vpop.f32.mrf.mxu1 }
 0x16f   : > { %v2083_v34 = vpop.f32.mrf.mxu0  ;;  %v1735_v29 = vadd.f32 %v1652_v13, %v6170_v11 }
 0x170   : > { %v6333_v40 = vadd.f32 %v2083_v34, %v1731_v0  ;;  %v4866_v28 = vpop.f32.mrf.mxu1 }
 0x171   : > { %v4900_v56 = vpop.f32.mrf.mxu0  ;;  %v1738_v16 = vadd.f32 %v4866_v28, %v6176_v1 }
 0x172   : > { %v6336_v21 = vadd.f32 %v4900_v56, %v1734_v59  ;;  %v1655_v42 = vpop.f32.mrf.mxu1 }
 0x173   : > { %v2086_v33 = vpop.f32.mrf.mxu0  ;;  %v1736_v25 = vadd.f32 %v1655_v42, %v6181_v50 }
 0x174   : > { %v6339_v2 = vadd.f32 %v2086_v33, %v1732_v48  ;;  %v4869_v47 = vpop.f32.mrf.mxu1 }
 0x175   : > { %v4903_v17 = vpop.f32.mrf.mxu0  ;;  %v1741_v61 = vadd.f32 %v4869_v47, %v6187_v41 }
 0x176   : > { %v6342_v58 = vadd.f32 %v4903_v17, %v1737_v19  ;;  %v1668_v11 = vpop.f32.mrf.mxu1 }
 0x177   : > { %v2099_v12 = vpop.f32.mrf.mxu0  ;;  %v1739_v6 = vadd.f32 %v1668_v11, %v6194_v52 }
 0x178   : > { %v6345_v8 = vadd.f32 %v2099_v12, %v1735_v29  ;;  %v4870_v1 = vpop.f32.mrf.mxu1 }
 0x179   : > { %v4904_v27 = vpop.f32.mrf.mxu0  ;;  %v1742_v22 = vadd.f32 %v4870_v1, %v6202_v49 }
 0x17a   : > { %v6348_v4 = vadd.f32 %v4904_v27, %v1738_v16  ;;  %v1671_v50 = vpop.f32.mrf.mxu1 }
 0x17b   : > { %v2102_v5 = vpop.f32.mrf.mxu0  ;;  %v1740_v24 = vadd.f32 %v1671_v50, %v6208_v26 }
 0x17c   : > { %v6351_v0 = vadd.f32 %v2102_v5, %v1736_v25  ;;  %v4873_v41 = vpop.f32.mrf.mxu1 }
 0x17d   : > { %v4907_v60 = vpop.f32.mrf.mxu0  ;;  %v1745_v45 = vadd.f32 %v4873_v41, %v6213_v10 }
 0x17e   : > { %v6354_v59 = vadd.f32 %v4907_v60, %v1741_v61  ;;  %v1684_v52 = vpop.f32.mrf.mxu1 }
 0x17f   : > { %v2115_v31 = vpop.f32.mrf.mxu0  ;;  %v1743_v34 = vadd.f32 %v1684_v52, %v6222_v3 }
 0x180   : > { %v6357_v48 = vadd.f32 %v2115_v31, %v1739_v6  ;;  %v4874_v49 = vpop.f32.mrf.mxu1 }
 0x181   : > { %v4908_v46 = vpop.f32.mrf.mxu0  ;;  %v1746_v56 = vadd.f32 %v4874_v49, %v6228_v43 }
 0x182   : > { %v6360_v19 = vadd.f32 %v4908_v46, %v1742_v22  ;;  %v1687_v26 = vpop.f32.mrf.mxu1 }
 0x183   : > { %v2118_v13 = vpop.f32.mrf.mxu0  ;;  %v1744_v33 = vadd.f32 %v1687_v26, %v6236_v32 }
 0x184   : > { %v6363_v29 = vadd.f32 %v2118_v13, %v1740_v24  ;;  %v4877_v10 = vpop.f32.mrf.mxu1 }
 0x185   : > { %v4911_v28 = vpop.f32.mrf.mxu0  ;;  %v1749_v17 = vadd.f32 %v4877_v10, %v6242_v9 }
 0x186   : > { %v6366_v16 = vadd.f32 %v4911_v28, %v1745_v45  ;;  %v1700_v3 = vpop.f32.mrf.mxu1 }
 0x187   : > { %v2131_v42 = vpop.f32.mrf.mxu0  ;;  %v1747_v12 = vadd.f32 %v1700_v3, %v6251_v38 }
 0x188   : > { %v6369_v25 = vadd.f32 %v2131_v42, %v1743_v34  ;;  %v4878_v43 = vpop.f32.mrf.mxu1 }
 0x189   : > { %v4912_v47 = vpop.f32.mrf.mxu0  ;;  %v1750_v27 = vadd.f32 %v4878_v43, %v6257_v23 }
 0x18a   : > { %v6372_v61 = vadd.f32 %v4912_v47, %v1746_v56  ;;  %v1703_v32 = vpop.f32.mrf.mxu1 }
 0x18b   : > { %v2134_v11 = vpop.f32.mrf.mxu0  ;;  %v1748_v5 = vadd.f32 %v1703_v32, %v6263_v53 }
 0x18c   : > { %v6375_v6 = vadd.f32 %v2134_v11, %v1744_v33  ;;  %v4921_v9 = vpop.f32.mrf.mxu1 }
 0x18d   : > { %v4915_v1 = vpop.f32.mrf.mxu0  ;;  %v2478_v60 = vadd.f32 %v4921_v9, %v6268_v36 }
 0x18e   : > { %v6378_v22 = vadd.f32 %v4915_v1, %v1749_v17  ;;  %v2333_v38 = vpop.f32.mrf.mxu1 }
 0x18f   : > { %v2147_v50 = vpop.f32.mrf.mxu0  ;;  %v2476_v31 = vadd.f32 %v2333_v38, %v6275_v35 }
 0x190   : > { %v6381_v24 = vadd.f32 %v2147_v50, %v1747_v12  ;;  %v4922_v23 = vpop.f32.mrf.mxu1 }
 0x191   : > { %v4916_v41 = vpop.f32.mrf.mxu0  ;;  %v2479_v46 = vadd.f32 %v4922_v23, %v6279_v44 }
 0x192   : > { %v6384_v45 = vadd.f32 %v4916_v41, %v1750_v27  ;;  %v2336_v53 = vpop.f32.mrf.mxu1 }
 0x193   : > { %v2150_v52 = vpop.f32.mrf.mxu0  ;;  %v2477_v13 = vadd.f32 %v2336_v53, %v6284_v15 }
 0x194   : > { %v6387_v34 = vadd.f32 %v2150_v52, %v1748_v5  ;;  %v4925_v36 = vpop.f32.mrf.mxu1 }
 0x195   : > { %v4959_v49 = vpop.f32.mrf.mxu0  ;;  %v2482_v28 = vadd.f32 %v4925_v36, %v6289_v20 }
 0x196   : > { %v6390_v56 = vadd.f32 %v4959_v49, %v2478_v60  ;;  %v2349_v35 = vpop.f32.mrf.mxu1 }
 0x197   : > { %v2772_v26 = vpop.f32.mrf.mxu0  ;;  %v2480_v42 = vadd.f32 %v2349_v35, %v6295_v51 }
 0x198   : > { %v6393_v33 = vadd.f32 %v2772_v26, %v2476_v31  ;;  %v4926_v44 = vpop.f32.mrf.mxu1 }
 0x199   : > { %v4960_v10 = vpop.f32.mrf.mxu0  ;;  %v2483_v47 = vadd.f32 %v4926_v44, %v6298_v54 }
 0x19a   : > { %v6396_v17 = vadd.f32 %v4960_v10, %v2479_v46  ;;  %v2352_v15 = vpop.f32.mrf.mxu1 }
 0x19b   : > { %v2775_v3 = vpop.f32.mrf.mxu0  ;;  %v2481_v11 = vadd.f32 %v2352_v15, %v6302_v62 }
 0x19c   : > { %v6399_v12 = vadd.f32 %v2775_v3, %v2477_v13  ;;  %v4929_v20 = vpop.f32.mrf.mxu1 }
 0x19d   : > { %v4963_v43 = vpop.f32.mrf.mxu0  ;;  %v2486_v1 = vadd.f32 %v4929_v20, %v6306_v14 }
 0x19e   : > { %v6402_v27 = vadd.f32 %v4963_v43, %v2482_v28  ;;  %v2365_v51 = vpop.f32.mrf.mxu1 }
 0x19f   : > { %v2788_v32 = vpop.f32.mrf.mxu0  ;;  %v2484_v50 = vadd.f32 %v2365_v51, %v6309_v7 }
 0x1a0   : > { %v6405_v5 = vadd.f32 %v2788_v32, %v2480_v42  ;;  %v4930_v54 = vpop.f32.mrf.mxu1 }
 0x1a1   : > { %v4964_v9 = vpop.f32.mrf.mxu0  ;;  %v2487_v41 = vadd.f32 %v4930_v54, %v6312_v57 }
 0x1a2   : > { %v6408_v60 = vadd.f32 %v4964_v9, %v2483_v47  ;;  %v2368_v62 = vpop.f32.mrf.mxu1 }
 0x1a3   : > { %v2791_v38 = vpop.f32.mrf.mxu0  ;;  %v2485_v52 = vadd.f32 %v2368_v62, %v6315_v37 }
 0x1a4   : > { %v6411_v31 = vadd.f32 %v2791_v38, %v2481_v11  ;;  %v4933_v14 = vpop.f32.mrf.mxu1 }
 0x1a5   : > { %v4967_v23 = vpop.f32.mrf.mxu0  ;;  %v2490_v49 = vadd.f32 %v4933_v14, %v6318_v63 }
 0x1a6   : > { %v6414_v46 = vadd.f32 %v4967_v23, %v2486_v1  ;;  %v2381_v7 = vpop.f32.mrf.mxu1 }
 0x1a7   : > { %v2804_v53 = vpop.f32.mrf.mxu0  ;;  %v2488_v26 = vadd.f32 %v2381_v7, %v6321_v18 }
 0x1a8   : > { %v6417_v13 = vadd.f32 %v2804_v53, %v2484_v50  ;;  %v4934_v57 = vpop.f32.mrf.mxu1 }
 0x1a9   : > { %v4968_v36 = vpop.f32.mrf.mxu0  ;;  %v2491_v10 = vadd.f32 %v4934_v57, %v6324_v39 }
 0x1aa   : > { %v6420_v28 = vadd.f32 %v4968_v36, %v2487_v41  ;;  %v2384_v37 = vpop.f32.mrf.mxu1 }
 0x1ab   : > { %v2807_v35 = vpop.f32.mrf.mxu0  ;;  %v2489_v3 = vadd.f32 %v2384_v37, %v6327_v55 }
 0x1ac   : > { %v6423_v42 = vadd.f32 %v2807_v35, %v2485_v52  ;;  %v4937_v63 = vpop.f32.mrf.mxu1 }
 0x1ad   : > { %v4971_v44 = vpop.f32.mrf.mxu0  ;;  %v2494_v43 = vadd.f32 %v4937_v63, %v6330_v30 }
 0x1ae   : > { %v6426_v47 = vadd.f32 %v4971_v44, %v2490_v49  ;;  %v2397_v18 = vpop.f32.mrf.mxu1 }
 0x1af   : > { %v2820_v15 = vpop.f32.mrf.mxu0  ;;  %v2492_v32 = vadd.f32 %v2397_v18, %v6333_v40 }
 0x1b0   : > { %v6429_v11 = vadd.f32 %v2820_v15, %v2488_v26  ;;  %v4938_v39 = vpop.f32.mrf.mxu1 }
 0x1b1   : > { %v4972_v20 = vpop.f32.mrf.mxu0  ;;  %v2495_v9 = vadd.f32 %v4938_v39, %v6336_v21 }
 0x1b2   : > { %v6432_v1 = vadd.f32 %v4972_v20, %v2491_v10  ;;  %v2400_v55 = vpop.f32.mrf.mxu1 }
 0x1b3   : > { %v2823_v51 = vpop.f32.mrf.mxu0  ;;  %v2493_v38 = vadd.f32 %v2400_v55, %v6339_v2 }
 0x1b4   : > { %v6435_v50 = vadd.f32 %v2823_v51, %v2489_v3  ;;  %v4941_v30 = vpop.f32.mrf.mxu1 }
 0x1b5   : > { %v4975_v54 = vpop.f32.mrf.mxu0  ;;  %v2498_v23 = vadd.f32 %v4941_v30, %v6342_v58 }
 0x1b6   : > { %v6438_v41 = vadd.f32 %v4975_v54, %v2494_v43  ;;  %v2413_v40 = vpop.f32.mrf.mxu1 }
 0x1b7   : > { %v2836_v62 = vpop.f32.mrf.mxu0  ;;  %v2496_v53 = vadd.f32 %v2413_v40, %v6345_v8 }
 0x1b8   : > { %v6441_v52 = vadd.f32 %v2836_v62, %v2492_v32  ;;  %v4942_v21 = vpop.f32.mrf.mxu1 }
 0x1b9   : > { %v4976_v14 = vpop.f32.mrf.mxu0  ;;  %v2499_v36 = vadd.f32 %v4942_v21, %v6348_v4 }
 0x1ba   : > { %v6444_v49 = vadd.f32 %v4976_v14, %v2495_v9  ;;  %v2416_v2 = vpop.f32.mrf.mxu1 }
 0x1bb   : > { %v2839_v7 = vpop.f32.mrf.mxu0  ;;  %v2497_v35 = vadd.f32 %v2416_v2, %v6351_v0 }
 0x1bc   : > { %v6447_v26 = vadd.f32 %v2839_v7, %v2493_v38  ;;  %v4945_v58 = vpop.f32.mrf.mxu1 }
 0x1bd   : > { %v4979_v57 = vpop.f32.mrf.mxu0  ;;  %v2502_v44 = vadd.f32 %v4945_v58, %v6354_v59 }
 0x1be   : > { %v6450_v10 = vadd.f32 %v4979_v57, %v2498_v23  ;;  %v2429_v8 = vpop.f32.mrf.mxu1 }
 0x1bf   : > { %v2852_v37 = vpop.f32.mrf.mxu0  ;;  %v2500_v15 = vadd.f32 %v2429_v8, %v6357_v48 }
 0x1c0   : > { %v6453_v3 = vadd.f32 %v2852_v37, %v2496_v53  ;;  %v4946_v4 = vpop.f32.mrf.mxu1 }
 0x1c1   : > { %v4980_v63 = vpop.f32.mrf.mxu0  ;;  %v2503_v20 = vadd.f32 %v4946_v4, %v6360_v19 }
 0x1c2   : > { %v6456_v43 = vadd.f32 %v4980_v63, %v2499_v36  ;;  %v2432_v0 = vpop.f32.mrf.mxu1 }
 0x1c3   : > { %v2855_v18 = vpop.f32.mrf.mxu0  ;;  %v2501_v51 = vadd.f32 %v2432_v0, %v6363_v29 }
 0x1c4   : > { %v6459_v32 = vadd.f32 %v2855_v18, %v2497_v35  ;;  %v4949_v59 = vpop.f32.mrf.mxu1 }
 0x1c5   : > { %v4983_v39 = vpop.f32.mrf.mxu0  ;;  %v2506_v54 = vadd.f32 %v4949_v59, %v6366_v16 }
 0x1c6   : > { %v6462_v9 = vadd.f32 %v4983_v39, %v2502_v44  ;;  %v2445_v48 = vpop.f32.mrf.mxu1 }
 0x1c7   : > { %v2868_v55 = vpop.f32.mrf.mxu0  ;;  %v2504_v62 = vadd.f32 %v2445_v48, %v6369_v25 }
 0x1c8   : > { %v6465_v38 = vadd.f32 %v2868_v55, %v2500_v15  ;;  %v4950_v19 = vpop.f32.mrf.mxu1 }
 0x1c9   : > { %v4984_v30 = vpop.f32.mrf.mxu0  ;;  %v2507_v14 = vadd.f32 %v4950_v19, %v6372_v61 }
 0x1ca   : > { %v6468_v23 = vadd.f32 %v4984_v30, %v2503_v20  ;;  %v2448_v29 = vpop.f32.mrf.mxu1 }
 0x1cb   : > { %v2871_v40 = vpop.f32.mrf.mxu0  ;;  %v2505_v7 = vadd.f32 %v2448_v29, %v6375_v6 }
 0x1cc   : > { %v6471_v53 = vadd.f32 %v2871_v40, %v2501_v51  ;;  %v4953_v16 = vpop.f32.mrf.mxu1 }
 0x1cd   : > { %v4987_v21 = vpop.f32.mrf.mxu0  ;;  %v2510_v57 = vadd.f32 %v4953_v16, %v6378_v22  ;;  %v6506_v16 = vld [vmem:[%s6648_s3] ss:$0 sm:$0xff] }
 0x1ce   : > { %v6474_v36 = vadd.f32 %v4987_v21, %v2506_v54  ;;  %v2461_v25 = vpop.f32.mrf.mxu1 }
 0x1cf   : > { %v2884_v2 = vpop.f32.mrf.mxu0  ;;  %v2508_v37 = vadd.f32 %v2461_v25, %v6381_v24 }
 0x1d0   : > { %v6477_v35 = vadd.f32 %v2884_v2, %v2504_v62  ;;  %v4954_v61 = vpop.f32.mrf.mxu1 }
 0x1d1   : > { %v4988_v58 = vpop.f32.mrf.mxu0  ;;  %v2511_v63 = vadd.f32 %v4954_v61, %v6384_v45 }
 0x1d2   : > { %v6480_v44 = vadd.f32 %v4988_v58, %v2507_v14  ;;  %v2464_v6 = vpop.f32.mrf.mxu1 }
 0x1d3   : > { %v2887_v8 = vpop.f32.mrf.mxu0  ;;  %v2509_v18 = vadd.f32 %v2464_v6, %v6387_v34  ;;  %v6498_v34 = vld [vmem:[%s6647_s2] ss:$0 sm:$0xff] }
 0x1d4   : > { %v6483_v15 = vadd.f32 %v2887_v8, %v2505_v7  ;;  %v4997_v22 = vpop.f32.mrf.mxu1 }
 0x1d5   : > { %v4991_v4 = vpop.f32.mrf.mxu0  ;;  %v3364_v45 = vadd.f32 %v4997_v22, %v6390_v56 }
 0x1d6   : > { %v6486_v20 = vadd.f32 %v4991_v4, %v2510_v57  ;;  %v3219_v51 = vpop.f32.mrf.mxu1 }
 0x1d7   : > { %v2900_v0 = vpop.f32.mrf.mxu0  ;;  %v3362_v19 = vadd.f32 %v3219_v51, %v6393_v33 }
 0x1d8   : > { %v6488_v39 = vadd.f32 %v2900_v0, %v2508_v37  ;;  %v4998_v55 = vpop.f32.mrf.mxu1 }
 0x1d9   : > { %v4992_v24 = vpop.f32.mrf.mxu0  ;;  %v3365_v21 = vadd.f32 %v4998_v55, %v6396_v17 }
 0x1da   : > { %v6490_v59 = vadd.f32 %v4992_v24, %v2511_v63  ;;  %v3222_v30 = vpop.f32.mrf.mxu1 }
 0x1db   : > { %v2903_v54 = vpop.f32.mrf.mxu0  ;;  %v3363_v58 = vadd.f32 %v3222_v30, %v6399_v12 }
 0x1dc   : > { %v6493_v48 = vadd.f32 %v2903_v54, %v2509_v18  ;;  %v5001_v14 = vpop.f32.mrf.mxu1 }
 0x1dd   : > { %v5035_v62 = vpop.f32.mrf.mxu0  ;;  %v3368_v8 = vadd.f32 %v5001_v14, %v6402_v27 }
 0x1de   : > { %v3678_v40 = vadd.f32 %v5035_v62, %v3364_v45  ;;  %v3235_v2 = vpop.f32.mrf.mxu1 }
 0x1df   : > { %v3533_v29 = vpop.f32.mrf.mxu0  ;;  %v3366_v22 = vadd.f32 %v3235_v2, %v6405_v5 }
 0x1e0   : > { %v3721_v7 = vmul.f32 %v6498_v34, %v3678_v40  ;;  %v3676_v56 = vadd.f32 %v3533_v29, %v3362_v19  ;;  %v5002_v37 = vpop.f32.mrf.mxu1 }
 0x1e1   : > { %v5036_v57 = vpop.f32.mrf.mxu0  ;;  %v3369_v62 = vadd.f32 %v5002_v37, %v6408_v60 }
 0x1e2   : > { %v3679_v25 = vadd.f32 %v5036_v57, %v3365_v21  ;;  %v3719_v33 = vmul.f32 %v6498_v34, %v3676_v56  ;;  %v3764_v17 = vadd.f32 %v6506_v16, %v3721_v7  ;;  %v3238_v6 = vpop.f32.mrf.mxu1 }
 0x1e3   : > { %v3536_v61 = vpop.f32.mrf.mxu0  ;;  %v3367_v21 = vadd.f32 %v3238_v6, %v6411_v31 }
 0x1e4   : > { %v3722_v63 = vmul.f32 %v6498_v34, %v3679_v25  ;;  %v3677_v4 = vadd.f32 %v3536_v61, %v3363_v58  ;;  %v3762_v12 = vadd.f32 %v6506_v16, %v3719_v33  ;;  %v5005_v55 = vpop.f32.mrf.mxu1  ;;  %v3800_v27 = vmax.f32 %v3764_v17, 0.0 }
 0x1e5   : > { %v5039_v18 = vpop.f32.mrf.mxu0  ;;  %v3372_v58 = vadd.f32 %v5005_v55, %v6414_v46 }
 0x1e6   : > { %v3765_v0 = vadd.f32 %v6506_v16, %v3722_v63  ;;  %v3682_v51 = vadd.f32 %v5039_v18, %v3368_v8  ;;  %v3720_v24 = vmul.f32 %v6498_v34, %v3677_v4  ;;  %v3251_v40 = vpop.f32.mrf.mxu1  ;;  %v3798_v56 = vmax.f32 %v3762_v12, 0.0 }
 0x1e7   : > { %v3549_v54 = vpop.f32.mrf.mxu0  ;;  %v3370_v31 = vadd.f32 %v3251_v40, %v6417_v13 }
 0x1e8   : > { %v3801_v45 = vmax.f32 %v3765_v0, 0.0  ;;  %v3680_v30 = vadd.f32 %v3549_v54, %v3366_v22  ;;  %v3763_v5 = vadd.f32 %v6506_v16, %v3720_v24  ;;  %v3725_v19 = vmul.f32 %v6498_v34, %v3682_v51  ;;  %v5006_v60 = vpop.f32.mrf.mxu1 }
 0x1e9   : > { %v5040_v14 = vpop.f32.mrf.mxu0  ;;  %v3373_v55 = vadd.f32 %v5006_v60, %v6420_v28 }
 0x1ea   : > { %v4457_v29 = vpack.c.bf16 %v3801_v45, %v3800_v27  ;;  %v3723_v7 = vmul.f32 %v6498_v34, %v3680_v30  ;;  %v3799_v2 = vmax.f32 %v3763_v5, 0.0  ;;  %v3683_v57 = vadd.f32 %v5040_v14, %v3369_v62  ;;  %v3254_v17 = vpop.f32.mrf.mxu1 }
 0x1eb   : > { %v3552_v25 = vpop.f32.mrf.mxu0  ;;  %v3768_v61 = vadd.f32 %v6506_v16, %v3725_v19  ;;  %v3371_v40 = vadd.f32 %v3254_v17, %v6423_v42 }
 0x1ec   : > { %4539 = vst [vmem:[%s6522_s25 + $0x8] sm:$0xff] %v4457_v29   ;;  %v3681_v33 = vadd.f32 %v3552_v25, %v3367_v21  ;;  %v4452_v37 = vpack.c.bf16 %v3799_v2, %v3798_v56  ;;  %v3726_v8 = vmul.f32 %v6498_v34, %v3683_v57  ;;  %v3766_v6 = vadd.f32 %v6506_v16, %v3723_v7  ;;  %v5009_v0 = vpop.f32.mrf.mxu1 }
 0x1ed   : > { %v5043_v63 = vpop.f32.mrf.mxu0  ;;  %v3804_v24 = vmax.f32 %v3768_v61, 0.0  ;;  %v3376_v56 = vadd.f32 %v5009_v0, %v6426_v47 }
 0x1ee   : > { %v3724_v4 = vmul.f32 %v6498_v34, %v3681_v33  ;;  %v3686_v18 = vadd.f32 %v5043_v63, %v3372_v58  ;;  %4453 = vst [vmem:[%s6522_s25] sm:$0xff] %v4452_v37   ;;  %v3769_v22 = vadd.f32 %v6506_v16, %v3726_v8  ;;  %v3267_v27 = vpop.f32.mrf.mxu1  ;;  %v3802_v30 = vmax.f32 %v3766_v6, 0.0 }
 0x1ef   : > { %v3565_v46 = vpop.f32.mrf.mxu0  ;;  %v3374_v58 = vadd.f32 %v3267_v27, %v6429_v11 }
 0x1f0   : > { %v3767_v51 = vadd.f32 %v6506_v16, %v3724_v4  ;;  %v3684_v12 = vadd.f32 %v3565_v46, %v3370_v31  ;;  %v3805_v54 = vmax.f32 %v3769_v22, 0.0  ;;  %v3729_v13 = vmul.f32 %v6498_v34, %v3686_v18  ;;  %v5010_v14 = vpop.f32.mrf.mxu1 }
 0x1f1   : > { %v5044_v45 = vpop.f32.mrf.mxu0  ;;  %v3377_v17 = vadd.f32 %v5010_v14, %v6432_v1 }
 0x1f2   : > { %v3803_v62 = vmax.f32 %v3767_v51, 0.0  ;;  %v3727_v5 = vmul.f32 %v6498_v34, %v3684_v12  ;;  %v4467_v19 = vpack.c.bf16 %v3805_v54, %v3804_v24  ;;  %v3687_v29 = vadd.f32 %v5044_v45, %v3373_v55  ;;  %v3270_v60 = vpop.f32.mrf.mxu1 }
 0x1f3   : > { %v3568_v21 = vpop.f32.mrf.mxu0  ;;  %v3772_v28 = vadd.f32 %v6506_v16, %v3729_v13  ;;  %v3375_v12 = vadd.f32 %v3270_v60, %v6435_v50 }
 0x1f4   : > { %v4462_v7 = vpack.c.bf16 %v3803_v62, %v3802_v30  ;;  %4541 = vst [vmem:[%s6522_s25 + $0x18] sm:$0xff] %v4467_v19   ;;  %v3730_v2 = vmul.f32 %v6498_v34, %v3687_v29  ;;  %v3685_v57 = vadd.f32 %v3568_v21, %v3371_v40  ;;  %v3770_v33 = vadd.f32 %v6506_v16, %v3727_v5  ;;  %v5013_v8 = vpop.f32.mrf.mxu1 }
 0x1f5   : > { %v5047_v25 = vpop.f32.mrf.mxu0  ;;  %v3808_v6 = vmax.f32 %v3772_v28, 0.0  ;;  %v3380_v13 = vadd.f32 %v5013_v8, %v6438_v41 }
 0x1f6   : > { %4540 = vst [vmem:[%s6522_s25 + $0x10] sm:$0xff] %v4462_v7   ;;  %v3690_v42 = vadd.f32 %v5047_v25, %v3376_v56  ;;  %v3773_v37 = vadd.f32 %v6506_v16, %v3730_v2  ;;  %v3728_v61 = vmul.f32 %v6498_v34, %v3685_v57  ;;  %v3283_v11 = vpop.f32.mrf.mxu1  ;;  %v3806_v0 = vmax.f32 %v3770_v33, 0.0 }
 0x1f7   : > { %v3581_v47 = vpop.f32.mrf.mxu0  ;;  %v3378_v40 = vadd.f32 %v3283_v11, %v6441_v52 }
 0x1f8   : > { %v3733_v63 = vmul.f32 %v6498_v34, %v3690_v42  ;;  %v3688_v31 = vadd.f32 %v3581_v47, %v3374_v58  ;;  %v3809_v4 = vmax.f32 %v3773_v37, 0.0  ;;  %v3771_v18 = vadd.f32 %v6506_v16, %v3728_v61  ;;  %v5014_v1 = vpop.f32.mrf.mxu1 }
 0x1f9   : > { %v5048_v22 = vpop.f32.mrf.mxu0  ;;  %v3381_v60 = vadd.f32 %v5014_v1, %v6444_v49 }
 0x1fa   : > { %v3691_v46 = vadd.f32 %v5048_v22, %v3377_v17  ;;  %v4477_v51 = vpack.c.bf16 %v3809_v4, %v3808_v6  ;;  %v3807_v24 = vmax.f32 %v3771_v18, 0.0  ;;  %v3731_v55 = vmul.f32 %v6498_v34, %v3688_v31  ;;  %v3286_v62 = vpop.f32.mrf.mxu1 }
 0x1fb   : > { %v3584_v54 = vpop.f32.mrf.mxu0  ;;  %v3776_v27 = vadd.f32 %v6506_v16, %v3733_v63  ;;  %v3379_v42 = vadd.f32 %v3286_v62, %v6447_v26 }
 0x1fc   : > { %v3734_v45 = vmul.f32 %v6498_v34, %v3691_v46  ;;  %4543 = vst [vmem:[%s6522_s25 + $0x28] sm:$0xff] %v4477_v51   ;;  %v4472_v30 = vpack.c.bf16 %v3807_v24, %v3806_v0  ;;  %v3689_v5 = vadd.f32 %v3584_v54, %v3375_v12  ;;  %v3774_v29 = vadd.f32 %v6506_v16, %v3731_v55  ;;  %v5017_v41 = vpop.f32.mrf.mxu1 }
 0x1fd   : > { %v5051_v19 = vpop.f32.mrf.mxu0  ;;  %v3812_v56 = vmax.f32 %v3776_v27, 0.0  ;;  %v3384_v49 = vadd.f32 %v5017_v41, %v6450_v10 }
 0x1fe   : > { %v3777_v50 = vadd.f32 %v6506_v16, %v3734_v45  ;;  %v3694_v14 = vadd.f32 %v5051_v19, %v3380_v13  ;;  %4542 = vst [vmem:[%s6522_s25 + $0x20] sm:$0xff] %v4472_v30   ;;  %v3732_v21 = vmul.f32 %v6498_v34, %v3689_v5  ;;  %v3299_v25 = vpop.f32.mrf.mxu1  ;;  %v3810_v61 = vmax.f32 %v3774_v29, 0.0 }
 0x1ff   : > { %v3597_v7 = vpop.f32.mrf.mxu0  ;;  %v3382_v26 = vadd.f32 %v3299_v25, %v6453_v3 }
 0x200   : > { %v3813_v28 = vmax.f32 %v3777_v50, 0.0  ;;  %v3692_v2 = vadd.f32 %v3597_v7, %v3378_v40  ;;  %v3775_v57 = vadd.f32 %v6506_v16, %v3732_v21  ;;  %v3737_v52 = vmul.f32 %v6498_v34, %v3694_v14  ;;  %v5018_v47 = vpop.f32.mrf.mxu1 }
 0x201   : > { %v5052_v58 = vpop.f32.mrf.mxu0  ;;  %v3385_v13 = vadd.f32 %v5018_v47, %v6456_v43 }
 0x202   : > { %v4487_v33 = vpack.c.bf16 %v3813_v28, %v3812_v56  ;;  %v3735_v37 = vmul.f32 %v6498_v34, %v3692_v2  ;;  %v3811_v8 = vmax.f32 %v3775_v57, 0.0  ;;  %v3695_v17 = vadd.f32 %v5052_v58, %v3381_v60  ;;  %v3302_v11 = vpop.f32.mrf.mxu1 }
 0x203   : > { %v3600_v63 = vpop.f32.mrf.mxu0  ;;  %v3780_v4 = vadd.f32 %v6506_v16, %v3737_v52  ;;  %v3383_v50 = vadd.f32 %v3302_v11, %v6459_v32 }
 0x204   : > { %4545 = vst [vmem:[%s6522_s25 + $0x38] sm:$0xff] %v4487_v33   ;;  %v3693_v31 = vadd.f32 %v3600_v63, %v3379_v42  ;;  %v4482_v6 = vpack.c.bf16 %v3811_v8, %v3810_v61  ;;  %v3738_v18 = vmul.f32 %v6498_v34, %v3695_v17  ;;  %v3778_v0 = vadd.f32 %v6506_v16, %v3735_v37  ;;  %v5021_v24 = vpop.f32.mrf.mxu1 }
 0x205   : > { %v5055_v22 = vpop.f32.mrf.mxu0  ;;  %v3816_v54 = vmax.f32 %v3780_v4, 0.0  ;;  %v3388_v7 = vadd.f32 %v5021_v24, %v6462_v9 }
 0x206   : > { %v3736_v46 = vmul.f32 %v6498_v34, %v3693_v31  ;;  %v3698_v51 = vadd.f32 %v5055_v22, %v3384_v49  ;;  %4544 = vst [vmem:[%s6522_s25 + $0x30] sm:$0xff] %v4482_v6   ;;  %v3781_v12 = vadd.f32 %v6506_v16, %v3738_v18  ;;  %v3315_v45 = vpop.f32.mrf.mxu1  ;;  %v3814_v62 = vmax.f32 %v3778_v0, 0.0 }
 0x207   : > { %v3613_v10 = vpop.f32.mrf.mxu0  ;;  %v3386_v57 = vadd.f32 %v3315_v45, %v6465_v38 }
 0x208   : > { %v3779_v55 = vadd.f32 %v6506_v16, %v3736_v46  ;;  %v3696_v1 = vadd.f32 %v3613_v10, %v3382_v26  ;;  %v3817_v27 = vmax.f32 %v3781_v12, 0.0  ;;  %v3741_v3 = vmul.f32 %v6498_v34, %v3698_v51  ;;  %v5022_v14 = vpop.f32.mrf.mxu1 }
 0x209   : > { %v5056_v30 = vpop.f32.mrf.mxu0  ;;  %v3389_v42 = vadd.f32 %v5022_v14, %v6468_v23 }
 0x20a   : > { %v3815_v5 = vmax.f32 %v3779_v55, 0.0  ;;  %v3739_v19 = vmul.f32 %v6498_v34, %v3696_v1  ;;  %v4497_v40 = vpack.c.bf16 %v3817_v27, %v3816_v54  ;;  %v3699_v29 = vadd.f32 %v5056_v30, %v3385_v13  ;;  %v3318_v28 = vpop.f32.mrf.mxu1 }
 0x20b   : > { %v3616_v21 = vpop.f32.mrf.mxu0  ;;  %v3784_v43 = vadd.f32 %v6506_v16, %v3741_v3  ;;  %v3387_v4 = vadd.f32 %v3318_v28, %v6471_v53 }
 0x20c   : > { %v4492_v41 = vpack.c.bf16 %v3815_v5, %v3814_v62  ;;  %4547 = vst [vmem:[%s6522_s25 + $0x48] sm:$0xff] %v4497_v40   ;;  %v3742_v56 = vmul.f32 %v6498_v34, %v3699_v29  ;;  %v3697_v2 = vadd.f32 %v3616_v21, %v3383_v50  ;;  %v3782_v52 = vadd.f32 %v6506_v16, %v3739_v19  ;;  %v5025_v33 = vpop.f32.mrf.mxu1 }
 0x20d   : > { %v5059_v60 = vpop.f32.mrf.mxu0  ;;  %v3820_v8 = vmax.f32 %v3784_v43, 0.0  ;;  %v3392_v26 = vadd.f32 %v5025_v33, %v6474_v36 }
 0x20e   : > { %4546 = vst [vmem:[%s6522_s25 + $0x40] sm:$0xff] %v4492_v41   ;;  %v3702_v32 = vadd.f32 %v5059_v60, %v3388_v7  ;;  %v3785_v25 = vadd.f32 %v6506_v16, %v3742_v56  ;;  %v3740_v58 = vmul.f32 %v6498_v34, %v3697_v2  ;;  %v3331_v38 = vpop.f32.mrf.mxu1  ;;  %v3818_v49 = vmax.f32 %v3782_v52, 0.0 }
 0x20f   : > { %v3629_v9 = vpop.f32.mrf.mxu0  ;;  %v3390_v55 = vadd.f32 %v3331_v38, %v6477_v35 }
 0x210   : > { %v3745_v37 = vmul.f32 %v6498_v34, %v3702_v32  ;;  %v3700_v61 = vadd.f32 %v3629_v9, %v3386_v57  ;;  %v3821_v47 = vmax.f32 %v3785_v25, 0.0  ;;  %v3783_v17 = vadd.f32 %v6506_v16, %v3740_v58  ;;  %v5026_v23 = vpop.f32.mrf.mxu1 }
 0x211   : > { %v5060_v63 = vpop.f32.mrf.mxu0  ;;  %v3393_v62 = vadd.f32 %v5026_v23, %v6480_v44 }
 0x212   : > { %v3703_v31 = vadd.f32 %v5060_v63, %v3389_v42  ;;  %v4507_v6 = vpack.c.bf16 %v3821_v47, %v3820_v8  ;;  %v3819_v18 = vmax.f32 %v3783_v17, 0.0  ;;  %v3743_v11 = vmul.f32 %v6498_v34, %v3700_v61  ;;  %v3334_v12 = vpop.f32.mrf.mxu1 }
 0x213   : > { %v3632_v22 = vpop.f32.mrf.mxu0  ;;  %v3788_v0 = vadd.f32 %v6506_v16, %v3745_v37  ;;  %v3391_v14 = vadd.f32 %v3334_v12, %v6483_v15 }
 0x214   : > { %v3746_v46 = vmul.f32 %v6498_v34, %v3703_v31  ;;  %4549 = vst [vmem:[%s6522_s25 + $0x58] sm:$0xff] %v4507_v6   ;;  %v4502_v51 = vpack.c.bf16 %v3819_v18, %v3818_v49  ;;  %v3701_v24 = vadd.f32 %v3632_v22, %v3387_v4  ;;  %v3786_v54 = vadd.f32 %v6506_v16, %v3743_v11  ;;  %v5029_v36 = vpop.f32.mrf.mxu1 }
 0x215   : > { %v5063_v10 = vpop.f32.mrf.mxu0  ;;  %v3824_v3 = vmax.f32 %v3788_v0, 0.0  ;;  %v3396_v56 = vadd.f32 %v5029_v36, %v6486_v20 }
 0x216   : > { %v3789_v53 = vadd.f32 %v6506_v16, %v3746_v46  ;;  %v3706_v1 = vadd.f32 %v5063_v10, %v3392_v26  ;;  %4548 = vst [vmem:[%s6522_s25 + $0x50] sm:$0xff] %v4502_v51   ;;  %v3744_v13 = vmul.f32 %v6498_v34, %v3701_v24  ;;  %v3347_v19 = vpop.f32.mrf.mxu1  ;;  %v3822_v21 = vmax.f32 %v3786_v54, 0.0 }
 0x217   : > { %v3645_v27 = vpop.f32.mrf.mxu0  ;;  %v3394_v15 = vadd.f32 %v3347_v19, %v6488_v39 }
 0x218   : > { %v3825_v45 = vmax.f32 %v3789_v53, 0.0  ;;  %v3704_v30 = vadd.f32 %v3645_v27, %v3390_v55  ;;  %v3787_v5 = vadd.f32 %v6506_v16, %v3744_v13  ;;  %v3749_v35 = vmul.f32 %v6498_v34, %v3706_v1  ;;  %v5030_v44 = vpop.f32.mrf.mxu1 }
 0x219   : > { %v5064_v40 = vpop.f32.mrf.mxu0  ;;  %v3397_v20 = vadd.f32 %v5030_v44, %v6490_v59 }
 0x21a   : > { %v4517_v50 = vpack.c.bf16 %v3825_v45, %v3824_v3  ;;  %v3747_v29 = vmul.f32 %v6498_v34, %v3704_v30  ;;  %v3823_v41 = vmax.f32 %v3787_v5, 0.0  ;;  %v3707_v7 = vadd.f32 %v5064_v40, %v3393_v62  ;;  %v3350_v42 = vpop.f32.mrf.mxu1 }
 0x21b   : > { %v3648_v43 = vpop.f32.mrf.mxu0  ;;  %v3792_v60 = vadd.f32 %v6506_v16, %v3749_v35  ;;  %v3395_v6 = vadd.f32 %v3350_v42, %v6493_v48 }
 0x21c   : > { %4551 = vst [vmem:[%s6522_s25 + $0x68] sm:$0xff] %v4517_v50   ;;  %v3705_v28 = vadd.f32 %v3648_v43, %v3391_v14  ;;  %v4512_v2 = vpack.c.bf16 %v3823_v41, %v3822_v21  ;;  %v3750_v57 = vmul.f32 %v6498_v34, %v3707_v7  ;;  %v3790_v32 = vadd.f32 %v6506_v16, %v3747_v29 }
 0x21d   : > { %v5067_v52 = vpop.f32.mrf.mxu0  ;;  %v3828_v39 = vmax.f32 %v3792_v60, 0.0 }
 0x21e   : > { %v3748_v25 = vmul.f32 %v6498_v34, %v3705_v28  ;;  %v3710_v58 = vadd.f32 %v5067_v52, %v3396_v56  ;;  %4550 = vst [vmem:[%s6522_s25 + $0x60] sm:$0xff] %v4512_v2   ;;  %v3793_v33 = vadd.f32 %v6506_v16, %v3750_v57  ;;  %v3826_v38 = vmax.f32 %v3790_v32, 0.0 }
 0x21f   : > { %v3661_v9 = vpop.f32.mrf.mxu0 }
 0x220   : > { %v3791_v37 = vadd.f32 %v6506_v16, %v3748_v25  ;;  %v3753_v61 = vmul.f32 %v6498_v34, %v3710_v58  ;;  %v3708_v8 = vadd.f32 %v3661_v9, %v3394_v15  ;;  %v3829_v47 = vmax.f32 %v3793_v33, 0.0 }
 0x221   : > { %v5068_v17 = vpop.f32.mrf.mxu0 }
 0x222   : > { %v3827_v63 = vmax.f32 %v3791_v37, 0.0  ;;  %v3711_v49 = vadd.f32 %v5068_v17, %v3397_v20  ;;  %v4527_v31 = vpack.c.bf16 %v3829_v47, %v3828_v39  ;;  %v3751_v4 = vmul.f32 %v6498_v34, %v3708_v8 }
 0x223   : > { %v3664_v59 = vpop.f32.mrf.mxu0  ;;  %v3796_v11 = vadd.f32 %v6506_v16, %v3753_v61 }
 0x224   : > { %v4522_v18 = vpack.c.bf16 %v3827_v63, %v3826_v38  ;;  %v3754_v23 = vmul.f32 %v6498_v34, %v3711_v49  ;;  %4553 = vst [vmem:[%s6522_s25 + $0x78] sm:$0xff] %v4527_v31   ;;  %v3709_v22 = vadd.f32 %v3664_v59, %v3395_v6  ;;  %v3794_v0 = vadd.f32 %v6506_v16, %v3751_v4 }
 0x225   : > { %v3832_v48 = vmax.f32 %v3796_v11, 0.0 }
 0x226   : > { %4552 = vst [vmem:[%s6522_s25 + $0x70] sm:$0xff] %v4522_v18   ;;  %v3797_v26 = vadd.f32 %v6506_v16, %v3754_v23  ;;  %v3752_v46 = vmul.f32 %v6498_v34, %v3709_v22  ;;  %v3830_v10 = vmax.f32 %v3794_v0, 0.0 }
 0x228   : > { %v3833_v51 = vmax.f32 %v3797_v26, 0.0  ;;  %v3795_v12 = vadd.f32 %v6506_v16, %v3752_v46 }
 0x22a   : > { %v4537_v24 = vpack.c.bf16 %v3833_v51, %v3832_v48  ;;  %v3831_v55 = vmax.f32 %v3795_v12, 0.0 }
 0x22c   : > { %4555 = vst [vmem:[%s6522_s25 + $0x88] sm:$0xff] %v4537_v24   ;;  %v4532_v53 = vpack.c.bf16 %v3831_v55, %v3830_v10 }
 0x22e   : > { %4554 = vst [vmem:[%s6522_s25 + $0x80] sm:$0xff] %v4532_v53  }
 0x22f PF: > { %s14_s17 = sadd.s32 1, %s5191_s17   ;;  %s6688_s15 = smov %s5187_s16 }
 0x230   : > { %p11_p5 = scmp.ge.s32.totalorder %s14_s17, 4   ;;  %s6689_s16 = smov %s6691_s18 }
 0x232   :  { %13 = sbr.rel (!%p11_p5) target bundleno = 2 (0x2), region = 83 }

// kernel: res_block_forward.3
= control target key start
LH: loop header
LB: loop body
LE: loop exit
PB: predicated region body
PF: predicated region fallthrough
CT: control target
= control target key end

     0   :  { %s5049_s18 = smov 0   ;;  %s5051_s19 = smov 0   ;;  %s6539_s0 = inlined_call_operand.vmem [shape: bf16[2,326,8], index: 0, kind: input, shape index: {}]   ;;  %s6540_s1 = inlined_call_operand.vmem [shape: bf16[9,8,128], index: 1, kind: input, shape index: {}]   ;;  %s6541_s2 = inlined_call_operand.vmem [shape: f32[1,128], index: 2, kind: input, shape index: {}]   ;;  %s6542_s3 = inlined_call_operand.vmem [shape: f32[1,128], index: 3, kind: input, shape index: {}]   ;;  %s6543_s4 = inlined_call_operand.vmem [shape: f32[2,288,128], index: 4, kind: input, shape index: {}]   ;;  %s6544_s5 = inlined_call_operand.vmem [shape: f32[2,288,128], index: 5, kind: output, shape index: {}]  }
   0x1   :  { %s5053_s20 = smov 0  }
   0x2 LB: > { %s27_s21 = sadd.s32 1, %s5013_s19  ;;  %p4142_p0 = scmp.ge.s32.totalorder %s5017_s20, 1  ;;  %s5017_s20 = sphi %s5053_s20, %s15_s20   ;;  %s5013_s19 = sphi %s5051_s19, %s6584_s19   ;;  %s5009_s18 = sphi %s5049_s18, %s6583_s18  }
   0x3   : > { %p29_p1 = scmp.ge.s32.totalorder %s27_s21, 2  ;;  %p241_p2 = scmp.lt.s32.totalorder %s5017_s20, 3 }
   0x5   : > { %s6586_s21 = smov (%p29_p1, %s27_s21), 0  ;;  %p242_p3 = pnand %p4142_p0, %p241_p2 }
   0x7   : > { %245 = sbr.rel (%p242_p3) target bundleno = 559 (0x22f), region = 40 }
   0xc   : > { %v4146_v0 = vld [vmem:[%s6540_s1 + $0x4] sm:$0xf]  ;;  %vm659_vm0 = vcmask 1043456   ;;  %p290_p4 = scmp.lt.s32.totalorder %s5009_s18, 1  ;;  %v4202_v2 = vld [vmem:[%s6540_s1 + $0x8] sm:$0xf] }
   0xd   : > { %4897 = vmatprep.subr.msk.bf16.mxu0 %vm659_vm0, %v4146_v0  ;;  %4898 = vmatprep.subr.msk.bf16.mxu1 %vm659_vm0, %v4146_v0  ;;  %v661_v1 = vsel %vm659_vm0, %v4146_v0, 0  ;;  %v358_v3 = vld [vmem:[%s6540_s1] sm:$0xf]  ;;  %vm455_vm1 = vsmask.f32 7424  ;;  %vm604_vm2 = vcmask 64512  }
   0xe   : > { %4554 = vmatpush3.bf16.msra.mxu0 %v661_v1  ;;  %4896 = vmatpush3.bf16.msra.mxu1 %v661_v1  ;;  %s6588_s18 = smov (!%p290_p4, %s5009_s18), 1  ;;  %v1155_v8 = vsel %vm659_vm0, %v4202_v2, 0  ;;  %v877_v16 = vsel %vm659_vm0, %v358_v3, 0  ;;  %v5132_v33 = vld [vmem:[%s6540_s1 + $0x10] sm:$0xf]  ;;  %vm1062_vm3 = vcmask 1046528  }
   0xf   : > { %4900 = vmatprep.subr.msk.bf16.mxu0 %vm659_vm0, %v4202_v2  ;;  %4899 = vmatprep.subr.msk.bf16.mxu1 %vm659_vm0, %v358_v3  ;;  %s4907_s28 = smul.u32 164, %s6588_s18  ;;  %v5152_v45 = vld [vmem:[%s6540_s1 + $0xc] sm:$0xf]  ;;  %vm2262_vm4 = vcmask 1045504   ;;  %vm1815_vm5 = vsmask.f32 6400 }
  0x10   : > { %vm3462_vm6 = vcmask 1044480   ;;  %vm3015_vm7 = vsmask.f32 5376  ;;  %s4908_s23 = smul.u32 288, %s6588_s18 }
  0x11   : > { %s5087_s6 = scalar_lea.vmem %s6539_s0, %s4907_s28 }
  0x12   : > { %v322_v4 = vld [vmem:[%s5087_s6] sm:$0xf]  ;;  %v5091_v5 = vld [vmem:[%s5087_s6 + $0x4] sm:$0xf]  ;;  %v5097_v7 = vld [vmem:[%s5087_s6 + $0x8] sm:$0xff]   ;;  %s6338_s28 = scalar_lea.vmem %s6543_s4, %s4908_s23  ;;  %s6360_s8 = scalar_lea.vmem %s6544_s5, %s4908_s23 }
  0x13   : > { %v5094_v6 = vcombine.low %v322_v4, %v5091_v5  ;;  %v464_v11 = vshll.u32 %v5097_v7, 16  ;;  %v468_v12 = vshrl.u32 %v5097_v7, 16  ;;  %v5105_v13 = vld [vmem:[%s5087_s6 + $0x50] sm:$0xff]   ;;  %v5108_v14 = vld [vmem:[%s5087_s6 + $0x58] sm:$0xff]   ;;  %v5120_v24 = vld [vmem:[%s5087_s6 + $0x60] sm:$0xff]  }
  0x14   : > { %v5111_v15 = vld [vmem:[%s5087_s6 + $0x10] sm:$0xff]   ;;  %v536_v19 = vshll.u32 %v5105_v13, 16  ;;  %v540_v20 = vshrl.u32 %v5105_v13, 16  ;;  %v544_v21 = vshll.u32 %v5108_v14, 16  ;;  %v548_v22 = vshrl.u32 %v5108_v14, 16  ;;  %v5125_v28 = vld [vmem:[%s5087_s6 + $0x18] sm:$0xff]  }
  0x15   : > { %v457_v9 = vshrl.u32 %v5094_v6, 16  ;;  %v459_v10 = vshll.u32 %v5094_v6, 16  ;;  %v466_v18 = vrot.slane %v464_v11, 1  ;;  %v472_v23 = vshll.u32 %v5111_v15, 16  ;;  %v5138_v37 = vld [vmem:[%s5087_s6 + $0x68] sm:$0xff]   ;;  %v5142_v39 = vld [vmem:[%s5087_s6 + $0x20] sm:$0xff]  }
  0x16   : > { %v5122_v27 = vrot.slane %v536_v19, 1  ;;  %v546_v29 = vrot.slane %v544_v21, 1  ;;  %v552_v31 = vshll.u32 %v5120_v24, 16  ;;  %v476_v32 = vshrl.u32 %v5111_v15, 16  ;;  %v5147_v44 = vld [vmem:[%s5087_s6 + $0x70] sm:$0xff]   ;;  %v5159_v50 = vld [vmem:[%s5087_s6 + $0x28] sm:$0xff]  }
  0x17   : > { %v461_v17 = vrot.slane %v459_v10, 1  ;;  %v470_v26 = vor.u32 %v468_v12, %v466_v18  ;;  %v474_v30 = vrot.slane %v472_v23, 1  ;;  %v480_v36 = vshll.u32 %v5125_v28, 16  ;;  %v5174_v62 = vld [vmem:[%s5087_s6 + $0x78] sm:$0xff]   ;;  %v5184_v10 = vld [vmem:[%s5087_s6 + $0x30] sm:$0xff]   ;;  %v5187_v11 = vld [vmem:[%s5087_s6 + $0x80] sm:$0xff]  }
  0x18   : > { %v542_v35 = vor.u32 %v540_v20, %v5122_v27  ;;  %v556_v38 = vshrl.u32 %v5120_v24, 16  ;;  %v550_v40 = vor.u32 %v548_v22, %v546_v29  ;;  %v554_v42 = vrot.slane %v552_v31, 1  ;;  %v5196_v23 = vld [vmem:[%s5087_s6 + $0x38] sm:$0xff]  }
  0x19   : > { %v462_v25 = vor.u32 %v461_v17, %v457_v9  ;;  %v475_v41 = vsel %vm455_vm1, %v470_v26, %v474_v30  ;;  %v478_v43 = vor.u32 %v476_v32, %v474_v30  ;;  %v482_v47 = vrot.slane %v480_v36, 1  ;;  %v5201_v26 = vld [vmem:[%s5087_s6 + $0x88] sm:$0xff]  }
  0x1a   : > { %v547_v46 = vsel %vm455_vm1, %v542_v35, %v546_v29  ;;  %v560_v48 = vshll.u32 %v5138_v37, 16  ;;  %v484_v49 = vshrl.u32 %v5125_v28, 16  ;;  %v555_v51 = vsel %vm455_vm1, %v550_v40, %v554_v42  ;;  %v5213_v40 = vld [vmem:[%s5087_s6 + $0x48] sm:$0xff]  }
  0x1b   : > { %v467_v34 = vsel %vm455_vm1, %v462_v25, %v466_v18  ;;  %4575 = vmatprep.mubr.msk.bf16.mxu1 %vm604_vm2, %v547_v46  ;;  %v558_v52 = vor.u32 %v556_v38, %v554_v42  ;;  %v488_v53 = vshll.u32 %v5142_v39, 16  ;;  %v564_v54 = vshrl.u32 %v5138_v37, 16  ;;  %v5210_v38 = vld [vmem:[%s5087_s6 + $0x40] sm:$0xff]  }
  0x1c   : > { %4555 = vmatprep.mubr.msk.bf16.mxu0 %vm604_vm2, %v467_v34  ;;  %4576 = vmatmul.mubr.msk.bf16.vlgmr.msra.gmra.mxu1 %vm604_vm2, %v555_v51  ;;  %v483_v55 = vsel %vm455_vm1, %v478_v43, %v482_v47  ;;  %v562_v56 = vrot.slane %v560_v48, 1  ;;  %v486_v57 = vor.u32 %v484_v49, %v482_v47  ;;  %v568_v58 = vshll.u32 %v5147_v44, 16  ;;  %v4950_v43 = vld [vmem:[%s5087_s6 + $0x90] ss:$0 sps:$4 sm:$0x11]  }
  0x1d   : > { %4556 = vmatmul.mubr.msk.bf16.vlgmr.msra.gmra.mxu0 %vm604_vm2, %v475_v41  ;;  %4592 = vmatpush3.bf16.msra.mxu1 %v877_v16  ;;  %v490_v59 = vrot.slane %v488_v53, 1  ;;  %v492_v60 = vshrl.u32 %v5142_v39, 16  ;;  %v496_v61 = vshll.u32 %v5159_v50, 16  ;;  %v572_v2 = vshrl.u32 %v5147_v44, 16 }
  0x1e   : > { %4630 = vmatpush3.bf16.msra.mxu0 %v1155_v8  ;;  %4559 = vmatprep.mubr.msk.bf16.mxu0 %vm604_vm2, %v483_v55  ;;  %v563_v63 = vsel %vm455_vm1, %v558_v52, %v562_v56  ;;  %v566_v0 = vor.u32 %v564_v54, %v562_v56  ;;  %v570_v1 = vrot.slane %v568_v58, 1  ;;  %v576_v9 = vshll.u32 %v5174_v62, 16 }
  0x1f   : > { %4902 = vmatprep.subr.msk.bf16.mxu0 %vm659_vm0, %v5132_v33  ;;  %4901 = vmatprep.subr.msk.bf16.mxu1 %vm659_vm0, %v5152_v45  ;;  %v491_v3 = vsel %vm455_vm1, %v486_v57, %v490_v59  ;;  %v494_v4 = vor.u32 %v492_v60, %v490_v59  ;;  %v498_v8 = vrot.slane %v496_v61, 1  ;;  %v500_v17 = vshrl.u32 %v5159_v50, 16 }
  0x20   : > { %4579 = vmatprep.mubr.msk.bf16.mxu1 %vm604_vm2, %v563_v63  ;;  %v571_v12 = vsel %vm455_vm1, %v566_v0, %v570_v1  ;;  %v574_v16 = vor.u32 %v572_v2, %v570_v1  ;;  %v580_v18 = vshrl.u32 %v5174_v62, 16  ;;  %v578_v20 = vrot.slane %v576_v9, 1  ;;  %v1056_v63 = vld [vmem:[%s5087_s6] sm:$0xe] }
  0x21   : > { %v499_v19 = vsel %vm455_vm1, %v494_v4, %v498_v8  ;;  %v504_v21 = vshll.u32 %v5184_v10, 16  ;;  %v584_v22 = vshll.u32 %v5187_v11, 16  ;;  %v508_v25 = vshrl.u32 %v5184_v10, 16 }
  0x22   : > { %v579_v29 = vsel %vm455_vm1, %v574_v16, %v578_v20  ;;  %v502_v30 = vor.u32 %v500_v17, %v498_v8  ;;  %v512_v34 = vshll.u32 %v5196_v23, 16  ;;  %v588_v35 = vshrl.u32 %v5187_v11, 16 }
  0x23   : > { %v506_v31 = vrot.slane %v504_v21, 1  ;;  %v586_v32 = vrot.slane %v584_v22, 1  ;;  %v592_v36 = vshll.u32 %v5201_v26, 16  ;;  %v582_v41 = vor.u32 %v580_v18, %v578_v20 }
  0x24   : > { %4580 = vmatmul.mubr.msk.bf16.gmra.mxu1 %vm604_vm2, %v571_v12  ;;  %v514_v46 = vrot.slane %v512_v34, 1  ;;  %v520_v49 = vshll.u32 %v5210_v38, 16  ;;  %v516_v52 = vshrl.u32 %v5196_v23, 16  ;;  %v524_v54 = vshrl.u32 %v5210_v38, 16 }
  0x25   : > { %4560 = vmatmul.mubr.msk.bf16.gmra.mxu0 %vm604_vm2, %v491_v3  ;;  %4583 = vmatprep.mubr.msk.bf16.mxu1 %vm604_vm2, %v579_v29  ;;  %v510_v42 = vor.u32 %v508_v25, %v506_v31  ;;  %v590_v47 = vor.u32 %v588_v35, %v586_v32  ;;  %v594_v48 = vrot.slane %v592_v36, 1  ;;  %v507_v51 = vsel %vm455_vm1, %v502_v30, %v506_v31 }
  0x26   : > { %4563 = vmatprep.mubr.msk.bf16.mxu0 %vm604_vm2, %v499_v19  ;;  %v528_v55 = vshll.u32 %v5213_v40, 16  ;;  %v587_v56 = vsel %vm455_vm1, %v582_v41, %v586_v32  ;;  %v596_v57 = vshrl.u32 %v5201_v26, 16  ;;  %v600_v58 = vshll.u32 %v4950_v43, 16 }
  0x27   : > { %v515_v53 = vsel %vm455_vm1, %v510_v42, %v514_v46  ;;  %v595_v59 = vsel %vm455_vm1, %v590_v47, %v594_v48  ;;  %v522_v60 = vrot.slane %v520_v49, 1  ;;  %v518_v61 = vor.u32 %v516_v52, %v514_v46  ;;  %v5312_v46 = vld [vmem:[%s5087_s6 + $0x10] sm:$0xff]   ;;  %v5317_v49 = vld [vmem:[%s5087_s6 + $0x18] sm:$0xff]  }
  0x28   : > { %v530_v1 = vrot.slane %v528_v55, 1  ;;  %v598_v2 = vor.u32 %v596_v57, %v594_v48  ;;  %v602_v3 = vrot.slane %v600_v58, 1  ;;  %v532_v8 = vshrl.u32 %v5213_v40, 16  ;;  %v5330_v55 = vld [vmem:[%s5087_s6 + $0x30] sm:$0xff]  }
  0x29   : > { %v526_v0 = vor.u32 %v524_v54, %v522_v60  ;;  %v523_v4 = vsel %vm455_vm1, %v518_v61, %v522_v60  ;;  %v4203_v12 = vcombine.low %v1056_v63, %v5091_v5  ;;  %v1096_v17 = vrot.slane %v5201_v26, 1  ;;  %v5345_v61 = vld [vmem:[%s5087_s6 + $0x38] sm:$0xff]  }
  0x2a   : > { %v603_v16 = vsel %vm455_vm1, %v598_v2, %v602_v3  ;;  %v534_v18 = vor.u32 %v532_v8, %v530_v1  ;;  %v1098_v19 = vrot.slane %v4950_v43, 1  ;;  %v1064_v21 = vrot.slane %v5097_v7, 1  ;;  %v2256_v43 = vld [vmem:[%s5087_s6 + $0x8] sm:$0xc]  ;;  %v5355_v2 = vld [vmem:[%s5087_s6 + $0x40] sm:$0xff]  }
  0x2b   : > { %v531_v9 = vsel %vm455_vm1, %v526_v0, %v530_v1  ;;  %v1063_v20 = vrot.slane %v4203_v12, 1  ;;  %v1594_v29 = vsel %vm659_vm0, %v5152_v45, 0  ;;  %v1066_v30 = vrot.slane %v5111_v15, 1  ;;  %v5363_v8 = vld [vmem:[%s5087_s6 + $0x48] sm:$0xff]  }
  0x2c   : > { %4584 = vmatmul.mubr.msk.bf16.gmra.mxu1 %vm604_vm2, %v587_v56  ;;  %v5246_v5 = vsel %vm1062_vm3, %v1096_v17, %v1098_v19  ;;  %v539_v22 = vsel %vm455_vm1, %v534_v18, %v5122_v27  ;;  %v1068_v27 = vrot.slane %v5125_v28, 1  ;;  %v2041_v31 = vsel %vm659_vm0, %v5132_v33, 0 }
  0x2d   : > { %4564 = vmatmul.mubr.msk.bf16.gmra.mxu0 %vm604_vm2, %v507_v51  ;;  %4587 = vmatprep.mubr.msk.bf16.mxu1 %vm604_vm2, %v595_v59  ;;  %v1065_v25 = vsel %vm1062_vm3, %v1063_v20, %v1064_v21  ;;  %v1067_v45 = vsel %vm1062_vm3, %v1064_v21, %v1066_v30  ;;  %v1072_v34 = vrot.slane %v5159_v50, 1  ;;  %v1076_v36 = vrot.slane %v5196_v23, 1  ;;  %v5321_v51 = vld [vmem:[%s5087_s6 + $0x20] sm:$0xff]  }
  0x2e   : > { %4567 = vmatprep.mubr.msk.bf16.mxu0 %vm604_vm2, %v515_v53  ;;  %v1069_v32 = vsel %vm1062_vm3, %v1066_v30, %v1068_v27  ;;  %v1078_v42 = vrot.slane %v5210_v38, 1  ;;  %v2264_v53 = vrot.slane %v5312_v46, 2  ;;  %v2266_v54 = vrot.slane %v5317_v49, 2  ;;  %v5393_v30 = vld [vmem:[%s5087_s6 + $0x58] sm:$0xff]  }
  0x2f   : > { %v2268_v57 = vrot.slane %v5321_v51, 2  ;;  %v1082_v58 = vrot.slane %v5105_v13, 1  ;;  %v1084_v59 = vrot.slane %v5108_v14, 1  ;;  %v2272_v1 = vrot.slane %v5330_v55, 2 }
  0x30   : > { %v1079_v48 = vsel %vm1062_vm3, %v1076_v36, %v1078_v42  ;;  %v5340_v60 = vsel %vm2262_vm4, %v2264_v53, %v2266_v54  ;;  %v2278_v18 = vrot.slane %v5363_v8, 2  ;;  %v1086_v20 = vrot.slane %v5120_v24, 1 }
  0x31   : > { %v5348_v63 = vsel %vm2262_vm4, %v2266_v54, %v2268_v57 }
  0x34   : > { %4588 = vmatmul.mubr.msk.bf16.gmra.mxu1 %vm604_vm2, %v603_v16  ;;  %v2276_v16 = vrot.slane %v5355_v2, 2 }
  0x35   : > { %4568 = vmatmul.mubr.msk.bf16.gmra.mxu0 %vm604_vm2, %v523_v4  ;;  %4593 = vmatprep.mubr.msk.bf16.mxu1 %vm604_vm2, %v5094_v6  ;;  %v5259_v6 = vld [vmem:[%s6540_s1 + $0x14] sm:$0xf]  ;;  %v2274_v4 = vrot.slane %v5345_v61, 2 }
  0x36   : > { %4571 = vmatprep.mubr.msk.bf16.mxu0 %vm604_vm2, %v531_v9  ;;  %v5381_v21 = vsel %vm2262_vm4, %v2276_v16, %v2278_v18 }
  0x37   : > { %v5370_v12 = vsel %vm2262_vm4, %v2272_v1, %v2274_v4  ;;  %v5376_v19 = vsel %vm2262_vm4, %v2274_v4, %v2276_v16 }
  0x3c   : > { %4594 = vmatmul.mubr.msk.bf16.vlgmr.msra.gmra.mxu1 %vm604_vm2, %v5097_v7  ;;  %v5275_v7 = vld [vmem:[%s6540_s1 + $0x18] sm:$0xf] }
  0x3d   : > { %4572 = vmatmul.mubr.msk.bf16.gmra.mxu0 %vm604_vm2, %v539_v22  ;;  %4668 = vmatpush3.bf16.msra.mxu1 %v1594_v29  ;;  %v1088_v22 = vrot.slane %v5138_v37, 1  ;;  %v1087_v29 = vsel %vm1062_vm3, %v1084_v59, %v1086_v20 }
  0x3e   : > { %4631 = vmatprep.mubr.msk.bf16.mxu0 %vm604_vm2, %v1065_v25  ;;  %4597 = vmatprep.mubr.msk.bf16.mxu1 %vm604_vm2, %v5111_v15  ;;  %v1070_v15 = vrot.slane %v5142_v39, 1  ;;  %v5389_v25 = vld [vmem:[%s5087_s6 + $0x50] sm:$0xff]  }
  0x3f   : > { %4903 = vmatprep.subr.msk.bf16.mxu1 %vm659_vm0, %v5259_v6 }
  0x40   : > { %v1071_v33 = vsel %vm1062_vm3, %v1068_v27, %v1070_v15  ;;  %v1073_v35 = vsel %vm1062_vm3, %v1070_v15, %v1072_v34  ;;  %v1089_v27 = vsel %vm1062_vm3, %v1086_v20, %v1088_v22  ;;  %v1092_v15 = vrot.slane %v5174_v62, 1 }
  0x44   : > { %4598 = vmatmul.mubr.msk.bf16.gmra.mxu1 %vm604_vm2, %v5125_v28  ;;  %v1074_v28 = vrot.slane %v5184_v10, 1 }
  0x45   : > { %4632 = vmatmul.mubr.msk.bf16.vlgmr.msra.gmra.mxu0 %vm604_vm2, %v1067_v45  ;;  %4601 = vmatprep.mubr.msk.bf16.mxu1 %vm604_vm2, %v5142_v39  ;;  %v2280_v45 = vrot.slane %v5389_v25, 2 }
  0x46   : > { %4706 = vmatpush3.bf16.msra.mxu0 %v2041_v31  ;;  %4635 = vmatprep.mubr.msk.bf16.mxu0 %vm604_vm2, %v1069_v32  ;;  %v1075_v39 = vsel %vm1062_vm3, %v1072_v34, %v1074_v28  ;;  %v1077_v41 = vsel %vm1062_vm3, %v1074_v28, %v1076_v36  ;;  %v1370_v34 = vld [vmem:[%s5087_s6 + $0x8] sm:$0xe] }
  0x47   : > { %4904 = vmatprep.subr.msk.bf16.mxu0 %vm659_vm0, %v5275_v7  ;;  %v5400_v31 = vsel %vm2262_vm4, %v2278_v18, %v2280_v45  ;;  %v5418_v28 = vld [vmem:[%s5087_s6 + $0x68] sm:$0xff]  }
  0x4c   : > { %4602 = vmatmul.mubr.msk.bf16.gmra.mxu1 %vm604_vm2, %v5159_v50  ;;  %v1080_v50 = vrot.slane %v5213_v40, 1 }
  0x4d   : > { %4636 = vmatmul.mubr.msk.bf16.gmra.mxu0 %vm604_vm2, %v1071_v33  ;;  %4605 = vmatprep.mubr.msk.bf16.mxu1 %vm604_vm2, %v5184_v10  ;;  %v5309_v10 = vld [vmem:[%s5087_s6 + $0xc] sm:$0xf]  ;;  %v5414_v33 = vld [vmem:[%s5087_s6 + $0x60] sm:$0xff]  }
  0x4e   : > { %4639 = vmatprep.mubr.msk.bf16.mxu0 %vm604_vm2, %v1073_v35  ;;  %v4281_v47 = vcombine.low %v2256_v43, %v5309_v10 }
  0x50   : > { %v2263_v52 = vrot.slane %v4281_v47, 2  ;;  %v1825_v47 = vshrl.u32 %v5312_v46, 16 }
  0x52   : > { %v5333_v56 = vsel %vm2262_vm4, %v2263_v52, %v2264_v53  ;;  %v1503_v52 = vrot.slane %v5312_v46, 1  ;;  %v5441_v53 = vld [vmem:[%s5087_s6 + $0x70] sm:$0xff]  }
  0x53   : > { %v2288_v4 = vrot.slane %v5441_v53, 2 }
  0x54   : > { %4606 = vmatmul.mubr.msk.bf16.gmra.mxu1 %vm604_vm2, %v5196_v23  ;;  %v1081_v23 = vsel %vm1062_vm3, %v1078_v42, %v1080_v50  ;;  %v1094_v42 = vrot.slane %v5187_v11, 1 }
  0x55   : > { %4640 = vmatmul.mubr.msk.bf16.gmra.mxu0 %vm604_vm2, %v1075_v39  ;;  %4609 = vmatprep.mubr.msk.bf16.mxu1 %vm604_vm2, %v5210_v38  ;;  %v5325_v38 = vld [vmem:[%s5087_s6 + $0x28] sm:$0xff]   ;;  %v2284_v39 = vrot.slane %v5414_v33, 2 }
  0x56   : > { %4643 = vmatprep.mubr.msk.bf16.mxu0 %vm604_vm2, %v1077_v41  ;;  %v2270_v0 = vrot.slane %v5325_v38, 2  ;;  %v4223_v41 = vcombine.low %v1370_v34, %v5309_v10  ;;  %v1095_v54 = vsel %vm1062_vm3, %v1092_v15, %v1094_v42  ;;  %v5474_v34 = vld [vmem:[%s5087_s6 + $0x88] sm:$0xff]  }
  0x58   : > { %v5358_v3 = vsel %vm2262_vm4, %v2268_v57, %v2270_v0  ;;  %v5366_v9 = vsel %vm2262_vm4, %v2270_v0, %v2272_v1  ;;  %v1817_v43 = vshrl.u32 %v4223_v41, 16  ;;  %v1820_v10 = vshll.u32 %v4223_v41, 16 }
  0x59   : > { %v1097_v57 = vsel %vm1062_vm3, %v1094_v42, %v1096_v17  ;;  %v1827_v0 = vrot.slane %v1825_v47, 1  ;;  %v1834_v17 = vshrl.u32 %v5317_v49, 16  ;;  %v1855_v47 = vshll.u32 %v5325_v38, 16 }
  0x5c   : > { %4610 = vmatmul.mubr.msk.bf16.gmra.mxu1 %vm604_vm2, %v5213_v40  ;;  %v1083_v40 = vsel %vm1062_vm3, %v1080_v50, %v1082_v58 }
  0x5d   : > { %4644 = vmatmul.mubr.msk.bf16.gmra.mxu0 %vm604_vm2, %v1079_v48  ;;  %4613 = vmatprep.mubr.msk.bf16.mxu1 %vm604_vm2, %v5105_v13  ;;  %v1085_v13 = vsel %vm1062_vm3, %v1082_v58, %v1084_v59  ;;  %v1828_v48 = vshll.u32 %v5312_v46, 16  ;;  %v5448_v58 = vld [vmem:[%s5087_s6 + $0x78] sm:$0xff]   ;;  %v1822_v59 = vrot.slane %v1820_v10, 2  ;;  %v1852_v10 = vshrl.u32 %v5325_v38, 16 }
  0x5e   : > { %4647 = vmatprep.mubr.msk.bf16.mxu0 %vm604_vm2, %v1081_v23  ;;  %v1502_v23 = vrot.slane %v4223_v41, 1 }
  0x5f   : > { %v1830_v1 = vrot.slane %v1828_v48, 2 }
  0x60   : > { %v1504_v46 = vsel %vm1062_vm3, %v1502_v23, %v1503_v52  ;;  %v1861_v23 = vshrl.u32 %v5330_v55, 16 }
  0x61   : > { %v1831_v20 = vor.u32 %v1830_v1, %v1827_v0  ;;  %v2794_v0 = vsel %vm659_vm0, %v5275_v7, 0  ;;  %v1854_v1 = vrot.slane %v1852_v10, 1 }
  0x64   : > { %4614 = vmatmul.mubr.msk.bf16.gmra.mxu1 %vm604_vm2, %v5108_v14  ;;  %v2282_v14 = vrot.slane %v5393_v30, 2 }
  0x65   : > { %4648 = vmatmul.mubr.msk.bf16.gmra.mxu0 %vm604_vm2, %v1083_v40  ;;  %4617 = vmatprep.mubr.msk.bf16.mxu1 %vm604_vm2, %v5120_v24  ;;  %v1090_v24 = vrot.slane %v5147_v44, 1 }
  0x66   : > { %4651 = vmatprep.mubr.msk.bf16.mxu0 %vm604_vm2, %v1085_v13  ;;  %v5405_v32 = vsel %vm2262_vm4, %v2280_v45, %v2282_v14  ;;  %v1837_v13 = vshll.u32 %v5317_v49, 16  ;;  %v1507_v45 = vrot.slane %v5321_v51, 1 }
  0x67   : > { %v1091_v35 = vsel %vm1062_vm3, %v1088_v22, %v1090_v24  ;;  %v1093_v36 = vsel %vm1062_vm3, %v1090_v24, %v1092_v15  ;;  %v1843_v22 = vshrl.u32 %v5321_v51, 16  ;;  %v1836_v24 = vrot.slane %v1834_v17, 1 }
  0x68   : > { %v1839_v15 = vrot.slane %v1837_v13, 2  ;;  %v1863_v17 = vrot.slane %v1861_v23, 1 }
  0x6c   : > { %4618 = vmatmul.mubr.msk.bf16.gmra.mxu1 %vm604_vm2, %v5138_v37  ;;  %v2286_v37 = vrot.slane %v5418_v28, 2 }
  0x6d   : > { %4652 = vmatmul.mubr.msk.bf16.gmra.mxu0 %vm604_vm2, %v1087_v29  ;;  %4621 = vmatprep.mubr.msk.bf16.mxu1 %vm604_vm2, %v5147_v44  ;;  %v5426_v44 = vsel %vm2262_vm4, %v2282_v14, %v2284_v39  ;;  %v1846_v29 = vshll.u32 %v5321_v51, 16  ;;  %v5471_v14 = vld [vmem:[%s5087_s6 + $0x80] sm:$0xff]  }
  0x6e   : > { %4655 = vmatprep.mubr.msk.bf16.mxu0 %vm604_vm2, %v1089_v27  ;;  %v5431_v50 = vsel %vm2262_vm4, %v2284_v39, %v2286_v37  ;;  %v5455_v40 = vsel %vm2262_vm4, %v2286_v37, %v2288_v4  ;;  %v1505_v27 = vrot.slane %v5317_v49, 1  ;;  %v2292_v39 = vrot.slane %v5471_v14, 2 }
  0x6f   : > { %v2294_v37 = vrot.slane %v5474_v34, 2  ;;  %v2355_v49 = vsel %vm659_vm0, %v5259_v6, 0 }
  0x70   : > { %v1506_v41 = vsel %vm1062_vm3, %v1503_v52, %v1505_v27  ;;  %v1508_v51 = vsel %vm1062_vm3, %v1505_v27, %v1507_v45  ;;  %v1864_v52 = vshll.u32 %v5330_v55, 16  ;;  %v1870_v27 = vshrl.u32 %v5345_v61, 16 }
  0x71   : > { %v5497_v6 = vsel %vm2262_vm4, %v2292_v39, %v2294_v37 }
  0x74   : > { %4622 = vmatmul.mubr.msk.bf16.gmra.mxu1 %vm604_vm2, %v5174_v62  ;;  %v1819_v62 = vrot.slane %v1817_v43, 1  ;;  %v1840_v43 = vor.u32 %v1839_v15, %v1836_v24 }
  0x75   : > { %4656 = vmatmul.mubr.msk.bf16.gmra.mxu0 %vm604_vm2, %v1091_v35  ;;  %4625 = vmatprep.mubr.msk.bf16.mxu1 %vm604_vm2, %v5187_v11  ;;  %v2290_v11 = vrot.slane %v5448_v58, 2  ;;  %v1845_v35 = vrot.slane %v1843_v22, 1 }
  0x76   : > { %4659 = vmatprep.mubr.msk.bf16.mxu0 %vm604_vm2, %v1093_v36  ;;  %v1823_v18 = vor.u32 %v1822_v59, %v1819_v62  ;;  %v1848_v36 = vrot.slane %v1846_v29, 2  ;;  %v5506_v62 = vld [vmem:[%s5087_s6 + $0x90] sm:$0xff]   ;;  %v1841_v59 = vsel %vm1815_vm5, %v1831_v20, %v1840_v43 }
  0x77   : > { %v5461_v16 = vsel %vm2262_vm4, %v2288_v4, %v2290_v11  ;;  %v5486_v42 = vsel %vm2262_vm4, %v2290_v11, %v2292_v39  ;;  %v1857_v4 = vrot.slane %v1855_v47, 2  ;;  %v5514_v11 = vld [vmem:[%s5087_s6 + $0x98] ss:$0 sps:$4 sm:$0x33]   ;;  %v1515_v39 = vrot.slane %v5355_v2, 1 }
  0x78   : > { %v1849_v48 = vor.u32 %v1848_v36, %v1845_v35  ;;  %v1882_v35 = vshll.u32 %v5355_v2, 16  ;;  %v1513_v36 = vrot.slane %v5345_v61, 1 }
  0x79   : > { %v1858_v29 = vor.u32 %v1857_v4, %v1854_v1  ;;  %v5559_v1 = vld [vmem:[%s5087_s6 + $0x14] sm:$0xf]  ;;  %v3456_v4 = vld [vmem:[%s5087_s6 + $0x10] sm:$0x8] }
  0x7a   : > { %v1884_v10 = vrot.slane %v1882_v35, 2  ;;  %v1516_v23 = vsel %vm1062_vm3, %v1513_v36, %v1515_v39 }
  0x7c   : > { %4626 = vmatmul.mubr.msk.bf16.gmra.mxu1 %vm604_vm2, %v5201_v26  ;;  %v1832_v26 = vsel %vm1815_vm5, %v1823_v18, %v1831_v20  ;;  %v5522_v18 = vld [vmem:[%s6540_s1 + $0x20] sm:$0xf]  ;;  %v2298_v20 = vrot.slane %v5514_v11, 2 }
  0x7d   : > { %4660 = vmatmul.mubr.msk.bf16.gmra.mxu0 %vm604_vm2, %v1095_v54  ;;  %4669 = vmatprep.mubr.msk.bf16.mxu1 %vm604_vm2, %v1504_v46  ;;  %v1509_v54 = vrot.slane %v5325_v38, 1  ;;  %v1850_v46 = vsel %vm1815_vm5, %v1840_v43, %v1849_v48  ;;  %v1866_v38 = vrot.slane %v1864_v52, 2 }
  0x7e   : > { %4663 = vmatprep.mubr.msk.bf16.mxu0 %vm604_vm2, %v1097_v57  ;;  %v1511_v57 = vrot.slane %v5330_v55, 1  ;;  %v2296_v55 = vrot.slane %v5506_v62, 2 }
  0x7f   : > { %v1510_v13 = vsel %vm1062_vm3, %v1507_v45, %v1509_v54  ;;  %v1873_v45 = vshll.u32 %v5345_v61, 16  ;;  %v1867_v15 = vor.u32 %v1866_v38, %v1863_v17 }
  0x80   : > { %v1512_v7 = vsel %vm1062_vm3, %v1509_v54, %v1511_v57  ;;  %v5528_v22 = vsel %vm2262_vm4, %v2294_v37, %v2296_v55  ;;  %v5534_v24 = vsel %vm2262_vm4, %v2296_v55, %v2298_v20  ;;  %v1872_v37 = vrot.slane %v1870_v27, 1  ;;  %v5564_v55 = vld [vmem:[%s5087_s6 + $0x18] sm:$0xff]   ;;  %v5569_v27 = vld [vmem:[%s5087_s6 + $0x20] sm:$0xff]  }
  0x81   : > { %v1514_v47 = vsel %vm1062_vm3, %v1511_v57, %v1513_v36  ;;  %v1897_v54 = vshrl.u32 %v5389_v25, 16  ;;  %v1900_v57 = vshll.u32 %v5389_v25, 16  ;;  %v1906_v36 = vshrl.u32 %v5393_v30, 16 }
  0x84   : > { %4670 = vmatmul.mubr.msk.bf16.vlgmr.msra.gmra.mxu1 %vm604_vm2, %v1506_v41  ;;  %v1859_v41 = vsel %vm1815_vm5, %v1849_v48, %v1858_v29  ;;  %v1891_v48 = vshll.u32 %v5363_v8, 16 }
  0x85   : > { %4664 = vmatmul.mubr.msk.bf16.gmra.mxu0 %vm604_vm2, %v5246_v5  ;;  %v5494_v5 = vld [vmem:[%s6540_s1 + $0x1c] sm:$0xf]  ;;  %4744 = vmatpush3.bf16.msra.mxu1 %v2355_v49  ;;  %v1875_v49 = vrot.slane %v1873_v45, 2  ;;  %v3464_v45 = vrot.slane %v5564_v55, 3 }
  0x86   : > { %4707 = vmatprep.mubr.msk.bf16.mxu0 %vm604_vm2, %v1832_v26  ;;  %4673 = vmatprep.mubr.msk.bf16.mxu1 %vm604_vm2, %v1508_v51  ;;  %v1879_v26 = vshrl.u32 %v5355_v2, 16  ;;  %v1868_v51 = vsel %vm1815_vm5, %v1858_v29, %v1867_v15  ;;  %v1888_v2 = vshrl.u32 %v5363_v8, 16  ;;  %v1893_v38 = vrot.slane %v1891_v48, 2 }
  0x87   : > { %4905 = vmatprep.subr.msk.bf16.mxu1 %vm659_vm0, %v5494_v5  ;;  %v1876_v61 = vor.u32 %v1875_v49, %v1872_v37  ;;  %v1902_v29 = vrot.slane %v1900_v57, 2  ;;  %v1915_v49 = vshrl.u32 %v5414_v33, 16 }
  0x88   : > { %v1881_v43 = vrot.slane %v1879_v26, 1  ;;  %v1890_v17 = vrot.slane %v1888_v2, 1  ;;  %v6545_v26 = vrot.slane %v5569_v27, 3 }
  0x8a   : > { %v1885_v52 = vor.u32 %v1884_v10, %v1881_v43  ;;  %v1894_v35 = vor.u32 %v1893_v38, %v1890_v17  ;;  %v5588_v43 = vsel %vm3462_vm6, %v3464_v45, %v6545_v26  ;;  %v1521_v10 = vrot.slane %v5393_v30, 1 }
  0x8b   : > { %v1933_v17 = vshrl.u32 %v5441_v53, 16  ;;  %v1936_v38 = vshll.u32 %v5441_v53, 16 }
  0x8c   : > { %4674 = vmatmul.mubr.msk.bf16.gmra.mxu1 %vm604_vm2, %v1510_v13  ;;  %v4359_v13 = vcombine.low %v3456_v4, %v5559_v1  ;;  %v1886_v20 = vsel %vm1815_vm5, %v1876_v61, %v1885_v52 }
  0x8d   : > { %4708 = vmatmul.mubr.msk.bf16.vlgmr.msra.gmra.mxu0 %vm604_vm2, %v1841_v59  ;;  %4677 = vmatprep.mubr.msk.bf16.mxu1 %vm604_vm2, %v1512_v7  ;;  %v1517_v59 = vrot.slane %v5363_v8, 1  ;;  %v1899_v7 = vrot.slane %v1897_v54, 1  ;;  %v1917_v54 = vrot.slane %v1915_v49, 1  ;;  %v1954_v49 = vshll.u32 %v5471_v14, 16 }
  0x8e   : > { %4782 = vmatpush3.bf16.msra.mxu0 %v2794_v0  ;;  %4711 = vmatprep.mubr.msk.bf16.mxu0 %vm604_vm2, %v1850_v46  ;;  %v1519_v0 = vrot.slane %v5389_v25, 1  ;;  %v1877_v46 = vsel %vm1815_vm5, %v1867_v15, %v1876_v61  ;;  %v3463_v25 = vrot.slane %v4359_v13, 3  ;;  %v1908_v61 = vrot.slane %v1906_v36, 1 }
  0x8f   : > { %4906 = vmatprep.subr.msk.bf16.mxu0 %vm659_vm0, %v5522_v18  ;;  %v1518_v8 = vsel %vm1062_vm3, %v1515_v39, %v1517_v59  ;;  %v1903_v39 = vor.u32 %v1902_v29, %v1899_v7  ;;  %v1527_v13 = vrot.slane %v5441_v53, 1  ;;  %v1945_v53 = vshll.u32 %v5448_v58, 16 }
  0x90   : > { %v1520_v15 = vsel %vm1062_vm3, %v1517_v59, %v1519_v0  ;;  %v5580_v37 = vsel %vm3462_vm6, %v3463_v25, %v3464_v45  ;;  %v1522_v59 = vsel %vm1062_vm3, %v1519_v0, %v1521_v10  ;;  %v1525_v0 = vrot.slane %v5418_v28, 1 }
  0x91   : > { %v1904_v48 = vsel %vm1815_vm5, %v1894_v35, %v1903_v39  ;;  %v1935_v25 = vrot.slane %v1933_v17, 1  ;;  %v1938_v45 = vrot.slane %v1936_v38, 2  ;;  %v1535_v17 = vrot.slane %v5506_v62, 1 }
  0x94   : > { %4678 = vmatmul.mubr.msk.bf16.gmra.mxu1 %vm604_vm2, %v1514_v47  ;;  %v1523_v47 = vrot.slane %v5414_v33, 1 }
  0x95   : > { %4712 = vmatmul.mubr.msk.bf16.gmra.mxu0 %vm604_vm2, %v1859_v41  ;;  %4681 = vmatprep.mubr.msk.bf16.mxu1 %vm604_vm2, %v1516_v23  ;;  %v1909_v41 = vshll.u32 %v5393_v30, 16  ;;  %v1895_v23 = vsel %vm1815_vm5, %v1885_v52, %v1894_v35  ;;  %v1924_v30 = vshrl.u32 %v5418_v28, 16  ;;  %v1528_v35 = vsel %vm1062_vm3, %v1525_v0, %v1527_v13 }
  0x96   : > { %4715 = vmatprep.mubr.msk.bf16.mxu0 %vm604_vm2, %v1868_v51  ;;  %v1918_v51 = vshll.u32 %v5414_v33, 16  ;;  %v1524_v4 = vsel %vm1062_vm3, %v1521_v10, %v1523_v47  ;;  %v1927_v33 = vshll.u32 %v5418_v28, 16  ;;  %v1942_v28 = vshrl.u32 %v5448_v58, 16 }
  0x97   : > { %v1911_v2 = vrot.slane %v1909_v41, 2  ;;  %v1926_v7 = vrot.slane %v1924_v30, 1  ;;  %v1939_v41 = vor.u32 %v1938_v45, %v1935_v25  ;;  %v1531_v10 = vrot.slane %v5471_v14, 1  ;;  %v4971_v25 = vld [vmem:[%s5087_s6 + $0x98] ss:$0 sps:$4 sm:$0x11]  }
  0x98   : > { %v1920_v57 = vrot.slane %v1918_v51, 2  ;;  %v1929_v29 = vrot.slane %v1927_v33, 2  ;;  %v1529_v51 = vrot.slane %v5448_v58, 1  ;;  %v1960_v58 = vshrl.u32 %v5474_v34, 16 }
  0x99   : > { %v1969_v30 = vshrl.u32 %v5506_v62, 16  ;;  %v1972_v33 = vshll.u32 %v5506_v62, 16  ;;  %v1978_v62 = vshrl.u32 %v5514_v11, 16 }
  0x9a   : > { %v1921_v52 = vor.u32 %v1920_v57, %v1917_v54  ;;  %v1930_v36 = vor.u32 %v1929_v29, %v1926_v7  ;;  %v1956_v54 = vrot.slane %v1954_v49, 2  ;;  %v1530_v57 = vsel %vm1062_vm3, %v1527_v13, %v1529_v51 }
  0x9b   : > { %v1971_v7 = vrot.slane %v1969_v30, 1  ;;  %v1974_v29 = vrot.slane %v1972_v33, 2  ;;  %v5699_v30 = vld [vmem:[%s5087_s6 + $0x48] sm:$0xff]  }
  0x9c   : > { %4682 = vmatmul.mubr.msk.bf16.gmra.mxu1 %vm604_vm2, %v1518_v8 }
  0x9d   : > { %4716 = vmatmul.mubr.msk.bf16.gmra.mxu0 %vm604_vm2, %v1877_v46  ;;  %4685 = vmatprep.mubr.msk.bf16.mxu1 %vm604_vm2, %v1520_v15  ;;  %v1912_v46 = vor.u32 %v1911_v2, %v1908_v61  ;;  %v1526_v15 = vsel %vm1062_vm3, %v1523_v47, %v1525_v0  ;;  %v1931_v47 = vsel %vm1815_vm5, %v1921_v52, %v1930_v36  ;;  %v1947_v61 = vrot.slane %v1945_v53, 2 }
  0x9e   : > { %4719 = vmatprep.mubr.msk.bf16.mxu0 %vm604_vm2, %v1886_v20  ;;  %v1940_v2 = vsel %vm1815_vm5, %v1930_v36, %v1939_v41  ;;  %v1962_v0 = vrot.slane %v1960_v58, 1  ;;  %v1537_v36 = vrot.slane %v4971_v25, 1  ;;  %v5683_v58 = vld [vmem:[%s5087_s6 + $0x38] sm:$0xff]  }
  0x9f   : > { %v1913_v20 = vsel %vm1815_vm5, %v1903_v39, %v1912_v46  ;;  %v1922_v8 = vsel %vm1815_vm5, %v1912_v46, %v1921_v52  ;;  %v1951_v39 = vshrl.u32 %v5471_v14, 16  ;;  %v1963_v14 = vshll.u32 %v5474_v34, 16 }
  0xa0   : > { %v1533_v52 = vrot.slane %v5474_v34, 1 }
  0xa1   : > { %v1965_v13 = vrot.slane %v1963_v14, 2  ;;  %v5695_v14 = vld [vmem:[%s5087_s6 + $0x40] sm:$0xff]  }
  0xa2   : > { %v1536_v45 = vsel %vm1062_vm3, %v1533_v52, %v1535_v17 }
  0xa3   : > { %v1966_v34 = vor.u32 %v1965_v13, %v1962_v0 }
  0xa4   : > { %4686 = vmatmul.mubr.msk.bf16.gmra.mxu1 %vm604_vm2, %v1522_v59  ;;  %v1532_v59 = vsel %vm1062_vm3, %v1529_v51, %v1531_v10 }
  0xa5   : > { %4720 = vmatmul.mubr.msk.bf16.gmra.mxu0 %vm604_vm2, %v1895_v23  ;;  %4689 = vmatprep.mubr.msk.bf16.mxu1 %vm604_vm2, %v1524_v4  ;;  %v1944_v23 = vrot.slane %v1942_v28, 1  ;;  %v2570_v28 = vld [vmem:[%s5087_s6 + $0x10] sm:$0xc] }
  0xa6   : > { %4723 = vmatprep.mubr.msk.bf16.mxu0 %vm604_vm2, %v1904_v48  ;;  %v1953_v48 = vrot.slane %v1951_v39, 1  ;;  %v5650_v51 = vcombine.low %v2570_v28, %v5559_v1 }
  0xa7   : > { %v1948_v4 = vor.u32 %v1947_v61, %v1944_v23  ;;  %v2703_v23 = vrot.slane %v5564_v55, 2 }
  0xa8   : > { %v1957_v46 = vor.u32 %v1956_v54, %v1953_v48  ;;  %v3241_v48 = vsel %vm659_vm0, %v5494_v5, 0  ;;  %v2705_v54 = vrot.slane %v5569_v27, 2  ;;  %v3555_v5 = vsel %vm659_vm0, %v5522_v18, 0 }
  0xa9   : > { %v1949_v38 = vsel %vm1815_vm5, %v1939_v41, %v1948_v4  ;;  %v1980_v41 = vrot.slane %v1978_v62, 1 }
  0xaa   : > { %v1967_v53 = vsel %vm1815_vm5, %v1957_v46, %v1966_v34 }
  0xac   : > { %4690 = vmatmul.mubr.msk.bf16.gmra.mxu1 %vm604_vm2, %v1526_v15  ;;  %v1981_v15 = vshll.u32 %v5514_v11, 16 }
  0xad   : > { %4724 = vmatmul.mubr.msk.bf16.gmra.mxu0 %vm604_vm2, %v1913_v20  ;;  %4693 = vmatprep.mubr.msk.bf16.mxu1 %vm604_vm2, %v1528_v35  ;;  %v1958_v20 = vsel %vm1815_vm5, %v1948_v4, %v1957_v46  ;;  %v1975_v35 = vor.u32 %v1974_v29, %v1971_v7 }
  0xae   : > { %4727 = vmatprep.mubr.msk.bf16.mxu0 %vm604_vm2, %v1922_v8  ;;  %v1534_v8 = vsel %vm1062_vm3, %v1531_v10, %v1533_v52  ;;  %v1983_v39 = vrot.slane %v1981_v15, 2  ;;  %v1538_v10 = vsel %vm1062_vm3, %v1535_v17, %v1537_v36  ;;  %v2715_v17 = vrot.slane %v5699_v30, 2 }
  0xaf   : > { %v1976_v49 = vsel %vm1815_vm5, %v1966_v34, %v1975_v35 }
  0xb0   : > { %v1984_v11 = vor.u32 %v1983_v39, %v1980_v41 }
  0xb2   : > { %v1985_v1 = vsel %vm1815_vm5, %v1975_v35, %v1984_v11 }
  0xb4   : > { %4694 = vmatmul.mubr.msk.bf16.gmra.mxu1 %vm604_vm2, %v1530_v57  ;;  %v2706_v57 = vsel %vm2262_vm4, %v2703_v23, %v2705_v54 }
  0xb5   : > { %4728 = vmatmul.mubr.msk.bf16.gmra.mxu0 %vm604_vm2, %v1931_v47  ;;  %4697 = vmatprep.mubr.msk.bf16.mxu1 %vm604_vm2, %v1532_v59  ;;  %v2702_v47 = vrot.slane %v5650_v51, 2  ;;  %v5677_v59 = vld [vmem:[%s5087_s6 + $0x30] sm:$0xff]  }
  0xb6   : > { %4731 = vmatprep.mubr.msk.bf16.mxu0 %vm604_vm2, %v1940_v2  ;;  %v5663_v2 = vld [vmem:[%s5087_s6 + $0x28] sm:$0xff]  }
  0xb7   : > { %v2704_v61 = vsel %vm2262_vm4, %v2702_v47, %v2703_v23 }
  0xbc   : > { %4698 = vmatmul.mubr.msk.bf16.gmra.mxu1 %vm604_vm2, %v1534_v8  ;;  %v5729_v8 = vld [vmem:[%s5087_s6 + $0x58] sm:$0xff]  }
  0xbd   : > { %4732 = vmatmul.mubr.msk.bf16.gmra.mxu0 %vm604_vm2, %v1949_v38  ;;  %4701 = vmatprep.mubr.msk.bf16.mxu1 %vm604_vm2, %v1536_v45  ;;  %v2719_v15 = vrot.slane %v5729_v8, 2 }
  0xbe   : > { %4735 = vmatprep.mubr.msk.bf16.mxu0 %vm604_vm2, %v1958_v20  ;;  %v5721_v20 = vld [vmem:[%s5087_s6 + $0x50] sm:$0xff]  }
  0xbf   : > { %v2717_v45 = vrot.slane %v5721_v20, 2 }
  0xc1   : > { %v2718_v28 = vsel %vm2262_vm4, %v2715_v17, %v2717_v45 }
  0xc4   : > { %4702 = vmatmul.mubr.msk.bf16.gmra.mxu1 %vm604_vm2, %v1538_v10 }
  0xc5   : > { %4736 = vmatmul.mubr.msk.bf16.gmra.mxu0 %vm604_vm2, %v1967_v53  ;;  %4745 = vmatprep.mubr.msk.bf16.mxu1 %vm604_vm2, %v5333_v56  ;;  %v2707_v56 = vrot.slane %v5663_v2, 2  ;;  %v5753_v53 = vld [vmem:[%s5087_s6 + $0x60] sm:$0xff]  }
  0xc6   : > { %4739 = vmatprep.mubr.msk.bf16.mxu0 %vm604_vm2, %v1976_v49  ;;  %v5761_v49 = vld [vmem:[%s5087_s6 + $0x68] sm:$0xff]   ;;  %v2721_v11 = vrot.slane %v5753_v53, 2 }
  0xc7   : > { %v2708_v4 = vsel %vm2262_vm4, %v2705_v54, %v2707_v56 }
  0xc8   : > { %v2722_v54 = vsel %vm2262_vm4, %v2719_v15, %v2721_v11 }
  0xcc   : > { %4746 = vmatmul.mubr.msk.bf16.vlgmr.msra.gmra.mxu1 %vm604_vm2, %v5340_v60  ;;  %v2709_v60 = vrot.slane %v5677_v59, 2 }
  0xcd   : > { %4740 = vmatmul.mubr.msk.bf16.gmra.mxu0 %vm604_vm2, %v1985_v1  ;;  %4820 = vmatpush3.bf16.msra.mxu1 %v3241_v48  ;;  %v2723_v1 = vrot.slane %v5761_v49, 2 }
  0xce   : > { %4783 = vmatprep.mubr.msk.bf16.mxu0 %vm604_vm2, %v2704_v61  ;;  %4749 = vmatprep.mubr.msk.bf16.mxu1 %vm604_vm2, %v5348_v63  ;;  %v2711_v63 = vrot.slane %v5683_v58, 2  ;;  %v2710_v18 = vsel %vm2262_vm4, %v2707_v56, %v2709_v60  ;;  %v5785_v56 = vld [vmem:[%s5087_s6 + $0x70] sm:$0xff]  }
  0xd0   : > { %v2712_v46 = vsel %vm2262_vm4, %v2709_v60, %v2711_v63 }
  0xd4   : > { %4750 = vmatmul.mubr.msk.bf16.gmra.mxu1 %vm604_vm2, %v5358_v3  ;;  %v2713_v3 = vrot.slane %v5695_v14, 2 }
  0xd5   : > { %4784 = vmatmul.mubr.msk.bf16.vlgmr.msra.gmra.mxu0 %vm604_vm2, %v2706_v57  ;;  %4753 = vmatprep.mubr.msk.bf16.mxu1 %vm604_vm2, %v5366_v9 }
  0xd6   : > { %4858 = vmatpush3.bf16.msra.mxu0 %v3555_v5  ;;  %4787 = vmatprep.mubr.msk.bf16.mxu0 %vm604_vm2, %v2708_v4  ;;  %v2714_v13 = vsel %vm2262_vm4, %v2711_v63, %v2713_v3  ;;  %v5793_v4 = vld [vmem:[%s5087_s6 + $0x78] sm:$0xff]   ;;  %v2725_v63 = vrot.slane %v5785_v56, 2 }
  0xdc   : > { %v5706_v52 = vpop.f32.mrf.mxu1  ;;  %4754 = vmatmul.mubr.msk.bf16.gmra.mxu1 %vm604_vm2, %v5370_v12  ;;  %v2716_v12 = vsel %vm2262_vm4, %v2713_v3, %v2715_v17  ;;  %v2727_v3 = vrot.slane %v5793_v4, 2 }
  0xdd   : > { %v5701_v33 = vpop.f32.mrf.mxu0  ;;  %4788 = vmatmul.mubr.msk.bf16.gmra.mxu0 %vm604_vm2, %v2710_v18  ;;  %4757 = vmatprep.mubr.msk.bf16.mxu1 %vm604_vm2, %v5376_v19 }
  0xde   : > { %4791 = vmatprep.mubr.msk.bf16.mxu0 %vm604_vm2, %v2712_v46  ;;  %v5715_v38 = vpop.f32.mrf.mxu1 }
  0xdf   : > { %v5710_v9 = vpop.f32.mrf.mxu0 }
  0xe0   : > { %v5723_v7 = vpop.f32.mrf.mxu1 }
  0xe1   : > { %v5717_v0 = vpop.f32.mrf.mxu0 }
  0xe2   : > { %v5731_v25 = vpop.f32.mrf.mxu1 }
  0xe3   : > { %v5725_v29 = vpop.f32.mrf.mxu0 }
  0xe4   : > { %v5738_v34 = vpop.f32.mrf.mxu1  ;;  %4758 = vmatmul.mubr.msk.bf16.gmra.mxu1 %vm604_vm2, %v5381_v21  ;;  %v2720_v21 = vsel %vm2262_vm4, %v2717_v45, %v2719_v15  ;;  %v5817_v45 = vld [vmem:[%s5087_s6 + $0x80] sm:$0xff]  }
  0xe5   : > { %v5733_v19 = vpop.f32.mrf.mxu0  ;;  %4792 = vmatmul.mubr.msk.bf16.gmra.mxu0 %vm604_vm2, %v2714_v13  ;;  %4761 = vmatprep.mubr.msk.bf16.mxu1 %vm604_vm2, %v5400_v31  ;;  %6560 = vst [vmem:[#allocation10_spill] sm:$0xff] %v5817_v45 }
  0xe6   : > { %4795 = vmatprep.mubr.msk.bf16.mxu0 %vm604_vm2, %v2716_v12  ;;  %v5747_v35 = vpop.f32.mrf.mxu1  ;;  %v2726_v12 = vsel %vm2262_vm4, %v2723_v1, %v2725_v63 }
  0xe7   : > { %v5742_v62 = vpop.f32.mrf.mxu0 }
  0xe8   : > { %v5755_v41 = vpop.f32.mrf.mxu1 }
  0xe9   : > { %v5749_v36 = vpop.f32.mrf.mxu0  ;;  %6552 = vst [vmem:[#allocation2_spill] sm:$0xff] %v5755_v41 }
  0xea   : > { %v5763_v10 = vpop.f32.mrf.mxu1 }
  0xeb   : > { %v5757_v39 = vpop.f32.mrf.mxu0  ;;  %6553 = vst [vmem:[#allocation3_spill] sm:$0xff] %v5763_v10 }
  0xec   : > { %v5770_v47 = vpop.f32.mrf.mxu1  ;;  %4762 = vmatmul.mubr.msk.bf16.gmra.mxu1 %vm604_vm2, %v5405_v32  ;;  %v2724_v32 = vsel %vm2262_vm4, %v2721_v11, %v2723_v1 }
  0xed   : > { %v5765_v31 = vpop.f32.mrf.mxu0  ;;  %4796 = vmatmul.mubr.msk.bf16.gmra.mxu0 %vm604_vm2, %v2718_v28  ;;  %6554 = vst [vmem:[#allocation4_spill] sm:$0xff] %v5770_v47  ;;  %4765 = vmatprep.mubr.msk.bf16.mxu1 %vm604_vm2, %v5426_v44 }
  0xee   : > { %4799 = vmatprep.mubr.msk.bf16.mxu0 %vm604_vm2, %v2720_v21  ;;  %v5779_v61 = vpop.f32.mrf.mxu1  ;;  %v5825_v21 = vld [vmem:[%s5087_s6 + $0x88] sm:$0xff]  }
  0xef   : > { %v5774_v23 = vpop.f32.mrf.mxu0  ;;  %6555 = vst [vmem:[#allocation5_spill] sm:$0xff] %v5779_v61  ;;  %6562 = vst [vmem:[#allocation12_spill] sm:$0xff] %v5825_v21  ;;  %v5857_v61 = vld [vmem:[%s5087_s6 + $0x98] sm:$0xff]  }
  0xf0   : > { %v5787_v57 = vpop.f32.mrf.mxu1  ;;  %6564 = vst [vmem:[#allocation14_spill] sm:$0xff] %v5857_v61 }
  0xf1   : > { %v5781_v48 = vpop.f32.mrf.mxu0  ;;  %6556 = vst [vmem:[#allocation6_spill] sm:$0xff] %v5787_v57  ;;  %v5851_v57 = vld [vmem:[%s5087_s6 + $0x90] sm:$0xff]  }
  0xf2   : > { %v5795_v60 = vpop.f32.mrf.mxu1 }
  0xf3   : > { %v5789_v5 = vpop.f32.mrf.mxu0  ;;  %6557 = vst [vmem:[#allocation7_spill] sm:$0xff] %v5795_v60 }
  0xf4   : > { %v5802_v18 = vpop.f32.mrf.mxu1  ;;  %4766 = vmatmul.mubr.msk.bf16.gmra.mxu1 %vm604_vm2, %v5431_v50  ;;  %v2728_v50 = vsel %vm2262_vm4, %v2725_v63, %v2727_v3  ;;  %v2731_v63 = vrot.slane %v5825_v21, 2 }
  0xf5   : > { %v5797_v44 = vpop.f32.mrf.mxu0  ;;  %4800 = vmatmul.mubr.msk.bf16.gmra.mxu0 %vm604_vm2, %v2722_v54  ;;  %6558 = vst [vmem:[#allocation8_spill] sm:$0xff] %v5802_v18  ;;  %4769 = vmatprep.mubr.msk.bf16.mxu1 %vm604_vm2, %v5455_v40  ;;  %v2729_v40 = vrot.slane %v5817_v45, 2 }
  0xf6   : > { %4803 = vmatprep.mubr.msk.bf16.mxu0 %vm604_vm2, %v2724_v32  ;;  %v5811_v17 = vpop.f32.mrf.mxu1 }
  0xf7   : > { %v5806_v46 = vpop.f32.mrf.mxu0  ;;  %6559 = vst [vmem:[#allocation9_spill] sm:$0xff] %v5811_v17  ;;  %v3025_v17 = vshrl.u32 %v5564_v55, 16  ;;  %v2730_v60 = vsel %vm2262_vm4, %v2727_v3, %v2729_v40 }
  0xf8   : > { %v5819_v15 = vpop.f32.mrf.mxu1 }
  0xf9   : > { %v5813_v13 = vpop.f32.mrf.mxu0  ;;  %6561 = vst [vmem:[#allocation11_spill] sm:$0xff] %v5819_v15  ;;  %v3020_v15 = vshll.u32 %v5650_v51, 16 }
  0xfa   : > { %v5827_v11 = vpop.f32.mrf.mxu1 }
  0xfb   : > { %v5821_v28 = vpop.f32.mrf.mxu0  ;;  %6563 = vst [vmem:[#allocation13_spill] sm:$0xff] %v5827_v11  ;;  %v3022_v21 = vrot.slane %v3020_v15, 3 }
  0xfc   : > { %v4595_v1 = vpop.f32.mrf.mxu1  ;;  %4770 = vmatmul.mubr.msk.bf16.gmra.mxu1 %vm604_vm2, %v5461_v16  ;;  %v3028_v16 = vshll.u32 %v5564_v55, 16 }
  0xfd   : > { %v5829_v54 = vpop.f32.mrf.mxu0  ;;  %4804 = vmatmul.mubr.msk.bf16.gmra.mxu0 %vm604_vm2, %v2726_v12  ;;  %v922_v26 = vadd.f32 %v4595_v1, %v5701_v33  ;;  %4773 = vmatprep.mubr.msk.bf16.mxu1 %vm604_vm2, %v5486_v42  ;;  %v2732_v42 = vsel %vm2262_vm4, %v2729_v40, %v2731_v63  ;;  %v2733_v40 = vrot.slane %v5851_v57, 2 }
  0xfe   : > { %4807 = vmatprep.mubr.msk.bf16.mxu0 %vm604_vm2, %v2728_v50  ;;  %v913_v12 = vpop.f32.mrf.mxu1  ;;  %v3017_v50 = vshrl.u32 %v5650_v51, 16 }
  0xff   : > { %v5836_v32 = vpop.f32.mrf.mxu0  ;;  %v914_v18 = vadd.f32 %v913_v12, %v5710_v9  ;;  %v3027_v9 = vrot.slane %v3025_v17, 2  ;;  %v3030_v12 = vrot.slane %v3028_v16, 3 }
 0x100   : > { %v4596_v33 = vpop.f32.mrf.mxu1  ;;  %v3019_v55 = vrot.slane %v3017_v50, 2 }
 0x101   : > { %v5842_v11 = vpop.f32.mrf.mxu0  ;;  %v925_v47 = vadd.f32 %v4596_v33, %v5717_v0  ;;  %v2735_v33 = vrot.slane %v5857_v61, 2  ;;  %v3031_v16 = vor.u32 %v3030_v12, %v3027_v9 }
 0x102   : > { %v916_v51 = vpop.f32.mrf.mxu1  ;;  %v3023_v50 = vor.u32 %v3022_v21, %v3019_v55 }
 0x103   : > { %v5853_v1 = vpop.f32.mrf.mxu0  ;;  %v917_v3 = vadd.f32 %v916_v51, %v5725_v29  ;;  %v3037_v29 = vshll.u32 %v5569_v27, 16 }
 0x104   : > { %v4599_v41 = vpop.f32.mrf.mxu1  ;;  %4774 = vmatmul.mubr.msk.bf16.gmra.mxu1 %vm604_vm2, %v5497_v6  ;;  %v3043_v6 = vshrl.u32 %v5663_v2, 16 }
 0x105   : > { %v4633_v10 = vpop.f32.mrf.mxu0  ;;  %4808 = vmatmul.mubr.msk.bf16.gmra.mxu0 %vm604_vm2, %v2730_v60  ;;  %v938_v60 = vadd.f32 %v4599_v41, %v5733_v19  ;;  %4777 = vmatprep.mubr.msk.bf16.mxu1 %vm604_vm2, %v5528_v22  ;;  %v2734_v41 = vsel %vm2262_vm4, %v2731_v63, %v2733_v40  ;;  %v4992_v22 = vld [vmem:[%s5087_s6 + $0xa0] ss:$0 sps:$4 sm:$0x33]   ;;  %v3039_v9 = vrot.slane %v3037_v29, 3  ;;  %v3055_v29 = vshll.u32 %v5677_v59, 16 }
 0x106   : > { %v5862_v45 = vadd.f32 %v4633_v10, %v922_v26  ;;  %4811 = vmatprep.mubr.msk.bf16.mxu0 %vm604_vm2, %v2732_v42  ;;  %v3034_v26 = vshrl.u32 %v5569_v27, 16  ;;  %v929_v10 = vpop.f32.mrf.mxu1  ;;  %v3046_v42 = vshll.u32 %v5663_v2, 16 }
 0x107   : > { %v1191_v0 = vpop.f32.mrf.mxu0  ;;  %v930_v51 = vadd.f32 %v929_v10, %v5742_v62  ;;  %v3032_v62 = vsel %vm3015_vm7, %v3023_v50, %v3031_v16 }
 0x108   : > { %6565 = vst [vmem:[#allocation15_spill] sm:$0xff] %v5862_v45  ;;  %v5870_v17 = vadd.f32 %v1191_v0, %v914_v18  ;;  %v4600_v18 = vpop.f32.mrf.mxu1  ;;  %v3036_v55 = vrot.slane %v3034_v26, 2  ;;  %v3048_v63 = vrot.slane %v3046_v42, 3  ;;  %v3052_v26 = vshrl.u32 %v5677_v59, 16 }
 0x109   : > { %v4634_v15 = vpop.f32.mrf.mxu0  ;;  %v941_v45 = vadd.f32 %v4600_v18, %v5749_v36  ;;  %v3061_v42 = vshrl.u32 %v5683_v58, 16 }
 0x10a   : > { %6566 = vst [vmem:[#allocation16_spill] sm:$0xff] %v5870_v17  ;;  %v5879_v19 = vadd.f32 %v4634_v15, %v925_v47  ;;  %v2736_v17 = vsel %vm2262_vm4, %v2733_v40, %v2735_v33  ;;  %v932_v12 = vpop.f32.mrf.mxu1  ;;  %v3045_v47 = vrot.slane %v3043_v6, 2  ;;  %v2737_v40 = vrot.slane %v4992_v22, 2 }
 0x10b   : > { %v1194_v0 = vpop.f32.mrf.mxu0  ;;  %v933_v10 = vadd.f32 %v932_v12, %v5757_v39  ;;  %v3040_v39 = vor.u32 %v3039_v9, %v3036_v55  ;;  %v3057_v12 = vrot.slane %v3055_v29, 3 }
 0x10c   : > { %v5885_v21 = vadd.f32 %v1194_v0, %v917_v3  ;;  %v4603_v36 = vpop.f32.mrf.mxu1  ;;  %4778 = vmatmul.mubr.msk.bf16.gmra.mxu1 %vm604_vm2, %v5534_v24  ;;  %v2738_v18 = vsel %vm2262_vm4, %v2735_v33, %v2737_v40 }
 0x10d   : > { %v4637_v61 = vpop.f32.mrf.mxu0  ;;  %4812 = vmatmul.mubr.msk.bf16.gmra.mxu0 %vm604_vm2, %v2734_v41  ;;  %v954_v50 = vadd.f32 %v4603_v36, %v5765_v31  ;;  %4821 = vmatprep.mubr.msk.bf16.mxu1 %vm604_vm2, %v3032_v62  ;;  %v3064_v41 = vshll.u32 %v5683_v58, 16  ;;  %v3041_v9 = vsel %vm3015_vm7, %v3031_v16, %v3040_v39 }
 0x10e   : > { %v5890_v15 = vadd.f32 %v4637_v61, %v938_v60  ;;  %4815 = vmatprep.mubr.msk.bf16.mxu0 %vm604_vm2, %v2736_v17  ;;  %v945_v61 = vpop.f32.mrf.mxu1  ;;  %v3049_v17 = vor.u32 %v3048_v63, %v3045_v47 }
 0x10f   : > { %v1207_v3 = vpop.f32.mrf.mxu0  ;;  %v946_v24 = vadd.f32 %v945_v61, %v5774_v23  ;;  %v3066_v36 = vrot.slane %v3064_v41, 3 }
 0x110   : > { %v5898_v6 = vadd.f32 %v1207_v3, %v930_v51  ;;  %v4604_v0 = vpop.f32.mrf.mxu1  ;;  %v3054_v51 = vrot.slane %v3052_v26, 2  ;;  %v3050_v23 = vsel %vm3015_vm7, %v3040_v39, %v3049_v17  ;;  %v3468_v3 = vrot.slane %v5663_v2, 3 }
 0x111   : > { %v4638_v60 = vpop.f32.mrf.mxu0  ;;  %v957_v62 = vadd.f32 %v4604_v0, %v5781_v48  ;;  %v6567_v0 = vrot.slane %v5569_v27, 3 }
 0x112   : > { %v5904_v22 = vadd.f32 %v4638_v60, %v941_v45  ;;  %v948_v47 = vpop.f32.mrf.mxu1  ;;  %v3063_v45 = vrot.slane %v3061_v42, 2  ;;  %v3058_v16 = vor.u32 %v3057_v12, %v3054_v51  ;;  %v3079_v60 = vshrl.u32 %v5699_v30, 16 }
 0x113   : > { %v1210_v31 = vpop.f32.mrf.mxu0  ;;  %v949_v33 = vadd.f32 %v948_v47, %v5789_v5  ;;  %v3070_v5 = vshrl.u32 %v5695_v14, 16  ;;  %v3082_v42 = vshll.u32 %v5699_v30, 16 }
 0x114   : > { %v5908_v55 = vadd.f32 %v1210_v31, %v933_v10  ;;  %v4607_v48 = vpop.f32.mrf.mxu1  ;;  %4822 = vmatmul.mubr.msk.bf16.vlgmr.msra.gmra.mxu1 %vm604_vm2, %v3041_v9  ;;  %v3469_v31 = vsel %vm3462_vm6, %v6567_v0, %v3468_v3 }
 0x115   : > { %v4641_v63 = vpop.f32.mrf.mxu0  ;;  %4816 = vmatmul.mubr.msk.bf16.gmra.mxu0 %vm604_vm2, %v2738_v18  ;;  %v970_v26 = vadd.f32 %v4607_v48, %v5797_v44  ;;  %4825 = vmatprep.mubr.msk.bf16.mxu1 %vm604_vm2, %v3050_v23  ;;  %v3059_v18 = vsel %vm3015_vm7, %v3049_v17, %v3058_v16  ;;  %v3072_v9 = vrot.slane %v3070_v5, 2  ;;  %v3472_v48 = vrot.slane %v5683_v58, 3 }
 0x116   : > { %v5914_v40 = vadd.f32 %v4641_v63, %v954_v50  ;;  %4859 = vmatprep.mubr.msk.bf16.mxu0 %vm604_vm2, %v5580_v37  ;;  %v3073_v50 = vshll.u32 %v5695_v14, 16  ;;  %v961_v39 = vpop.f32.mrf.mxu1  ;;  %v3067_v37 = vor.u32 %v3066_v36, %v3063_v45  ;;  %v3084_v45 = vrot.slane %v3082_v42, 3 }
 0x117   : > { %v1223_v10 = vpop.f32.mrf.mxu0  ;;  %v962_v41 = vadd.f32 %v961_v39, %v5806_v46  ;;  %v3097_v39 = vshrl.u32 %v5729_v8, 16 }
 0x118   : > { %v5921_v29 = vadd.f32 %v1223_v10, %v946_v24  ;;  %v4608_v44 = vpop.f32.mrf.mxu1  ;;  %v3075_v47 = vrot.slane %v3073_v50, 3  ;;  %v3068_v46 = vsel %vm3015_vm7, %v3058_v16, %v3067_v37  ;;  %v3091_v10 = vshll.u32 %v5721_v20, 16 }
 0x119   : > { %v4642_v61 = vpop.f32.mrf.mxu0  ;;  %v973_v51 = vadd.f32 %v4608_v44, %v5813_v13  ;;  %v3470_v13 = vrot.slane %v5677_v59, 3 }
 0x11a   : > { %v5929_v2 = vadd.f32 %v4642_v61, %v957_v62  ;;  %v964_v63 = vpop.f32.mrf.mxu1  ;;  %v3081_v62 = vrot.slane %v3079_v60, 2  ;;  %v3100_v61 = vshll.u32 %v5729_v8, 16 }
 0x11b   : > { %v1226_v24 = vpop.f32.mrf.mxu0  ;;  %v965_v17 = vadd.f32 %v964_v63, %v5821_v28  ;;  %v3076_v28 = vor.u32 %v3075_v47, %v3072_v9  ;;  %v3471_v42 = vsel %vm3462_vm6, %v3468_v3, %v3470_v13 }
 0x11c   : > { %v5936_v12 = vadd.f32 %v1226_v24, %v949_v33  ;;  %v4611_v36 = vpop.f32.mrf.mxu1  ;;  %4826 = vmatmul.mubr.msk.bf16.gmra.mxu1 %vm604_vm2, %v3059_v18  ;;  %v3085_v59 = vor.u32 %v3084_v45, %v3081_v62  ;;  %v3093_v18 = vrot.slane %v3091_v10, 3  ;;  %v3102_v3 = vrot.slane %v3100_v61, 3 }
 0x11d   : > { %v4645_v23 = vpop.f32.mrf.mxu0  ;;  %4860 = vmatmul.mubr.msk.bf16.vlgmr.msra.gmra.mxu0 %vm604_vm2, %v5588_v43  ;;  %v3088_v43 = vshrl.u32 %v5721_v20, 16  ;;  %v986_v16 = vadd.f32 %v4611_v36, %v5829_v54  ;;  %4829 = vmatprep.mubr.msk.bf16.mxu1 %vm604_vm2, %v3068_v46  ;;  %v3077_v9 = vsel %vm3015_vm7, %v3067_v37, %v3076_v28  ;;  %v3106_v36 = vshrl.u32 %v5753_v53, 16 }
 0x11e   : > { %v5942_v27 = vadd.f32 %v4645_v23, %v970_v26  ;;  %4863 = vmatprep.mubr.msk.bf16.mxu0 %vm604_vm2, %v3469_v31  ;;  %v977_v26 = vpop.f32.mrf.mxu1 }
 0x11f   : > { %v1239_v33 = vpop.f32.mrf.mxu0  ;;  %v978_v58 = vadd.f32 %v977_v26, %v5836_v32  ;;  %v3090_v24 = vrot.slane %v3088_v43, 2  ;;  %v3086_v32 = vsel %vm3015_vm7, %v3076_v28, %v3085_v59 }
 0x120   : > { %v5951_v5 = vadd.f32 %v1239_v33, %v962_v41  ;;  %v4612_v44 = vpop.f32.mrf.mxu1  ;;  %v3473_v41 = vsel %vm3462_vm6, %v3470_v13, %v3472_v48 }
 0x121   : > { %v4646_v50 = vpop.f32.mrf.mxu0  ;;  %v989_v0 = vadd.f32 %v4612_v44, %v5842_v11  ;;  %v3474_v11 = vrot.slane %v5695_v14, 3  ;;  %v3094_v45 = vor.u32 %v3093_v18, %v3090_v24  ;;  %v3115_v14 = vshrl.u32 %v5761_v49, 16 }
 0x122   : > { %v5957_v60 = vadd.f32 %v4646_v50, %v973_v51  ;;  %v980_v47 = vpop.f32.mrf.mxu1  ;;  %v3099_v51 = vrot.slane %v3097_v39, 2  ;;  %v3108_v44 = vrot.slane %v3106_v36, 2  ;;  %v3136_v36 = vshll.u32 %v5793_v4, 16 }
 0x123   : > { %v1242_v54 = vpop.f32.mrf.mxu0  ;;  %v981_v23 = vadd.f32 %v980_v47, %v5853_v1  ;;  %v3109_v1 = vshll.u32 %v5753_v53, 16  ;;  %v3475_v26 = vsel %vm3462_vm6, %v3472_v48, %v3474_v11  ;;  %v3095_v39 = vsel %vm3015_vm7, %v3085_v59, %v3094_v45 }
 0x124   : > { %v5962_v31 = vadd.f32 %v1242_v54, %v965_v17  ;;  %v4615_v62 = vpop.f32.mrf.mxu1  ;;  %4830 = vmatmul.mubr.msk.bf16.gmra.mxu1 %vm604_vm2, %v3077_v9  ;;  %v3476_v17 = vrot.slane %v5699_v30, 3  ;;  %v3103_v10 = vor.u32 %v3102_v3, %v3099_v51  ;;  %v3124_v51 = vshrl.u32 %v5785_v56, 16 }
 0x125   : > { %v4649_v63 = vpop.f32.mrf.mxu0  ;;  %4864 = vmatmul.mubr.msk.bf16.gmra.mxu0 %vm604_vm2, %v3471_v42  ;;  %4833 = vmatprep.mubr.msk.bf16.mxu1 %vm604_vm2, %v3086_v32  ;;  %v3111_v54 = vrot.slane %v3109_v1, 3  ;;  %v3480_v32 = vrot.slane %v5729_v8, 3  ;;  %v3127_v3 = vshll.u32 %v5785_v56, 16 }
 0x126   : > { %v5968_v46 = vadd.f32 %v4649_v63, %v986_v16  ;;  %4867 = vmatprep.mubr.msk.bf16.mxu0 %vm604_vm2, %v3473_v41  ;;  %v993_v33 = vpop.f32.mrf.mxu1  ;;  %v3118_v16 = vshll.u32 %v5761_v49, 16  ;;  %v3477_v61 = vsel %vm3462_vm6, %v3474_v11, %v3476_v17  ;;  %v3104_v18 = vsel %vm3015_vm7, %v3094_v45, %v3103_v10 }
 0x127   : > { %v1255_v37 = vpop.f32.mrf.mxu0  ;;  %v994_v9 = vadd.f32 %v993_v33, %v5715_v38  ;;  %v3112_v38 = vor.u32 %v3111_v54, %v3108_v44  ;;  %v3133_v45 = vshrl.u32 %v5793_v4, 16 }
 0x128   : > { %v5974_v13 = vadd.f32 %v1255_v37, %v978_v58  ;;  %v4616_v30 = vpop.f32.mrf.mxu1  ;;  %v1002_v58 = vadd.f32 %v4615_v62, %v5706_v52  ;;  %v3120_v48 = vrot.slane %v3118_v16, 3  ;;  %v3478_v52 = vrot.slane %v5721_v20, 3 }
 0x129   : > { %v4650_v43 = vpop.f32.mrf.mxu0  ;;  %v3126_v16 = vrot.slane %v3124_v51, 2  ;;  %v3135_v44 = vrot.slane %v3133_v45, 2 }
 0x12a   : > { %v5981_v28 = vadd.f32 %v4650_v43, %v989_v0  ;;  %v996_v41 = vpop.f32.mrf.mxu1  ;;  %v3117_v0 = vrot.slane %v3115_v14, 2  ;;  %v3479_v33 = vsel %vm3462_vm6, %v3476_v17, %v3478_v52  ;;  %v3481_v14 = vsel %vm3462_vm6, %v3478_v52, %v3480_v32 }
 0x12b   : > { %v1258_v50 = vpop.f32.mrf.mxu0  ;;  %v997_v8 = vadd.f32 %v996_v41, %v5731_v25  ;;  %v3138_v17 = vrot.slane %v3136_v36, 3 }
 0x12c   : > { %v5987_v42 = vadd.f32 %v1258_v50, %v981_v23  ;;  %v4619_v59 = vpop.f32.mrf.mxu1  ;;  %4834 = vmatmul.mubr.msk.bf16.gmra.mxu1 %vm604_vm2, %v3095_v39  ;;  %v1005_v23 = vadd.f32 %v4616_v30, %v5723_v7  ;;  %v3121_v20 = vor.u32 %v3120_v48, %v3117_v0  ;;  %v3113_v39 = vsel %vm3015_vm7, %v3103_v10, %v3112_v38  ;;  %v6568_v48 = vld [vmem:[#allocation2_spill] sm:$0xff] }
 0x12d   : > { %v4653_v24 = vpop.f32.mrf.mxu0  ;;  %4868 = vmatmul.mubr.msk.bf16.gmra.mxu0 %vm604_vm2, %v3475_v26  ;;  %4837 = vmatprep.mubr.msk.bf16.mxu1 %vm604_vm2, %v3104_v18  ;;  %v3129_v26 = vrot.slane %v3127_v3, 3  ;;  %v1018_v30 = vadd.f32 %v4619_v59, %v5738_v34  ;;  %v3482_v34 = vrot.slane %v5753_v53, 3  ;;  %v3484_v0 = vrot.slane %v5761_v49, 3 }
 0x12e   : > { %v5992_v47 = vadd.f32 %v4653_v24, %v1002_v58  ;;  %4871 = vmatprep.mubr.msk.bf16.mxu0 %vm604_vm2, %v3477_v61  ;;  %v1009_v62 = vpop.f32.mrf.mxu1  ;;  %v3122_v25 = vsel %vm3015_vm7, %v3112_v38, %v3121_v20  ;;  %v3139_v53 = vor.u32 %v3138_v17, %v3135_v44  ;;  %v6573_v17 = vld [vmem:[#allocation5_spill] sm:$0xff] }
 0x12f   : > { %v1271_v63 = vpop.f32.mrf.mxu0  ;;  %v1010_v54 = vadd.f32 %v1009_v62, %v5747_v35  ;;  %v3130_v18 = vor.u32 %v3129_v26, %v3126_v16  ;;  %v6569_v35 = vld [vmem:[#allocation10_spill] sm:$0xff]  ;;  %v3483_v36 = vsel %vm3462_vm6, %v3480_v32, %v3482_v34 }
 0x130   : > { %v6001_v11 = vadd.f32 %v1271_v63, %v994_v9  ;;  %v4620_v43 = vpop.f32.mrf.mxu1  ;;  %v3142_v59 = vshrl.u32 %v6569_v35, 16  ;;  %v3145_v63 = vshll.u32 %v6569_v35, 16 }
 0x131   : > { %v4654_v37 = vpop.f32.mrf.mxu0  ;;  %v1021_v9 = vadd.f32 %v4620_v43, %v6568_v48  ;;  %v3131_v43 = vsel %vm3015_vm7, %v3121_v20, %v3130_v18  ;;  %v3486_v20 = vrot.slane %v5785_v56, 3  ;;  %v3488_v48 = vrot.slane %v5793_v4, 3  ;;  %v6576_v4 = vld [vmem:[#allocation7_spill] sm:$0xff] }
 0x132   : > { %v6007_v1 = vadd.f32 %v4654_v37, %v1005_v23  ;;  %v1012_v61 = vpop.f32.mrf.mxu1  ;;  %v6570_v23 = vld [vmem:[#allocation12_spill] sm:$0xff]  ;;  %v6571_v37 = vld [vmem:[#allocation3_spill] sm:$0xff] }
 0x133   : > { %v1274_v7 = vpop.f32.mrf.mxu0  ;;  %v3151_v38 = vshrl.u32 %v6570_v23, 16  ;;  %v3154_v62 = vshll.u32 %v6570_v23, 16  ;;  %v1013_v45 = vadd.f32 %v1012_v61, %v6571_v37  ;;  %v3140_v61 = vsel %vm3015_vm7, %v3130_v18, %v3139_v53  ;;  %v6575_v37 = vld [vmem:[#allocation14_spill] sm:$0xff] }
 0x134   : > { %v6012_v50 = vadd.f32 %v1274_v7, %v997_v8  ;;  %v4623_v24 = vpop.f32.mrf.mxu1  ;;  %4838 = vmatmul.mubr.msk.bf16.gmra.mxu1 %vm604_vm2, %v3113_v39  ;;  %v3485_v7 = vsel %vm3462_vm6, %v3482_v34, %v3484_v0  ;;  %v3147_v39 = vrot.slane %v3145_v63, 3  ;;  %v3163_v18 = vshll.u32 %v5851_v57, 16 }
 0x135   : > { %v4657_v58 = vpop.f32.mrf.mxu0  ;;  %4872 = vmatmul.mubr.msk.bf16.gmra.mxu0 %vm604_vm2, %v3479_v33  ;;  %4841 = vmatprep.mubr.msk.bf16.mxu1 %vm604_vm2, %v3122_v25  ;;  %v3153_v44 = vrot.slane %v3151_v38, 2  ;;  %v3156_v32 = vrot.slane %v3154_v62, 3 }
 0x136   : > { %v6018_v41 = vadd.f32 %v4657_v58, %v1018_v30  ;;  %4875 = vmatprep.mubr.msk.bf16.mxu0 %vm604_vm2, %v3481_v14  ;;  %v1025_v51 = vpop.f32.mrf.mxu1  ;;  %v6572_v14 = vld [vmem:[#allocation4_spill] sm:$0xff]  ;;  %v3144_v30 = vrot.slane %v3142_v59, 2  ;;  %v6574_v59 = vld [vmem:[#allocation6_spill] sm:$0xff] }
 0x137   : > { %v1287_v10 = vpop.f32.mrf.mxu0  ;;  %v1034_v16 = vadd.f32 %v4623_v24, %v6572_v14  ;;  %v3157_v62 = vor.u32 %v3156_v32, %v3153_v44 }
 0x138   : > { %v6025_v52 = vadd.f32 %v1287_v10, %v1010_v54  ;;  %v4624_v8 = vpop.f32.mrf.mxu1  ;;  %v1026_v54 = vadd.f32 %v1025_v51, %v6573_v17  ;;  %v3148_v51 = vor.u32 %v3147_v39, %v3144_v30  ;;  %v6064_v30 = vld [vmem:[%s5087_s6 + $0xa0] ss:$0 sps:$4 sm:$0x77]   ;;  %v6577_v39 = vld [vmem:[#allocation8_spill] sm:$0xff] }
 0x139   : > { %v4658_v3 = vpop.f32.mrf.mxu0  ;;  %v1037_v63 = vadd.f32 %v4624_v8, %v6574_v59 }
 0x13a   : > { %v6033_v49 = vadd.f32 %v4658_v3, %v1021_v9  ;;  %v1028_v58 = vpop.f32.mrf.mxu1  ;;  %v3160_v9 = vshrl.u32 %v5851_v57, 16  ;;  %v3149_v17 = vsel %vm3015_vm7, %v3139_v53, %v3148_v51 }
 0x13b   : > { %v1290_v33 = vpop.f32.mrf.mxu0 }
 0x13c   : > { %v6039_v26 = vadd.f32 %v1290_v33, %v1013_v45  ;;  %v4627_v34 = vpop.f32.mrf.mxu1  ;;  %4842 = vmatmul.mubr.msk.bf16.gmra.mxu1 %vm604_vm2, %v3131_v43  ;;  %v3169_v45 = vshrl.u32 %v6575_v37, 16  ;;  %v1029_v33 = vadd.f32 %v1028_v58, %v6576_v4  ;;  %v3492_v4 = vrot.slane %v6570_v23, 3 }
 0x13d   : > { %v4661_v25 = vpop.f32.mrf.mxu0  ;;  %4876 = vmatmul.mubr.msk.bf16.gmra.mxu0 %vm604_vm2, %v3483_v36  ;;  %4845 = vmatprep.mubr.msk.bf16.mxu1 %vm604_vm2, %v3140_v61  ;;  %v3172_v36 = vshll.u32 %v6575_v37, 16  ;;  %v3165_v61 = vrot.slane %v3163_v18, 3  ;;  %v1050_v44 = vadd.f32 %v4627_v34, %v6577_v39  ;;  %v3490_v34 = vrot.slane %v6569_v35, 3 }
 0x13e   : > { %v6044_v10 = vadd.f32 %v4661_v25, %v1034_v16  ;;  %4879 = vmatprep.mubr.msk.bf16.mxu0 %vm604_vm2, %v3485_v7  ;;  %v1041_v38 = vpop.f32.mrf.mxu1  ;;  %v3487_v7 = vsel %vm3462_vm6, %v3484_v0, %v3486_v20  ;;  %v3489_v16 = vsel %vm3462_vm6, %v3486_v20, %v3488_v48  ;;  %v3162_v25 = vrot.slane %v3160_v9, 2 }
 0x13f   : > { %v1303_v24 = vpop.f32.mrf.mxu0  ;;  %v3158_v0 = vsel %vm3015_vm7, %v3148_v51, %v3157_v62  ;;  %v3174_v59 = vrot.slane %v3172_v36, 3  ;;  %v6579_v51 = vld [vmem:[#allocation11_spill] sm:$0xff] }
 0x140   : > { %v6053_v3 = vadd.f32 %v1303_v24, %v1026_v54  ;;  %v4628_v8 = vpop.f32.mrf.mxu1  ;;  %v3171_v24 = vrot.slane %v3169_v45, 2  ;;  %v6580_v36 = vld [vmem:[#allocation15_spill] sm:$0xff] }
 0x141   : > { %v4662_v56 = vpop.f32.mrf.mxu0  ;;  %v1053_v45 = vadd.f32 %v4628_v8, %v6579_v51 }
 0x142   : > { %v6059_v43 = vadd.f32 %v4662_v56, %v1037_v63  ;;  %v1044_v54 = vpop.f32.mrf.mxu1  ;;  %v6578_v63 = vld [vmem:[#allocation9_spill] sm:$0xff]  ;;  %v3166_v56 = vor.u32 %v3165_v61, %v3162_v25  ;;  %v3175_v39 = vor.u32 %v3174_v59, %v3171_v24  ;;  %v6582_v25 = vld [vmem:[#allocation16_spill] sm:$0xff] }
 0x143   : > { %v1306_v14 = vpop.f32.mrf.mxu0  ;;  %v1042_v20 = vadd.f32 %v1041_v38, %v6578_v63 }
 0x144   : > { %v6067_v32 = vadd.f32 %v1306_v14, %v1029_v33  ;;  %v4671_v18 = vpop.f32.mrf.mxu1  ;;  %4846 = vmatmul.mubr.msk.bf16.gmra.mxu1 %vm604_vm2, %v3149_v17  ;;  %v3178_v33 = vshrl.u32 %v6064_v30, 16  ;;  %v3181_v14 = vshll.u32 %v6064_v30, 16 }
 0x145   : > { %v4665_v58 = vpop.f32.mrf.mxu0  ;;  %4880 = vmatmul.mubr.msk.bf16.gmra.mxu0 %vm604_vm2, %v3487_v7  ;;  %v1775_v7 = vadd.f32 %v4671_v18, %v6580_v36  ;;  %4849 = vmatprep.mubr.msk.bf16.mxu1 %vm604_vm2, %v3158_v0  ;;  %v3493_v18 = vsel %vm3462_vm6, %v3490_v34, %v3492_v4 }
 0x146   : > { %v6073_v9 = vadd.f32 %v4665_v58, %v1050_v44  ;;  %4883 = vmatprep.mubr.msk.bf16.mxu0 %vm604_vm2, %v3489_v16  ;;  %v1630_v35 = vpop.f32.mrf.mxu1  ;;  %v6581_v44 = vld [vmem:[#allocation13_spill] sm:$0xff]  ;;  %v3491_v58 = vsel %vm3462_vm6, %v3488_v48, %v3490_v34  ;;  %v3180_v51 = vrot.slane %v3178_v33, 2  ;;  %v3183_v24 = vrot.slane %v3181_v14, 3 }
 0x147   : > { %v1319_v53 = vpop.f32.mrf.mxu0  ;;  %v1045_v17 = vadd.f32 %v1044_v54, %v6581_v44  ;;  %v1773_v61 = vadd.f32 %v1630_v35, %v6582_v25  ;;  %v3496_v33 = vrot.slane %v6575_v37, 3 }
 0x148   : > { %v6082_v38 = vadd.f32 %v1319_v53, %v1042_v20  ;;  %v4672_v8 = vpop.f32.mrf.mxu1  ;;  %v3167_v20 = vsel %vm3015_vm7, %v3157_v62, %v3166_v56  ;;  %v3494_v62 = vrot.slane %v5851_v57, 3 }
 0x149   : > { %v4666_v16 = vpop.f32.mrf.mxu0  ;;  %v1776_v0 = vadd.f32 %v4672_v8, %v5879_v19 }
 0x14a   : > { %v6088_v23 = vadd.f32 %v4666_v16, %v1053_v45  ;;  %v1633_v59 = vpop.f32.mrf.mxu1  ;;  %v3176_v45 = vsel %vm3015_vm7, %v3166_v56, %v3175_v39  ;;  %v3184_v56 = vor.u32 %v3183_v24, %v3180_v51  ;;  %v3495_v57 = vsel %vm3462_vm6, %v3492_v4, %v3494_v62 }
 0x14b   : > { %v1322_v63 = vpop.f32.mrf.mxu0  ;;  %v1774_v48 = vadd.f32 %v1633_v59, %v5885_v21  ;;  %v3498_v4 = vrot.slane %v6064_v30, 3 }
 0x14c   : > { %v6094_v53 = vadd.f32 %v1322_v63, %v1045_v17  ;;  %v4675_v34 = vpop.f32.mrf.mxu1  ;;  %4850 = vmatmul.mubr.msk.bf16.gmra.mxu1 %vm604_vm2, %v3167_v20 }
 0x14d   : > { %v4709_v54 = vpop.f32.mrf.mxu0  ;;  %4884 = vmatmul.mubr.msk.bf16.gmra.mxu0 %vm604_vm2, %v3491_v58  ;;  %v1779_v14 = vadd.f32 %v4675_v34, %v5890_v15  ;;  %4853 = vmatprep.mubr.msk.bf16.mxu1 %vm604_vm2, %v3176_v45  ;;  %v3497_v58 = vsel %vm3462_vm6, %v3494_v62, %v3496_v33 }
 0x14e   : > { %v6099_v36 = vadd.f32 %v4709_v54, %v1775_v7  ;;  %4887 = vmatprep.mubr.msk.bf16.mxu0 %vm604_vm2, %v3493_v18  ;;  %v1646_v21 = vpop.f32.mrf.mxu1 }
 0x14f   : > { %v2077_v19 = vpop.f32.mrf.mxu0  ;;  %v1777_v16 = vadd.f32 %v1646_v21, %v5898_v6 }
 0x150   : > { %v6106_v35 = vadd.f32 %v2077_v19, %v1773_v61  ;;  %v4676_v17 = vpop.f32.mrf.mxu1  ;;  %v3185_v61 = vsel %vm3015_vm7, %v3175_v39, %v3184_v56 }
 0x151   : > { %v4710_v7 = vpop.f32.mrf.mxu0  ;;  %v1780_v37 = vadd.f32 %v4676_v17, %v5904_v22 }
 0x152   : > { %v6110_v44 = vadd.f32 %v4710_v7, %v1776_v0  ;;  %v1649_v8 = vpop.f32.mrf.mxu1 }
 0x153   : > { %v2080_v25 = vpop.f32.mrf.mxu0  ;;  %v1778_v6 = vadd.f32 %v1649_v8, %v5908_v55  ;;  %v3499_v55 = vsel %vm3462_vm6, %v3496_v33, %v3498_v4 }
 0x154   : > { %v6115_v15 = vadd.f32 %v2080_v25, %v1774_v48  ;;  %v4679_v18 = vpop.f32.mrf.mxu1  ;;  %4854 = vmatmul.mubr.msk.bf16.gmra.mxu1 %vm604_vm2, %v3185_v61 }
 0x155   : > { %v4713_v63 = vpop.f32.mrf.mxu0  ;;  %4888 = vmatmul.mubr.msk.bf16.gmra.mxu0 %vm604_vm2, %v3495_v57  ;;  %v1783_v0 = vadd.f32 %v4679_v18, %v5914_v40 }
 0x156   : > { %v6120_v20 = vadd.f32 %v4713_v63, %v1779_v14  ;;  %4891 = vmatprep.mubr.msk.bf16.mxu0 %vm604_vm2, %v3497_v58  ;;  %v1662_v39 = vpop.f32.mrf.mxu1 }
 0x157   : > { %v2093_v22 = vpop.f32.mrf.mxu0  ;;  %v1781_v59 = vadd.f32 %v1662_v39, %v5921_v29 }
 0x158   : > { %v6126_v51 = vadd.f32 %v2093_v22, %v1777_v16  ;;  %v4680_v45 = vpop.f32.mrf.mxu1 }
 0x159   : > { %v4714_v24 = vpop.f32.mrf.mxu0  ;;  %v1784_v30 = vadd.f32 %v4680_v45, %v5929_v2 }
 0x15a   : > { %v6129_v54 = vadd.f32 %v4714_v24, %v1780_v37  ;;  %v1665_v34 = vpop.f32.mrf.mxu1 }
 0x15b   : > { %v2096_v48 = vpop.f32.mrf.mxu0  ;;  %v1782_v40 = vadd.f32 %v1665_v34, %v5936_v12 }
 0x15c   : > { %v6133_v62 = vadd.f32 %v2096_v48, %v1778_v6  ;;  %v4683_v56 = vpop.f32.mrf.mxu1 }
 0x15d   : > { %v4717_v19 = vpop.f32.mrf.mxu0  ;;  %4892 = vmatmul.mubr.msk.bf16.gmra.mxu0 %vm604_vm2, %v3499_v55  ;;  %v1787_v21 = vadd.f32 %v4683_v56, %v5942_v27 }
 0x15e   : > { %v6137_v14 = vadd.f32 %v4717_v19, %v1783_v0  ;;  %v1678_v33 = vpop.f32.mrf.mxu1 }
 0x15f   : > { %v2109_v29 = vpop.f32.mrf.mxu0  ;;  %v1785_v2 = vadd.f32 %v1678_v33, %v5951_v5 }
 0x160   : > { %v6140_v7 = vadd.f32 %v2109_v29, %v1781_v59  ;;  %v4684_v17 = vpop.f32.mrf.mxu1 }
 0x161   : > { %v4718_v16 = vpop.f32.mrf.mxu0  ;;  %v1788_v58 = vadd.f32 %v4684_v17, %v5957_v60 }
 0x162   : > { %v6143_v57 = vadd.f32 %v4718_v16, %v1784_v30  ;;  %v1681_v12 = vpop.f32.mrf.mxu1 }
 0x163   : > { %v2112_v25 = vpop.f32.mrf.mxu0  ;;  %v1786_v8 = vadd.f32 %v1681_v12, %v5962_v31 }
 0x164   : > { %v6146_v37 = vadd.f32 %v2112_v25, %v1782_v40  ;;  %v4687_v27 = vpop.f32.mrf.mxu1 }
 0x165   : > { %v4721_v61 = vpop.f32.mrf.mxu0  ;;  %v1791_v4 = vadd.f32 %v4687_v27, %v5968_v46 }
 0x166   : > { %v6149_v63 = vadd.f32 %v4721_v61, %v1787_v21  ;;  %v1694_v5 = vpop.f32.mrf.mxu1 }
 0x167   : > { %v2125_v6 = vpop.f32.mrf.mxu0  ;;  %v1789_v0 = vadd.f32 %v1694_v5, %v5974_v13 }
 0x168   : > { %v6152_v18 = vadd.f32 %v2125_v6, %v1785_v2  ;;  %v4688_v60 = vpop.f32.mrf.mxu1 }
 0x169   : > { %v4722_v22 = vpop.f32.mrf.mxu0  ;;  %v1792_v59 = vadd.f32 %v4688_v60, %v5981_v28 }
 0x16a   : > { %v6155_v39 = vadd.f32 %v4722_v22, %v1788_v58  ;;  %v1697_v31 = vpop.f32.mrf.mxu1 }
 0x16b   : > { %v2128_v24 = vpop.f32.mrf.mxu0  ;;  %v1790_v48 = vadd.f32 %v1697_v31, %v5987_v42 }
 0x16c   : > { %v6158_v55 = vadd.f32 %v2128_v24, %v1786_v8  ;;  %v4691_v46 = vpop.f32.mrf.mxu1 }
 0x16d   : > { %v4725_v45 = vpop.f32.mrf.mxu0  ;;  %v1795_v19 = vadd.f32 %v4691_v46, %v5992_v47 }
 0x16e   : > { %v6161_v30 = vadd.f32 %v4725_v45, %v1791_v4  ;;  %v1710_v13 = vpop.f32.mrf.mxu1 }
 0x16f   : > { %v2141_v34 = vpop.f32.mrf.mxu0  ;;  %v1793_v29 = vadd.f32 %v1710_v13, %v6001_v11 }
 0x170   : > { %v6164_v40 = vadd.f32 %v2141_v34, %v1789_v0  ;;  %v4692_v28 = vpop.f32.mrf.mxu1 }
 0x171   : > { %v4726_v56 = vpop.f32.mrf.mxu0  ;;  %v1796_v16 = vadd.f32 %v4692_v28, %v6007_v1 }
 0x172   : > { %v6167_v21 = vadd.f32 %v4726_v56, %v1792_v59  ;;  %v1713_v42 = vpop.f32.mrf.mxu1 }
 0x173   : > { %v2144_v33 = vpop.f32.mrf.mxu0  ;;  %v1794_v25 = vadd.f32 %v1713_v42, %v6012_v50 }
 0x174   : > { %v6170_v2 = vadd.f32 %v2144_v33, %v1790_v48  ;;  %v4695_v47 = vpop.f32.mrf.mxu1 }
 0x175   : > { %v4729_v17 = vpop.f32.mrf.mxu0  ;;  %v1799_v61 = vadd.f32 %v4695_v47, %v6018_v41 }
 0x176   : > { %v6173_v58 = vadd.f32 %v4729_v17, %v1795_v19  ;;  %v1726_v11 = vpop.f32.mrf.mxu1 }
 0x177   : > { %v2157_v12 = vpop.f32.mrf.mxu0  ;;  %v1797_v6 = vadd.f32 %v1726_v11, %v6025_v52 }
 0x178   : > { %v6176_v8 = vadd.f32 %v2157_v12, %v1793_v29  ;;  %v4696_v1 = vpop.f32.mrf.mxu1 }
 0x179   : > { %v4730_v27 = vpop.f32.mrf.mxu0  ;;  %v1800_v22 = vadd.f32 %v4696_v1, %v6033_v49 }
 0x17a   : > { %v6179_v4 = vadd.f32 %v4730_v27, %v1796_v16  ;;  %v1729_v50 = vpop.f32.mrf.mxu1 }
 0x17b   : > { %v2160_v5 = vpop.f32.mrf.mxu0  ;;  %v1798_v24 = vadd.f32 %v1729_v50, %v6039_v26 }
 0x17c   : > { %v6182_v0 = vadd.f32 %v2160_v5, %v1794_v25  ;;  %v4699_v41 = vpop.f32.mrf.mxu1 }
 0x17d   : > { %v4733_v60 = vpop.f32.mrf.mxu0  ;;  %v1803_v45 = vadd.f32 %v4699_v41, %v6044_v10 }
 0x17e   : > { %v6185_v59 = vadd.f32 %v4733_v60, %v1799_v61  ;;  %v1742_v52 = vpop.f32.mrf.mxu1 }
 0x17f   : > { %v2173_v31 = vpop.f32.mrf.mxu0  ;;  %v1801_v34 = vadd.f32 %v1742_v52, %v6053_v3 }
 0x180   : > { %v6188_v48 = vadd.f32 %v2173_v31, %v1797_v6  ;;  %v4700_v49 = vpop.f32.mrf.mxu1 }
 0x181   : > { %v4734_v46 = vpop.f32.mrf.mxu0  ;;  %v1804_v56 = vadd.f32 %v4700_v49, %v6059_v43 }
 0x182   : > { %v6191_v19 = vadd.f32 %v4734_v46, %v1800_v22  ;;  %v1745_v26 = vpop.f32.mrf.mxu1 }
 0x183   : > { %v2176_v13 = vpop.f32.mrf.mxu0  ;;  %v1802_v33 = vadd.f32 %v1745_v26, %v6067_v32 }
 0x184   : > { %v6194_v29 = vadd.f32 %v2176_v13, %v1798_v24  ;;  %v4703_v10 = vpop.f32.mrf.mxu1 }
 0x185   : > { %v4737_v28 = vpop.f32.mrf.mxu0  ;;  %v1807_v17 = vadd.f32 %v4703_v10, %v6073_v9 }
 0x186   : > { %v6197_v16 = vadd.f32 %v4737_v28, %v1803_v45  ;;  %v1758_v3 = vpop.f32.mrf.mxu1 }
 0x187   : > { %v2189_v42 = vpop.f32.mrf.mxu0  ;;  %v1805_v12 = vadd.f32 %v1758_v3, %v6082_v38 }
 0x188   : > { %v6200_v25 = vadd.f32 %v2189_v42, %v1801_v34  ;;  %v4704_v43 = vpop.f32.mrf.mxu1 }
 0x189   : > { %v4738_v47 = vpop.f32.mrf.mxu0  ;;  %v1808_v27 = vadd.f32 %v4704_v43, %v6088_v23 }
 0x18a   : > { %v6203_v61 = vadd.f32 %v4738_v47, %v1804_v56  ;;  %v1761_v32 = vpop.f32.mrf.mxu1 }
 0x18b   : > { %v2192_v11 = vpop.f32.mrf.mxu0  ;;  %v1806_v5 = vadd.f32 %v1761_v32, %v6094_v53 }
 0x18c   : > { %v6206_v6 = vadd.f32 %v2192_v11, %v1802_v33  ;;  %v4747_v9 = vpop.f32.mrf.mxu1 }
 0x18d   : > { %v4741_v1 = vpop.f32.mrf.mxu0  ;;  %v2536_v60 = vadd.f32 %v4747_v9, %v6099_v36 }
 0x18e   : > { %v6209_v22 = vadd.f32 %v4741_v1, %v1807_v17  ;;  %v2391_v38 = vpop.f32.mrf.mxu1 }
 0x18f   : > { %v2205_v50 = vpop.f32.mrf.mxu0  ;;  %v2534_v31 = vadd.f32 %v2391_v38, %v6106_v35 }
 0x190   : > { %v6212_v24 = vadd.f32 %v2205_v50, %v1805_v12  ;;  %v4748_v23 = vpop.f32.mrf.mxu1 }
 0x191   : > { %v4742_v41 = vpop.f32.mrf.mxu0  ;;  %v2537_v46 = vadd.f32 %v4748_v23, %v6110_v44 }
 0x192   : > { %v6215_v45 = vadd.f32 %v4742_v41, %v1808_v27  ;;  %v2394_v53 = vpop.f32.mrf.mxu1 }
 0x193   : > { %v2208_v52 = vpop.f32.mrf.mxu0  ;;  %v2535_v13 = vadd.f32 %v2394_v53, %v6115_v15 }
 0x194   : > { %v6218_v34 = vadd.f32 %v2208_v52, %v1806_v5  ;;  %v4751_v36 = vpop.f32.mrf.mxu1 }
 0x195   : > { %v4785_v49 = vpop.f32.mrf.mxu0  ;;  %v2540_v28 = vadd.f32 %v4751_v36, %v6120_v20 }
 0x196   : > { %v6221_v56 = vadd.f32 %v4785_v49, %v2536_v60  ;;  %v2407_v35 = vpop.f32.mrf.mxu1 }
 0x197   : > { %v2830_v26 = vpop.f32.mrf.mxu0  ;;  %v2538_v42 = vadd.f32 %v2407_v35, %v6126_v51 }
 0x198   : > { %v6224_v33 = vadd.f32 %v2830_v26, %v2534_v31  ;;  %v4752_v44 = vpop.f32.mrf.mxu1 }
 0x199   : > { %v4786_v10 = vpop.f32.mrf.mxu0  ;;  %v2541_v47 = vadd.f32 %v4752_v44, %v6129_v54 }
 0x19a   : > { %v6227_v17 = vadd.f32 %v4786_v10, %v2537_v46  ;;  %v2410_v15 = vpop.f32.mrf.mxu1 }
 0x19b   : > { %v2833_v3 = vpop.f32.mrf.mxu0  ;;  %v2539_v11 = vadd.f32 %v2410_v15, %v6133_v62 }
 0x19c   : > { %v6230_v12 = vadd.f32 %v2833_v3, %v2535_v13  ;;  %v4755_v20 = vpop.f32.mrf.mxu1 }
 0x19d   : > { %v4789_v43 = vpop.f32.mrf.mxu0  ;;  %v2544_v1 = vadd.f32 %v4755_v20, %v6137_v14 }
 0x19e   : > { %v6233_v27 = vadd.f32 %v4789_v43, %v2540_v28  ;;  %v2423_v51 = vpop.f32.mrf.mxu1 }
 0x19f   : > { %v2846_v32 = vpop.f32.mrf.mxu0  ;;  %v2542_v50 = vadd.f32 %v2423_v51, %v6140_v7 }
 0x1a0   : > { %v6236_v5 = vadd.f32 %v2846_v32, %v2538_v42  ;;  %v4756_v54 = vpop.f32.mrf.mxu1 }
 0x1a1   : > { %v4790_v9 = vpop.f32.mrf.mxu0  ;;  %v2545_v41 = vadd.f32 %v4756_v54, %v6143_v57 }
 0x1a2   : > { %v6239_v60 = vadd.f32 %v4790_v9, %v2541_v47  ;;  %v2426_v62 = vpop.f32.mrf.mxu1 }
 0x1a3   : > { %v2849_v38 = vpop.f32.mrf.mxu0  ;;  %v2543_v52 = vadd.f32 %v2426_v62, %v6146_v37 }
 0x1a4   : > { %v6242_v31 = vadd.f32 %v2849_v38, %v2539_v11  ;;  %v4759_v14 = vpop.f32.mrf.mxu1 }
 0x1a5   : > { %v4793_v23 = vpop.f32.mrf.mxu0  ;;  %v2548_v49 = vadd.f32 %v4759_v14, %v6149_v63 }
 0x1a6   : > { %v6245_v46 = vadd.f32 %v4793_v23, %v2544_v1  ;;  %v2439_v7 = vpop.f32.mrf.mxu1 }
 0x1a7   : > { %v2862_v53 = vpop.f32.mrf.mxu0  ;;  %v2546_v26 = vadd.f32 %v2439_v7, %v6152_v18 }
 0x1a8   : > { %v6248_v13 = vadd.f32 %v2862_v53, %v2542_v50  ;;  %v4760_v57 = vpop.f32.mrf.mxu1 }
 0x1a9   : > { %v4794_v36 = vpop.f32.mrf.mxu0  ;;  %v2549_v10 = vadd.f32 %v4760_v57, %v6155_v39 }
 0x1aa   : > { %v6251_v28 = vadd.f32 %v4794_v36, %v2545_v41  ;;  %v2442_v37 = vpop.f32.mrf.mxu1 }
 0x1ab   : > { %v2865_v35 = vpop.f32.mrf.mxu0  ;;  %v2547_v3 = vadd.f32 %v2442_v37, %v6158_v55 }
 0x1ac   : > { %v6254_v42 = vadd.f32 %v2865_v35, %v2543_v52  ;;  %v4763_v63 = vpop.f32.mrf.mxu1 }
 0x1ad   : > { %v4797_v44 = vpop.f32.mrf.mxu0  ;;  %v2552_v43 = vadd.f32 %v4763_v63, %v6161_v30 }
 0x1ae   : > { %v6257_v47 = vadd.f32 %v4797_v44, %v2548_v49  ;;  %v2455_v18 = vpop.f32.mrf.mxu1 }
 0x1af   : > { %v2878_v15 = vpop.f32.mrf.mxu0  ;;  %v2550_v32 = vadd.f32 %v2455_v18, %v6164_v40 }
 0x1b0   : > { %v6260_v11 = vadd.f32 %v2878_v15, %v2546_v26  ;;  %v4764_v39 = vpop.f32.mrf.mxu1 }
 0x1b1   : > { %v4798_v20 = vpop.f32.mrf.mxu0  ;;  %v2553_v9 = vadd.f32 %v4764_v39, %v6167_v21 }
 0x1b2   : > { %v6263_v1 = vadd.f32 %v4798_v20, %v2549_v10  ;;  %v2458_v55 = vpop.f32.mrf.mxu1 }
 0x1b3   : > { %v2881_v51 = vpop.f32.mrf.mxu0  ;;  %v2551_v38 = vadd.f32 %v2458_v55, %v6170_v2 }
 0x1b4   : > { %v6266_v50 = vadd.f32 %v2881_v51, %v2547_v3  ;;  %v4767_v30 = vpop.f32.mrf.mxu1 }
 0x1b5   : > { %v4801_v54 = vpop.f32.mrf.mxu0  ;;  %v2556_v23 = vadd.f32 %v4767_v30, %v6173_v58 }
 0x1b6   : > { %v6269_v41 = vadd.f32 %v4801_v54, %v2552_v43  ;;  %v2471_v40 = vpop.f32.mrf.mxu1 }
 0x1b7   : > { %v2894_v62 = vpop.f32.mrf.mxu0  ;;  %v2554_v53 = vadd.f32 %v2471_v40, %v6176_v8 }
 0x1b8   : > { %v6272_v52 = vadd.f32 %v2894_v62, %v2550_v32  ;;  %v4768_v21 = vpop.f32.mrf.mxu1 }
 0x1b9   : > { %v4802_v14 = vpop.f32.mrf.mxu0  ;;  %v2557_v36 = vadd.f32 %v4768_v21, %v6179_v4 }
 0x1ba   : > { %v6275_v49 = vadd.f32 %v4802_v14, %v2553_v9  ;;  %v2474_v2 = vpop.f32.mrf.mxu1 }
 0x1bb   : > { %v2897_v7 = vpop.f32.mrf.mxu0  ;;  %v2555_v35 = vadd.f32 %v2474_v2, %v6182_v0 }
 0x1bc   : > { %v6278_v26 = vadd.f32 %v2897_v7, %v2551_v38  ;;  %v4771_v58 = vpop.f32.mrf.mxu1 }
 0x1bd   : > { %v4805_v57 = vpop.f32.mrf.mxu0  ;;  %v2560_v44 = vadd.f32 %v4771_v58, %v6185_v59 }
 0x1be   : > { %v6281_v10 = vadd.f32 %v4805_v57, %v2556_v23  ;;  %v2487_v8 = vpop.f32.mrf.mxu1 }
 0x1bf   : > { %v2910_v37 = vpop.f32.mrf.mxu0  ;;  %v2558_v15 = vadd.f32 %v2487_v8, %v6188_v48 }
 0x1c0   : > { %v6284_v3 = vadd.f32 %v2910_v37, %v2554_v53  ;;  %v4772_v4 = vpop.f32.mrf.mxu1 }
 0x1c1   : > { %v4806_v63 = vpop.f32.mrf.mxu0  ;;  %v2561_v20 = vadd.f32 %v4772_v4, %v6191_v19 }
 0x1c2   : > { %v6287_v43 = vadd.f32 %v4806_v63, %v2557_v36  ;;  %v2490_v0 = vpop.f32.mrf.mxu1 }
 0x1c3   : > { %v2913_v18 = vpop.f32.mrf.mxu0  ;;  %v2559_v51 = vadd.f32 %v2490_v0, %v6194_v29 }
 0x1c4   : > { %v6290_v32 = vadd.f32 %v2913_v18, %v2555_v35  ;;  %v4775_v59 = vpop.f32.mrf.mxu1 }
 0x1c5   : > { %v4809_v39 = vpop.f32.mrf.mxu0  ;;  %v2564_v54 = vadd.f32 %v4775_v59, %v6197_v16 }
 0x1c6   : > { %v6293_v9 = vadd.f32 %v4809_v39, %v2560_v44  ;;  %v2503_v48 = vpop.f32.mrf.mxu1 }
 0x1c7   : > { %v2926_v55 = vpop.f32.mrf.mxu0  ;;  %v2562_v62 = vadd.f32 %v2503_v48, %v6200_v25 }
 0x1c8   : > { %v6296_v38 = vadd.f32 %v2926_v55, %v2558_v15  ;;  %v4776_v19 = vpop.f32.mrf.mxu1 }
 0x1c9   : > { %v4810_v30 = vpop.f32.mrf.mxu0  ;;  %v2565_v14 = vadd.f32 %v4776_v19, %v6203_v61 }
 0x1ca   : > { %v6299_v23 = vadd.f32 %v4810_v30, %v2561_v20  ;;  %v2506_v29 = vpop.f32.mrf.mxu1 }
 0x1cb   : > { %v2929_v40 = vpop.f32.mrf.mxu0  ;;  %v2563_v7 = vadd.f32 %v2506_v29, %v6206_v6 }
 0x1cc   : > { %v6302_v53 = vadd.f32 %v2929_v40, %v2559_v51  ;;  %v4779_v16 = vpop.f32.mrf.mxu1 }
 0x1cd   : > { %v4813_v21 = vpop.f32.mrf.mxu0  ;;  %v2568_v57 = vadd.f32 %v4779_v16, %v6209_v22  ;;  %v3858_v16 = vld [vmem:[%s6338_s28 + $0x10] sm:$0xff] }
 0x1ce   : > { %v6305_v36 = vadd.f32 %v4813_v21, %v2564_v54  ;;  %v2519_v25 = vpop.f32.mrf.mxu1 }
 0x1cf   : > { %v2942_v2 = vpop.f32.mrf.mxu0  ;;  %v2566_v37 = vadd.f32 %v2519_v25, %v6212_v24 }
 0x1d0   : > { %v6308_v35 = vadd.f32 %v2942_v2, %v2562_v62  ;;  %v4780_v44 = vpop.f32.mrf.mxu1  ;;  %v6330_v62 = vld [vmem:[%s6541_s2] ss:$0 sm:$0xff] }
 0x1d1   : > { %v4814_v58 = vpop.f32.mrf.mxu0  ;;  %v2569_v63 = vadd.f32 %v4780_v44, %v6215_v45 }
 0x1d2   : > { %v6311_v61 = vadd.f32 %v4814_v58, %v2565_v14  ;;  %v2522_v15 = vpop.f32.mrf.mxu1  ;;  %v6343_v14 = vld [vmem:[%s6542_s3] ss:$0 sm:$0xff] }
 0x1d3   : > { %v2945_v8 = vpop.f32.mrf.mxu0  ;;  %v2567_v18 = vadd.f32 %v2522_v15, %v6218_v34 }
 0x1d4   : > { %v6314_v6 = vadd.f32 %v2945_v8, %v2563_v7  ;;  %v4823_v20 = vpop.f32.mrf.mxu1  ;;  %v3856_v8 = vld [vmem:[%s6338_s28] sm:$0xff] }
 0x1d5   : > { %v4817_v4 = vpop.f32.mrf.mxu0  ;;  %v3422_v54 = vadd.f32 %v4823_v20, %v6221_v56 }
 0x1d6   : > { %v6317_v22 = vadd.f32 %v4817_v4, %v2568_v57  ;;  %v3277_v24 = vpop.f32.mrf.mxu1 }
 0x1d7   : > { %v2958_v0 = vpop.f32.mrf.mxu0  ;;  %v3420_v19 = vadd.f32 %v3277_v24, %v6224_v33 }
 0x1d8   : > { %v6319_v39 = vadd.f32 %v2958_v0, %v2566_v37  ;;  %v4824_v55 = vpop.f32.mrf.mxu1  ;;  %v3859_v0 = vld [vmem:[%s6338_s28 + $0x18] sm:$0xff] }
 0x1d9   : > { %v4818_v51 = vpop.f32.mrf.mxu0  ;;  %v3423_v21 = vadd.f32 %v4824_v55, %v6227_v17 }
 0x1da   : > { %v6321_v59 = vadd.f32 %v4818_v51, %v2569_v63  ;;  %v3280_v30 = vpop.f32.mrf.mxu1 }
 0x1db   : > { %v2961_v45 = vpop.f32.mrf.mxu0  ;;  %v3421_v44 = vadd.f32 %v3280_v30, %v6230_v12 }
 0x1dc   : > { %v6325_v48 = vadd.f32 %v2961_v45, %v2567_v18  ;;  %v4827_v40 = vpop.f32.mrf.mxu1 }
 0x1dd   : > { %v4861_v34 = vpop.f32.mrf.mxu0  ;;  %v3426_v20 = vadd.f32 %v4827_v40, %v6233_v27 }
 0x1de   : > { %v3736_v56 = vadd.f32 %v4861_v34, %v3422_v54  ;;  %v3293_v2 = vpop.f32.mrf.mxu1 }
 0x1df   : > { %v3591_v29 = vpop.f32.mrf.mxu0  ;;  %v3424_v45 = vadd.f32 %v3293_v2, %v6236_v5 }
 0x1e0   : > { %v3779_v33 = vmul.f32 %v6330_v62, %v3736_v56  ;;  %v3734_v7 = vadd.f32 %v3591_v29, %v3420_v19  ;;  %v4828_v63 = vpop.f32.mrf.mxu1 }
 0x1e1   : > { %v4862_v57 = vpop.f32.mrf.mxu0  ;;  %v3427_v29 = vadd.f32 %v4828_v63, %v6239_v60 }
 0x1e2   : > { %v3822_v25 = vadd.f32 %v6343_v14, %v3779_v33  ;;  %v3777_v58 = vmul.f32 %v6330_v62, %v3734_v7  ;;  %v3737_v37 = vadd.f32 %v4862_v57, %v3423_v21  ;;  %v3296_v12 = vpop.f32.mrf.mxu1  ;;  %v3857_v33 = vld [vmem:[%s6338_s28 + $0x8] sm:$0xff] }
 0x1e3   : > { %v3594_v15 = vpop.f32.mrf.mxu0 }
 0x1e4   : > { %v3894_v4 = vadd.f32 %v3858_v16, %v3822_v25  ;;  %v3820_v17 = vadd.f32 %v6343_v14, %v3777_v58  ;;  %v3780_v18 = vmul.f32 %v6330_v62, %v3737_v37  ;;  %v3735_v24 = vadd.f32 %v3594_v15, %v3421_v44  ;;  %v4831_v34 = vpop.f32.mrf.mxu1  ;;  %v3862_v37 = vld [vmem:[%s6338_s28 + $0x30] sm:$0xff]  ;;  %v3860_v15 = vld [vmem:[%s6338_s28 + $0x20] sm:$0xff] }
 0x1e5   : > { %v4865_v51 = vpop.f32.mrf.mxu0  ;;  %v3425_v58 = vadd.f32 %v3296_v12, %v6242_v31  ;;  %v3430_v12 = vadd.f32 %v4831_v34, %v6245_v46 }
 0x1e6   : > { %v3930_v55 = vmax.f32 %v3894_v4, 0.0  ;;  %v3892_v54 = vadd.f32 %v3856_v8, %v3820_v17  ;;  %v3823_v30 = vadd.f32 %v6343_v14, %v3780_v18  ;;  %v3778_v27 = vmul.f32 %v6330_v62, %v3735_v24  ;;  %v3309_v2 = vpop.f32.mrf.mxu1 }
 0x1e7   : > { %v3740_v19 = vadd.f32 %v4865_v51, %v3426_v20  ;;  %v3607_v56 = vpop.f32.mrf.mxu0  ;;  %v3863_v51 = vld [vmem:[%s6338_s28 + $0x38] sm:$0xff] }
 0x1e8   : > { %3966 = vst [vmem:[%s6360_s8 + $0x10] sm:$0xff] %v3930_v55  ;;  %v3928_v40 = vmax.f32 %v3892_v54, 0.0  ;;  %v3895_v21 = vadd.f32 %v3859_v0, %v3823_v30  ;;  %v3738_v7 = vadd.f32 %v3607_v56, %v3424_v45  ;;  %v3821_v5 = vadd.f32 %v6343_v14, %v3778_v27  ;;  %v4832_v4 = vpop.f32.mrf.mxu1 }
 0x1e9   : > { %v3783_v16 = vmul.f32 %v6330_v62, %v3740_v19  ;;  %v4866_v57 = vpop.f32.mrf.mxu0  ;;  %v3428_v56 = vadd.f32 %v3309_v2, %v6248_v13 }
 0x1ea   : > { %3964 = vst [vmem:[%s6360_s8] sm:$0xff] %v3928_v40  ;;  %v3931_v25 = vmax.f32 %v3895_v21, 0.0  ;;  %v3781_v44 = vmul.f32 %v6330_v62, %v3738_v7  ;;  %v3741_v60 = vadd.f32 %v4866_v57, %v3427_v29  ;;  %v3893_v8 = vadd.f32 %v3857_v33, %v3821_v5  ;;  %v3312_v55 = vpop.f32.mrf.mxu1  ;;  %v3861_v40 = vld [vmem:[%s6338_s28 + $0x28] sm:$0xff] }
 0x1eb   : > { %v3826_v63 = vadd.f32 %v6343_v14, %v3783_v16  ;;  %v3610_v17 = vpop.f32.mrf.mxu0  ;;  %v3431_v33 = vadd.f32 %v4832_v4, %v6251_v28  ;;  %v3429_v2 = vadd.f32 %v3312_v55, %v6254_v42 }
 0x1ec   : > { %3967 = vst [vmem:[%s6360_s8 + $0x18] sm:$0xff] %v3931_v25  ;;  %v3824_v18 = vadd.f32 %v6343_v14, %v3781_v44  ;;  %v3784_v20 = vmul.f32 %v6330_v62, %v3741_v60  ;;  %v3739_v0 = vadd.f32 %v3610_v17, %v3425_v58  ;;  %v3929_v31 = vmax.f32 %v3893_v8, 0.0  ;;  %v4835_v29 = vpop.f32.mrf.mxu1  ;;  %v3866_v44 = vld [vmem:[%s6338_s28 + $0x50] sm:$0xff] }
 0x1ed   : > { %v3898_v24 = vadd.f32 %v3862_v37, %v3826_v63  ;;  %v4869_v45 = vpop.f32.mrf.mxu0  ;;  %v3434_v17 = vadd.f32 %v4835_v29, %v6257_v47 }
 0x1ee   : > { %v3896_v54 = vadd.f32 %v3860_v15, %v3824_v18  ;;  %v3827_v30 = vadd.f32 %v6343_v14, %v3784_v20  ;;  %v3782_v27 = vmul.f32 %v6330_v62, %v3739_v0  ;;  %3965 = vst [vmem:[%s6360_s8 + $0x8] sm:$0xff] %v3929_v31  ;;  %v3744_v21 = vadd.f32 %v4869_v45, %v3430_v12  ;;  %v3325_v57 = vpop.f32.mrf.mxu1  ;;  %v3864_v18 = vld [vmem:[%s6338_s28 + $0x40] sm:$0xff]  ;;  %v3867_v12 = vld [vmem:[%s6338_s28 + $0x58] sm:$0xff] }
 0x1ef   : > { %v3934_v19 = vmax.f32 %v3898_v24, 0.0  ;;  %v3623_v46 = vpop.f32.mrf.mxu0 }
 0x1f0   : > { %v3932_v34 = vmax.f32 %v3896_v54, 0.0  ;;  %v3899_v7 = vadd.f32 %v3863_v51, %v3827_v30  ;;  %v3825_v5 = vadd.f32 %v6343_v14, %v3782_v27  ;;  %v3787_v16 = vmul.f32 %v6330_v62, %v3744_v21  ;;  %v4836_v63 = vpop.f32.mrf.mxu1 }
 0x1f1   : > { %3970 = vst [vmem:[%s6360_s8 + $0x30] sm:$0xff] %v3934_v19  ;;  %v3742_v25 = vadd.f32 %v3623_v46, %v3428_v56  ;;  %v4870_v58 = vpop.f32.mrf.mxu0  ;;  %v3432_v30 = vadd.f32 %v3325_v57, %v6260_v11  ;;  %v3865_v19 = vld [vmem:[%s6338_s28 + $0x48] sm:$0xff] }
 0x1f2   : > { %3968 = vst [vmem:[%s6360_s8 + $0x20] sm:$0xff] %v3932_v34  ;;  %v3935_v13 = vmax.f32 %v3899_v7, 0.0  ;;  %v3897_v37 = vadd.f32 %v3861_v40, %v3825_v5  ;;  %v3745_v60 = vadd.f32 %v4870_v58, %v3431_v33  ;;  %v3830_v28 = vadd.f32 %v6343_v14, %v3787_v16  ;;  %v3328_v24 = vpop.f32.mrf.mxu1  ;;  %v3870_v7 = vld [vmem:[%s6338_s28 + $0x70] sm:$0xff] }
 0x1f3   : > { %v3785_v8 = vmul.f32 %v6330_v62, %v3742_v25  ;;  %v3626_v15 = vpop.f32.mrf.mxu0  ;;  %v3435_v33 = vadd.f32 %v4836_v63, %v6263_v1  ;;  %v3433_v25 = vadd.f32 %v3328_v24, %v6266_v50  ;;  %v3868_v63 = vld [vmem:[%s6338_s28 + $0x60] sm:$0xff] }
 0x1f4   : > { %3971 = vst [vmem:[%s6360_s8 + $0x38] sm:$0xff] %v3935_v13  ;;  %v3933_v4 = vmax.f32 %v3897_v37, 0.0  ;;  %v3788_v20 = vmul.f32 %v6330_v62, %v3745_v60  ;;  %v3743_v42 = vadd.f32 %v3626_v15, %v3429_v2  ;;  %v3902_v0 = vadd.f32 %v3866_v44, %v3830_v28  ;;  %v4839_v56 = vpop.f32.mrf.mxu1 }
 0x1f5   : > { %v3828_v31 = vadd.f32 %v6343_v14, %v3785_v8  ;;  %v4873_v51 = vpop.f32.mrf.mxu0  ;;  %v3438_v28 = vadd.f32 %v4839_v56, %v6269_v41  ;;  %v3874_v56 = vld [vmem:[%s6338_s28 + $0x90] sm:$0xff] }
 0x1f6   : > { %3969 = vst [vmem:[%s6360_s8 + $0x28] sm:$0xff] %v3933_v4  ;;  %v3831_v55 = vadd.f32 %v6343_v14, %v3788_v20  ;;  %v3786_v45 = vmul.f32 %v6330_v62, %v3743_v42  ;;  %v3748_v54 = vadd.f32 %v4873_v51, %v3434_v17  ;;  %v3938_v47 = vmax.f32 %v3902_v0, 0.0  ;;  %v3341_v5 = vpop.f32.mrf.mxu1  ;;  %v3871_v0 = vld [vmem:[%s6338_s28 + $0x78] sm:$0xff]  ;;  %v3869_v51 = vld [vmem:[%s6338_s28 + $0x68] sm:$0xff] }
 0x1f7   : > { %v3900_v27 = vadd.f32 %v3864_v18, %v3828_v31  ;;  %v3639_v40 = vpop.f32.mrf.mxu0  ;;  %v3436_v42 = vadd.f32 %v3341_v5, %v6272_v52  ;;  %v3872_v5 = vld [vmem:[%s6338_s28 + $0x80] sm:$0xff] }
 0x1f8   : > { %v3903_v29 = vadd.f32 %v3867_v12, %v3831_v55  ;;  %v3829_v21 = vadd.f32 %v6343_v14, %v3786_v45  ;;  %v3791_v46 = vmul.f32 %v6330_v62, %v3748_v54  ;;  %3974 = vst [vmem:[%s6360_s8 + $0x50] sm:$0xff] %v3938_v47  ;;  %v3746_v16 = vadd.f32 %v3639_v40, %v3432_v30  ;;  %v4840_v37 = vpop.f32.mrf.mxu1 }
 0x1f9   : > { %v3936_v34 = vmax.f32 %v3900_v27, 0.0  ;;  %v4874_v11 = vpop.f32.mrf.mxu0  ;;  %v3439_v27 = vadd.f32 %v4840_v37, %v6275_v49 }
 0x1fa   : > { %v3939_v57 = vmax.f32 %v3903_v29, 0.0  ;;  %v3901_v58 = vadd.f32 %v3865_v19, %v3829_v21  ;;  %v3834_v13 = vadd.f32 %v6343_v14, %v3791_v46  ;;  %v3789_v2 = vmul.f32 %v6330_v62, %v3746_v16  ;;  %v3344_v17 = vpop.f32.mrf.mxu1 }
 0x1fb   : > { %3972 = vst [vmem:[%s6360_s8 + $0x40] sm:$0xff] %v3936_v34  ;;  %v3749_v44 = vadd.f32 %v4874_v11, %v3435_v33  ;;  %v3642_v60 = vpop.f32.mrf.mxu0 }
 0x1fc   : > { %3975 = vst [vmem:[%s6360_s8 + $0x58] sm:$0xff] %v3939_v57  ;;  %v3937_v1 = vmax.f32 %v3901_v58, 0.0  ;;  %v3906_v8 = vadd.f32 %v3870_v7, %v3834_v13  ;;  %v3747_v15 = vadd.f32 %v3642_v60, %v3433_v25  ;;  %v3832_v50 = vadd.f32 %v6343_v14, %v3789_v2  ;;  %v4843_v55 = vpop.f32.mrf.mxu1 }
 0x1fd   : > { %v3792_v4 = vmul.f32 %v6330_v62, %v3749_v44  ;;  %v4877_v18 = vpop.f32.mrf.mxu0  ;;  %v3437_v7 = vadd.f32 %v3344_v17, %v6278_v26  ;;  %v3442_v25 = vadd.f32 %v4843_v55, %v6281_v10 }
 0x1fe   : > { %3973 = vst [vmem:[%s6360_s8 + $0x48] sm:$0xff] %v3937_v1  ;;  %v3942_v20 = vmax.f32 %v3906_v8, 0.0  ;;  %v3790_v31 = vmul.f32 %v6330_v62, %v3747_v15  ;;  %v3752_v41 = vadd.f32 %v4877_v18, %v3438_v28  ;;  %v3904_v12 = vadd.f32 %v3868_v63, %v3832_v50  ;;  %v3357_v40 = vpop.f32.mrf.mxu1  ;;  %v3875_v8 = vld [vmem:[%s6338_s28 + $0x98] sm:$0xff] }
 0x1ff   : > { %v3835_v24 = vadd.f32 %v6343_v14, %v3792_v4  ;;  %v3655_v45 = vpop.f32.mrf.mxu0  ;;  %v3440_v1 = vadd.f32 %v3357_v40, %v6284_v3 }
 0x200   : > { %3978 = vst [vmem:[%s6360_s8 + $0x70] sm:$0xff] %v3942_v20  ;;  %v3833_v54 = vadd.f32 %v6343_v14, %v3790_v31  ;;  %v3795_v47 = vmul.f32 %v6330_v62, %v3752_v41  ;;  %v3750_v30 = vadd.f32 %v3655_v45, %v3436_v42  ;;  %v3940_v52 = vmax.f32 %v3904_v12, 0.0  ;;  %v4844_v16 = vpop.f32.mrf.mxu1  ;;  %v3873_v20 = vld [vmem:[%s6338_s28 + $0x88] sm:$0xff]  ;;  %v3878_v41 = vld [vmem:[%s6338_s28 + $0xb0] sm:$0xff] }
 0x201   : > { %v3907_v19 = vadd.f32 %v3871_v0, %v3835_v24  ;;  %v4878_v29 = vpop.f32.mrf.mxu0  ;;  %v3443_v18 = vadd.f32 %v4844_v16, %v6287_v43 }
 0x202   : > { %v3905_v21 = vadd.f32 %v3869_v51, %v3833_v54  ;;  %v3838_v46 = vadd.f32 %v6343_v14, %v3795_v47  ;;  %v3793_v34 = vmul.f32 %v6330_v62, %v3750_v30  ;;  %3976 = vst [vmem:[%s6360_s8 + $0x60] sm:$0xff] %v3940_v52  ;;  %v3753_v11 = vadd.f32 %v4878_v29, %v3439_v27  ;;  %v3360_v37 = vpop.f32.mrf.mxu1  ;;  %v3876_v30 = vld [vmem:[%s6338_s28 + $0xa0] sm:$0xff] }
 0x203   : > { %v3943_v33 = vmax.f32 %v3907_v19, 0.0  ;;  %v3658_v49 = vpop.f32.mrf.mxu0  ;;  %v3441_v54 = vadd.f32 %v3360_v37, %v6290_v32  ;;  %v3877_v37 = vld [vmem:[%s6338_s28 + $0xa8] sm:$0xff] }
 0x204   : > { %v3941_v57 = vmax.f32 %v3905_v21, 0.0  ;;  %v3910_v58 = vadd.f32 %v3874_v56, %v3838_v46  ;;  %v3836_v13 = vadd.f32 %v6343_v14, %v3793_v34  ;;  %v3796_v2 = vmul.f32 %v6330_v62, %v3753_v11  ;;  %v4847_v50 = vpop.f32.mrf.mxu1  ;;  %v3879_v46 = vld [vmem:[%s6338_s28 + $0xb8] sm:$0xff] }
 0x205   : > { %3979 = vst [vmem:[%s6360_s8 + $0x78] sm:$0xff] %v3943_v33  ;;  %v3751_v44 = vadd.f32 %v3658_v49, %v3437_v7  ;;  %v4881_v60 = vpop.f32.mrf.mxu0  ;;  %v3446_v21 = vadd.f32 %v4847_v50, %v6293_v9 }
 0x206   : > { %3977 = vst [vmem:[%s6360_s8 + $0x68] sm:$0xff] %v3941_v57  ;;  %v3946_v26 = vmax.f32 %v3910_v58, 0.0  ;;  %v3908_v28 = vadd.f32 %v3872_v5, %v3836_v13  ;;  %v3756_v63 = vadd.f32 %v4881_v60, %v3442_v25  ;;  %v3839_v10 = vadd.f32 %v6343_v14, %v3796_v2  ;;  %v3373_v12 = vpop.f32.mrf.mxu1 }
 0x207   : > { %v3794_v15 = vmul.f32 %v6330_v62, %v3751_v44  ;;  %v3671_v4 = vpop.f32.mrf.mxu0  ;;  %v3444_v5 = vadd.f32 %v3373_v12, %v6296_v38 }
 0x208   : > { %3982 = vst [vmem:[%s6360_s8 + $0x90] sm:$0xff] %v3946_v26  ;;  %v3944_v17 = vmax.f32 %v3908_v28, 0.0  ;;  %v3799_v42 = vmul.f32 %v6330_v62, %v3756_v63  ;;  %v3754_v3 = vadd.f32 %v3671_v4, %v3440_v1  ;;  %v3911_v0 = vadd.f32 %v3875_v8, %v3839_v10  ;;  %v4848_v52 = vpop.f32.mrf.mxu1  ;;  %v3882_v63 = vld [vmem:[%s6338_s28 + $0xd0] sm:$0xff]  ;;  %v3880_v4 = vld [vmem:[%s6338_s28 + $0xc0] sm:$0xff] }
 0x209   : > { %v3837_v31 = vadd.f32 %v6343_v14, %v3794_v15  ;;  %v4882_v24 = vpop.f32.mrf.mxu0  ;;  %v3447_v13 = vadd.f32 %v4848_v52, %v6299_v23 }
 0x20a   : > { %3980 = vst [vmem:[%s6360_s8 + $0x80] sm:$0xff] %v3944_v17  ;;  %v3842_v51 = vadd.f32 %v6343_v14, %v3799_v42  ;;  %v3797_v55 = vmul.f32 %v6330_v62, %v3754_v3  ;;  %v3757_v45 = vadd.f32 %v4882_v24, %v3443_v18  ;;  %v3947_v43 = vmax.f32 %v3911_v0, 0.0  ;;  %v3376_v34 = vpop.f32.mrf.mxu1 }
 0x20b   : > { %v3909_v47 = vadd.f32 %v3873_v20, %v3837_v31  ;;  %v3674_v27 = vpop.f32.mrf.mxu0  ;;  %v3445_v8 = vadd.f32 %v3376_v34, %v6302_v53 }
 0x20c   : > { %v3914_v19 = vadd.f32 %v3878_v41, %v3842_v51  ;;  %v3840_v56 = vadd.f32 %v6343_v14, %v3797_v55  ;;  %v3800_v40 = vmul.f32 %v6330_v62, %v3757_v45  ;;  %3983 = vst [vmem:[%s6360_s8 + $0x98] sm:$0xff] %v3947_v43  ;;  %v3755_v33 = vadd.f32 %v3674_v27, %v3441_v54  ;;  %v4851_v57 = vpop.f32.mrf.mxu1  ;;  %v3883_v41 = vld [vmem:[%s6338_s28 + $0xd8] sm:$0xff] }
 0x20d   : > { %v3945_v29 = vmax.f32 %v3909_v47, 0.0  ;;  %v4885_v32 = vpop.f32.mrf.mxu0  ;;  %v3450_v0 = vadd.f32 %v4851_v57, %v6305_v36  ;;  %v3881_v47 = vld [vmem:[%s6338_s28 + $0xc8] sm:$0xff] }
 0x20e   : > { %v3950_v7 = vmax.f32 %v3914_v19, 0.0  ;;  %v3912_v16 = vadd.f32 %v3876_v30, %v3840_v56  ;;  %v3843_v11 = vadd.f32 %v6343_v14, %v3800_v40  ;;  %v3798_v49 = vmul.f32 %v6330_v62, %v3755_v33  ;;  %v3389_v26 = vpop.f32.mrf.mxu1 }
 0x20f   : > { %3981 = vst [vmem:[%s6360_s8 + $0x88] sm:$0xff] %v3945_v29  ;;  %v3760_v25 = vadd.f32 %v4885_v32, %v3446_v21  ;;  %v3687_v58 = vpop.f32.mrf.mxu0  ;;  %v3448_v54 = vadd.f32 %v3389_v26, %v6308_v35 }
 0x210   : > { %3986 = vst [vmem:[%s6360_s8 + $0xb0] sm:$0xff] %v3950_v7  ;;  %v3948_v9 = vmax.f32 %v3912_v16, 0.0  ;;  %v3915_v2 = vadd.f32 %v3879_v46, %v3843_v11  ;;  %v3758_v44 = vadd.f32 %v3687_v58, %v3444_v5  ;;  %v3841_v38 = vadd.f32 %v6343_v14, %v3798_v49  ;;  %v4852_v17 = vpop.f32.mrf.mxu1  ;;  %v3886_v7 = vld [vmem:[%s6338_s28 + $0xf0] sm:$0xff]  ;;  %v3884_v58 = vld [vmem:[%s6338_s28 + $0xe0] sm:$0xff] }
 0x211   : > { %v3803_v60 = vmul.f32 %v6330_v62, %v3760_v25  ;;  %v4886_v1 = vpop.f32.mrf.mxu0  ;;  %v3451_v19 = vadd.f32 %v4852_v17, %v6311_v61 }
 0x212   : > { %3984 = vst [vmem:[%s6360_s8 + $0xa0] sm:$0xff] %v3948_v9  ;;  %v3951_v28 = vmax.f32 %v3915_v2, 0.0  ;;  %v3801_v10 = vmul.f32 %v6330_v62, %v3758_v44  ;;  %v3761_v23 = vadd.f32 %v4886_v1, %v3447_v13  ;;  %v3913_v15 = vadd.f32 %v3877_v37, %v3841_v38  ;;  %v3392_v12 = vpop.f32.mrf.mxu1  ;;  %v3887_v37 = vld [vmem:[%s6338_s28 + $0xf8] sm:$0xff] }
 0x213   : > { %v3846_v50 = vadd.f32 %v6343_v14, %v3803_v60  ;;  %v3690_v18 = vpop.f32.mrf.mxu0  ;;  %v3449_v33 = vadd.f32 %v3392_v12, %v6314_v6 }
 0x214   : > { %3987 = vst [vmem:[%s6360_s8 + $0xb8] sm:$0xff] %v3951_v28  ;;  %v3844_v20 = vadd.f32 %v6343_v14, %v3801_v10  ;;  %v3804_v42 = vmul.f32 %v6330_v62, %v3761_v23  ;;  %v3759_v3 = vadd.f32 %v3690_v18, %v3445_v8  ;;  %v3949_v53 = vmax.f32 %v3913_v15, 0.0  ;;  %v4855_v30 = vpop.f32.mrf.mxu1 }
 0x215   : > { %v3918_v31 = vadd.f32 %v3882_v63, %v3846_v50  ;;  %v4889_v24 = vpop.f32.mrf.mxu0  ;;  %v3454_v25 = vadd.f32 %v4855_v30, %v6317_v22  ;;  %v3885_v63 = vld [vmem:[%s6338_s28 + $0xe8] sm:$0xff] }
 0x216   : > { %v3916_v51 = vadd.f32 %v3880_v4, %v3844_v20  ;;  %v3847_v55 = vadd.f32 %v6343_v14, %v3804_v42  ;;  %v3802_v45 = vmul.f32 %v6330_v62, %v3759_v3  ;;  %3985 = vst [vmem:[%s6360_s8 + $0xa8] sm:$0xff] %v3949_v53  ;;  %v3764_v52 = vadd.f32 %v4889_v24, %v3450_v0  ;;  %v3405_v21 = vpop.f32.mrf.mxu1  ;;  %v3890_v20 = vld [vmem:[%s6338_s28 + $0x110] sm:$0xff] }
 0x217   : > { %v3954_v43 = vmax.f32 %v3918_v31, 0.0  ;;  %v3703_v36 = vpop.f32.mrf.mxu0  ;;  %v3452_v38 = vadd.f32 %v3405_v21, %v6319_v39 }
 0x218   : > { %v3952_v27 = vmax.f32 %v3916_v51, 0.0  ;;  %v3919_v56 = vadd.f32 %v3883_v41, %v3847_v55  ;;  %v3845_v40 = vadd.f32 %v6343_v14, %v3802_v45  ;;  %v3807_v29 = vmul.f32 %v6330_v62, %v3764_v52  ;;  %v4856_v11 = vpop.f32.mrf.mxu1  ;;  %v3888_v41 = vld [vmem:[%s6338_s28 + $0x100] sm:$0xff] }
 0x219   : > { %3990 = vst [vmem:[%s6360_s8 + $0xd0] sm:$0xff] %v3954_v43  ;;  %v3762_v46 = vadd.f32 %v3703_v36, %v3448_v54  ;;  %v4890_v34 = vpop.f32.mrf.mxu0  ;;  %v3455_v17 = vadd.f32 %v4856_v11, %v6321_v59  ;;  %v3889_v36 = vld [vmem:[%s6338_s28 + $0x108] sm:$0xff] }
 0x21a   : > { %3988 = vst [vmem:[%s6360_s8 + $0xc0] sm:$0xff] %v3952_v27  ;;  %v3955_v35 = vmax.f32 %v3919_v56, 0.0  ;;  %v3917_v32 = vadd.f32 %v3881_v47, %v3845_v40  ;;  %v3765_v61 = vadd.f32 %v4890_v34, %v3451_v19  ;;  %v3850_v5 = vadd.f32 %v6343_v14, %v3807_v29  ;;  %v3408_v26 = vpop.f32.mrf.mxu1  ;;  %v3891_v47 = vld [vmem:[%s6338_s28 + $0x118] sm:$0xff] }
 0x21b   : > { %v3805_v16 = vmul.f32 %v6330_v62, %v3762_v46  ;;  %v3706_v49 = vpop.f32.mrf.mxu0  ;;  %v3453_v18 = vadd.f32 %v3408_v26, %v6325_v48 }
 0x21c   : > { %3991 = vst [vmem:[%s6360_s8 + $0xd8] sm:$0xff] %v3955_v35  ;;  %v3953_v57 = vmax.f32 %v3917_v32, 0.0  ;;  %v3808_v9 = vmul.f32 %v6330_v62, %v3765_v61  ;;  %v3763_v6 = vadd.f32 %v3706_v49, %v3449_v33  ;;  %v3922_v13 = vadd.f32 %v3886_v7, %v3850_v5 }
 0x21d   : > { %v3848_v2 = vadd.f32 %v6343_v14, %v3805_v16  ;;  %v4893_v44 = vpop.f32.mrf.mxu0 }
 0x21e   : > { %3989 = vst [vmem:[%s6360_s8 + $0xc8] sm:$0xff] %v3953_v57  ;;  %v3851_v60 = vadd.f32 %v6343_v14, %v3808_v9  ;;  %v3806_v22 = vmul.f32 %v6330_v62, %v3763_v6  ;;  %v3768_v1 = vadd.f32 %v4893_v44, %v3454_v25  ;;  %v3958_v28 = vmax.f32 %v3922_v13, 0.0 }
 0x21f   : > { %v3920_v8 = vadd.f32 %v3884_v58, %v3848_v2  ;;  %v3719_v10 = vpop.f32.mrf.mxu0 }
 0x220   : > { %v3923_v23 = vadd.f32 %v3887_v37, %v3851_v60  ;;  %v3849_v15 = vadd.f32 %v6343_v14, %v3806_v22  ;;  %v3811_v50 = vmul.f32 %v6330_v62, %v3768_v1  ;;  %v3766_v39 = vadd.f32 %v3719_v10, %v3452_v38  ;;  %3994 = vst [vmem:[%s6360_s8 + $0xf0] sm:$0xff] %v3958_v28 }
 0x221   : > { %v3956_v4 = vmax.f32 %v3920_v8, 0.0  ;;  %v4894_v42 = vpop.f32.mrf.mxu0 }
 0x222   : > { %v3959_v3 = vmax.f32 %v3923_v23, 0.0  ;;  %v3921_v53 = vadd.f32 %v3885_v63, %v3849_v15  ;;  %v3854_v0 = vadd.f32 %v6343_v14, %v3811_v50  ;;  %v3809_v31 = vmul.f32 %v6330_v62, %v3766_v39 }
 0x223   : > { %3992 = vst [vmem:[%s6360_s8 + $0xe0] sm:$0xff] %v3956_v4  ;;  %v3769_v12 = vadd.f32 %v4894_v42, %v3455_v17  ;;  %v3722_v24 = vpop.f32.mrf.mxu0 }
 0x224   : > { %3995 = vst [vmem:[%s6360_s8 + $0xf8] sm:$0xff] %v3959_v3  ;;  %v3957_v59 = vmax.f32 %v3921_v53, 0.0  ;;  %v3926_v48 = vadd.f32 %v3890_v20, %v3854_v0  ;;  %v3852_v51 = vadd.f32 %v6343_v14, %v3809_v31  ;;  %v3767_v55 = vadd.f32 %v3722_v24, %v3453_v18 }
 0x225   : > { %v3812_v45 = vmul.f32 %v6330_v62, %v3769_v12 }
 0x226   : > { %3993 = vst [vmem:[%s6360_s8 + $0xe8] sm:$0xff] %v3957_v59  ;;  %v3962_v43 = vmax.f32 %v3926_v48, 0.0  ;;  %v3924_v54 = vadd.f32 %v3888_v41, %v3852_v51  ;;  %v3810_v30 = vmul.f32 %v6330_v62, %v3767_v55 }
 0x227   : > { %v3855_v52 = vadd.f32 %v6343_v14, %v3812_v45 }
 0x228   : > { %3998 = vst [vmem:[%s6360_s8 + $0x110] sm:$0xff] %v3962_v43  ;;  %v3960_v27 = vmax.f32 %v3924_v54, 0.0  ;;  %v3853_v19 = vadd.f32 %v6343_v14, %v3810_v30 }
 0x229   : > { %v3927_v56 = vadd.f32 %v3891_v47, %v3855_v52 }
 0x22a   : > { %3996 = vst [vmem:[%s6360_s8 + $0x100] sm:$0xff] %v3960_v27  ;;  %v3925_v40 = vadd.f32 %v3889_v36, %v3853_v19 }
 0x22b   : > { %v3963_v29 = vmax.f32 %v3927_v56, 0.0 }
 0x22c   : > { %v3961_v21 = vmax.f32 %v3925_v40, 0.0 }
 0x22d   : > { %3999 = vst [vmem:[%s6360_s8 + $0x118] sm:$0xff] %v3963_v29 }
 0x22e   : > { %3997 = vst [vmem:[%s6360_s8 + $0x108] sm:$0xff] %v3961_v21 }
 0x22f PF: > { %s15_s20 = sadd.s32 1, %s5017_s20   ;;  %s6583_s18 = smov %s5013_s19 }
 0x230   : > { %p12_p5 = scmp.ge.s32.totalorder %s15_s20, 4   ;;  %s6584_s19 = smov %s6586_s21 }
 0x232   :  { %14 = sbr.rel (!%p12_p5) target bundleno = 2 (0x2), region = 90 }

</bundles_post_ra>
